<compile_context>
chip_gen: v7x
topology: tpu7x:2x2x1
jax: 0.10.0
libtpu: 0.0.40
codegen_flags: <defaults>
</compile_context>

<pallas_src>
import functools
import math

import numpy as np
import jax
import jax.numpy as jnp
from jax.experimental import pallas as pl
from jax.experimental.pallas import tpu as pltpu

_INF = 1e30       # larger than any squared pixel distance, safe in f32
_HALF_INF = 5e29  # threshold for "no opposite-class pixel exists"
_SJ = 8           # j-strip height (sublanes): (8, 128) f32 == exactly one vreg


# ----------------------------- Pallas kernel --------------------------------
def _sdf_kernel(occ_i_ref, occ_j_ref, out_ref, *, R, C, TI, TJ, n_valid, padded):
    """Brute-force signed Euclidean distance transform, all C channels per block.

    occ_i_ref : (C, TI)  occupancy (0./1.) of the i-tile pixels (i on lanes)
    occ_j_ref : (TJ, C)  occupancy (0./1.) of the j-tile pixels (j on sublanes)
    out_ref   : (C, TI)  running min squared distance to the opposite class,
                         converted in place to the signed distance at the last
                         j grid step (lane-dense output)
    """
    jstep = pl.program_id(1)

    @pl.when(jstep == 0)
    def _():
        out_ref[...] = jnp.full_like(out_ref, _INF)

    # In-kernel pixel coordinates (index units, like distance_transform_bf).
    # TODO(synk): f32 decode of (row, col) is exact only for R <~ 2896; switch to
    # integer decode if much larger resolutions are ever needed.
    fR = jnp.float32(R)
    gi = (jax.lax.broadcasted_iota(jnp.int32, (1, TI), 1)
          + pl.program_id(0) * TI).astype(jnp.float32)           # (1, TI)
    xi = jnp.floor(gi / fR)
    yi = gi - xi * fR

    occ_i = occ_i_ref[...]                                       # (C, TI)
    # Hoist the sublane broadcast of each channel's query occupancy row out of the
    # strip loop (JAX does not CSE broadcast_in_dim).
    oi_rows = [jnp.broadcast_to(occ_i[c:c + 1, :], (_SJ, TI)) for c in range(C)]

    j_base = jstep * TJ

    # Strip-mined reduction over the j tile: per strip compute the channel-shared
    # (SJ, TI) squared-distance tile once, then update C running elementwise-min
    # accumulators (pure VALU).  Keeps live vregs small regardless of TJ.
    acc = [jnp.full((_SJ, TI), _INF, dtype=jnp.float32) for _ in range(C)]
    for s in range(TJ // _SJ):                                   # static unrolled loop
        gj = (jax.lax.broadcasted_iota(jnp.int32, (_SJ, 1), 0)
              + (j_base + s * _SJ)).astype(jnp.float32)          # (SJ, 1)
        xj = jnp.floor(gj / fR)
        yj = gj - xj * fR
        dx = xj - xi                                             # (SJ, TI)
        dy = yj - yi
        d2 = dx * dx + dy * dy        # squared pixel distance, shared across channels
        if padded:
            # candidate pixels beyond the true image never participate in the min
            d2 = jnp.where(gj < jnp.float32(n_valid), d2, _INF)
        oj = occ_j_ref[pl.ds(s * _SJ, _SJ), :]                   # (SJ, C), static slice
        for c in range(C):
            opposite = oi_rows[c] != oj[:, c:c + 1]              # (SJ, TI)
            acc[c] = jnp.where(opposite, jnp.minimum(acc[c], d2), acc[c])

    mins_all = jnp.concatenate(
        [jnp.min(acc[c], axis=0, keepdims=True) for c in range(C)], axis=0)  # (C, TI)
    out_ref[...] = jnp.minimum(out_ref[...], mins_all)

    @pl.when(jstep == pl.num_programs(1) - 1)
    def _():
        d2min = out_ref[...]                                     # (C, TI)
        # occupied -> +sqrt(min d^2 to background), empty -> -sqrt(min d^2 to foreground)
        sign = 2.0 * occ_i - 1.0
        sdf = sign * jnp.sqrt(d2min)
        # TODO(synk): channel entirely one class (never happens with the synthetic
        # body) is mapped to 0 here; scipy's degenerate behaviour is unspecified.
        out_ref[...] = jnp.where(d2min >= _HALF_INF, 0.0, sdf).astype(out_ref.dtype)


def occ_to_sdf_pallas(occ_hwc):
    """occ_hwc: (R, R, C) float32 of 0/1 -> signed distance image (R, R, C)."""
    R, R2, C = occ_hwc.shape
    assert R == R2
    N = R * R

    # NOTE: single-TensorCore chips (v5e/v6e) would prefer TI=256 (one grid step at
    # R=16); TI=128 keeps >=2 parallel i-blocks so v7x can use both TensorCores.
    TI = 128
    N_pad = ((N + TI - 1) // TI) * TI
    padded = N_pad != N

    # Largest j tile (fewer grid steps / DMAs).  Strip-mining inside the kernel keeps
    # register pressure flat, so TJ no longer needs to be capped at 128/256.
    if N_pad <= 1024:
        TJ = N_pad
    else:
        TJ = next(t for t in (1024, 512, 256, 128) if N_pad % t == 0)

    # Channel-major, pixels on the lane axis (for the i role) ...
    occ_cn = jnp.transpose(occ_hwc, (2, 0, 1)).reshape(C, N).astype(jnp.float32)
    # ... and pixel-major (pixels on sublanes) for the j role.
    occ_nc = occ_hwc.reshape(N, C).astype(jnp.float32)
    if padded:
        occ_cn = jnp.pad(occ_cn, ((0, 0), (0, N_pad - N)))
        occ_nc = jnp.pad(occ_nc, ((0, N_pad - N), (0, 0)))

    kernel = functools.partial(_sdf_kernel, R=R, C=C, TI=TI, TJ=TJ,
                               n_valid=N, padded=padded)

    out_cn = pl.pallas_call(
        kernel,
        out_shape=jax.ShapeDtypeStruct((C, N_pad), jnp.float32),
        grid_spec=pltpu.PrefetchScalarGridSpec(
            num_scalar_prefetch=0,
            grid=(N_pad // TI, N_pad // TJ),
            in_specs=[
                pl.BlockSpec((C, TI), lambda i, j: (0, i)),   # occupancy, i on lanes
                pl.BlockSpec((TJ, C), lambda i, j: (j, 0)),   # occupancy, j on sublanes
            ],
            out_specs=pl.BlockSpec((C, TI), lambda i, j: (0, i)),
        ),
        compiler_params=pltpu.CompilerParams(
            dimension_semantics=("parallel", "arbitrary")),
    )(occ_cn, occ_nc)

    out_cn = out_cn[:, :N]
    # (C, N) -> (R, R, C) to match the PyTorch canvas layout
    return jnp.transpose(out_cn.reshape(C, R, R), (1, 2, 0))


# --------------------------- synthetic Body / Config -------------------------
class _Config:
    IMAGE_RESOLUTION = 16
    THETA_MAX = math.pi
    # INTENSITIES shape (1, C): only its second dim (num organs) matters here
    INTENSITIES = np.linspace(0.2, 0.8, 4, dtype=np.float32).reshape(1, 4)


def _body_is_inside(pts, t, centers, radii):
    """Synthetic stand-in for Body.is_inside: C circular organs rotated by gantry angle t."""
    ct, st = jnp.cos(t), jnp.sin(t)
    cx = 0.5 + (centers[:, 0] - 0.5) * ct - (centers[:, 1] - 0.5) * st   # (C,)
    cy = 0.5 + (centers[:, 0] - 0.5) * st + (centers[:, 1] - 0.5) * ct   # (C,)
    d2 = (pts[:, 0:1] - cx[None, :]) ** 2 + (pts[:, 1:2] - cy[None, :]) ** 2  # (N, C)
    return (d2 <= (radii[None, :] ** 2)).astype(jnp.float32)            # (N, C) of 0/1


def _make_pts(R):
    x, y = np.meshgrid(np.linspace(0, 1, R), np.linspace(0, 1, R))
    return jnp.asarray(np.hstack((x.reshape(-1, 1), y.reshape(-1, 1))), dtype=jnp.float32)


def sdf_gt_forward(t, config, centers, radii):
    """Mirrors SDFGt.forward(t)."""
    assert isinstance(t, float), "t = {} must be a float here".format(t)
    assert -config.THETA_MAX <= t <= config.THETA_MAX, "t = {} is out of range".format(t)
    R = config.IMAGE_RESOLUTION
    C = config.INTENSITIES.shape[1]

    pts = _make_pts(R)                                                   # (R*R, 2)
    inside = _body_is_inside(pts, jnp.float32(t), centers, radii)        # (R*R, C)
    occ_hwc = inside.reshape(R, R, C)                                    # occupancy image
    canvas = occ_to_sdf_pallas(occ_hwc)                                  # (R, R, C) SDF
    assert canvas.ndim == 3
    return canvas


# ------------------------------ reference check ------------------------------
def _ref_occ_to_sdf(occ_hwc):
    R, _, C = occ_hwc.shape
    rr, cc = np.meshgrid(np.arange(R), np.arange(R), indexing="ij")
    coords = np.stack([rr.ravel(), cc.ravel()], -1).astype(np.float64)
    d2 = ((coords[:, None, :] - coords[None, :, :]) ** 2).sum(-1)
    out = np.zeros((R, R, C), dtype=np.float64)
    for k in range(C):
        occ = occ_hwc[..., k].ravel()
        bg = occ == 0
        dbg = np.sqrt(np.where(bg[None, :], d2, np.inf).min(1))
        dfg = np.sqrt(np.where(~bg[None, :], d2, np.inf).min(1))
        out[..., k] = (dbg - dfg).reshape(R, R)
    return out


if __name__ == "__main__":
    config = _Config()
    C = config.INTENSITIES.shape[1]
    R = config.IMAGE_RESOLUTION

    # deterministic synthetic organ parameters
    key = jax.random.PRNGKey(0)
    k1, k2 = jax.random.split(key)
    centers = 0.35 + 0.3 * jax.random.uniform(k1, (C, 2), dtype=jnp.float32)   # in (0.35, 0.65)
    radii = 0.15 + 0.15 * jax.random.uniform(k2, (C,), dtype=jnp.float32)      # in (0.15, 0.30)

    t = 0.3  # gantry angle, within [-THETA_MAX, THETA_MAX]
    canvas = sdf_gt_forward(t, config, centers, radii)
    canvas = jax.block_until_ready(canvas)
    assert canvas.shape == (R, R, C)

    # verify against a NumPy brute-force signed distance transform
    pts = _make_pts(R)
    occ_np = np.asarray(
        _body_is_inside(pts, jnp.float32(t), centers, radii)).reshape(R, R, C)
    ref = _ref_occ_to_sdf(occ_np)
    np.testing.assert_allclose(np.asarray(canvas), ref, rtol=1e-4, atol=1e-3)

    print("KERNEL_OK")
</pallas_src>

<mosaic_0001>
module attributes {stable_mosaic.version = 11 : i64} {
  func.func @_sdf_kernel(%arg0: i32, %arg1: i32, %arg2: memref<4x128xf32, #tpu.memory_space<vmem>>, %arg3: memref<256x4xf32, #tpu.memory_space<vmem>>, %arg4: memref<4x128xf32, #tpu.memory_space<vmem>>) attributes {dimension_semantics = [#tpu.dimension_semantics<parallel>, #tpu.dimension_semantics<arbitrary>], iteration_bounds = array<i64: 2, 1>, scalar_prefetch = 0 : i64, scratch_operands = 0 : i64, tpu.core_type = #tpu.core_type<tc>, window_params = [{transform_indices = @transform_0, window_bounds = array<i64: 4, 128>}, {transform_indices = @transform_1, window_bounds = array<i64: 256, 4>}, {transform_indices = @transform_2, window_bounds = array<i64: 4, 128>}]} {
    %c0_i32 = arith.constant 0 : i32
    %0 = arith.cmpi eq, %arg1, %c0_i32 : i32
    %1 = arith.extui %0 : i1 to i32
    %c0_i32_0 = arith.constant 0 : i32
    %2 = arith.cmpi ne, %1, %c0_i32_0 : i32
    scf.if %2 {
      %cst_116 = arith.constant 1.000000e+30 : f32
      %1359 = vector.broadcast %cst_116 : f32 to vector<4x128xf32>
      %c0_117 = arith.constant 0 : index
      %c0_118 = arith.constant 0 : index
      %1360 = vector.load %arg4[%c0_117, %c0_118] : memref<4x128xf32, #tpu.memory_space<vmem>>, vector<4x128xf32>
      tpu.vector_store %arg4[%c0_117, %c0_118], %1359 {strides = array<i32>} : memref<4x128xf32, #tpu.memory_space<vmem>>, vector<4x128xf32>,
    } else {
    }
    %3 = tpu.iota {dimensions = array<i32: 1>} : vector<1x128xi32>
    %c128_i32 = arith.constant 128 : i32
    %4 = arith.muli %arg0, %c128_i32 : i32
    %5 = vector.broadcast %4 : i32 to vector<1x128xi32>
    %6 = arith.addi %3, %5 : vector<1x128xi32>
    %7 = arith.sitofp %6 : vector<1x128xi32> to vector<1x128xf32>
    %cst = arith.constant 1.600000e+01 : f32
    %8 = vector.broadcast %cst : f32 to vector<1x128xf32>
    %9 = arith.divf %7, %8 : vector<1x128xf32>
    %10 = math.floor %9 : vector<1x128xf32>
    %cst_1 = arith.constant 1.600000e+01 : f32
    %11 = vector.broadcast %cst_1 : f32 to vector<1x128xf32>
    %12 = arith.mulf %10, %11 : vector<1x128xf32>
    %13 = arith.subf %7, %12 : vector<1x128xf32>
    %c0 = arith.constant 0 : index
    %c0_2 = arith.constant 0 : index
    %14 = vector.load %arg2[%c0, %c0_2] : memref<4x128xf32, #tpu.memory_space<vmem>>, vector<4x128xf32>
    %15 = vector.extract_strided_slice %14 {offsets = [0, 0], sizes = [1, 128], strides = [1, 1]} : vector<4x128xf32> to vector<1x128xf32>
    %16 = vector.shape_cast %15 : vector<1x128xf32> to vector<1x128xf32>
    %17 = vector.broadcast %16 : vector<1x128xf32> to vector<8x128xf32>
    %18 = vector.extract_strided_slice %14 {offsets = [1, 0], sizes = [1, 128], strides = [1, 1]} : vector<4x128xf32> to vector<1x128xf32>
    %19 = vector.shape_cast %18 : vector<1x128xf32> to vector<1x128xf32>
    %20 = vector.broadcast %19 : vector<1x128xf32> to vector<8x128xf32>
    %21 = vector.extract_strided_slice %14 {offsets = [2, 0], sizes = [1, 128], strides = [1, 1]} : vector<4x128xf32> to vector<1x128xf32>
    %22 = vector.shape_cast %21 : vector<1x128xf32> to vector<1x128xf32>
    %23 = vector.broadcast %22 : vector<1x128xf32> to vector<8x128xf32>
    %24 = vector.extract_strided_slice %14 {offsets = [3, 0], sizes = [1, 128], strides = [1, 1]} : vector<4x128xf32> to vector<1x128xf32>
    %25 = vector.shape_cast %24 : vector<1x128xf32> to vector<1x128xf32>
    %26 = vector.broadcast %25 : vector<1x128xf32> to vector<8x128xf32>
    %c256_i32 = arith.constant 256 : i32
    %27 = arith.muli %arg1, %c256_i32 : i32
    %cst_3 = arith.constant 1.000000e+30 : f32
    %28 = vector.broadcast %cst_3 : f32 to vector<8x128xf32>
    %cst_4 = arith.constant 1.000000e+30 : f32
    %29 = vector.broadcast %cst_4 : f32 to vector<8x128xf32>
    %cst_5 = arith.constant 1.000000e+30 : f32
    %30 = vector.broadcast %cst_5 : f32 to vector<8x128xf32>
    %cst_6 = arith.constant 1.000000e+30 : f32
    %31 = vector.broadcast %cst_6 : f32 to vector<8x128xf32>
    %32 = tpu.iota {dimensions = array<i32: 0>} : vector<8x1xi32>
    %c0_i32_7 = arith.constant 0 : i32
    %33 = arith.addi %27, %c0_i32_7 : i32
    %34 = vector.broadcast %33 : i32 to vector<8x1xi32>
    %35 = arith.addi %32, %34 : vector<8x1xi32>
    %36 = arith.sitofp %35 : vector<8x1xi32> to vector<8x1xf32>
    %cst_8 = arith.constant 1.600000e+01 : f32
    %37 = vector.broadcast %cst_8 : f32 to vector<8x1xf32>
    %38 = arith.divf %36, %37 : vector<8x1xf32>
    %39 = math.floor %38 : vector<8x1xf32>
    %cst_9 = arith.constant 1.600000e+01 : f32
    %40 = vector.broadcast %cst_9 : f32 to vector<8x1xf32>
    %41 = arith.mulf %39, %40 : vector<8x1xf32>
    %42 = arith.subf %36, %41 : vector<8x1xf32>
    %43 = vector.broadcast %39 : vector<8x1xf32> to vector<8x128xf32>
    %44 = vector.broadcast %10 : vector<1x128xf32> to vector<8x128xf32>
    %45 = arith.subf %43, %44 : vector<8x128xf32>
    %46 = vector.broadcast %42 : vector<8x1xf32> to vector<8x128xf32>
    %47 = vector.broadcast %13 : vector<1x128xf32> to vector<8x128xf32>
    %48 = arith.subf %46, %47 : vector<8x128xf32>
    %49 = arith.mulf %45, %45 : vector<8x128xf32>
    %50 = arith.mulf %48, %48 : vector<8x128xf32>
    %51 = arith.addf %49, %50 : vector<8x128xf32>
    %c0_10 = arith.constant 0 : index
    %c0_11 = arith.constant 0 : index
    %52 = vector.load %arg3[%c0_10, %c0_11] : memref<256x4xf32, #tpu.memory_space<vmem>>, vector<8x4xf32>
    %53 = vector.extract_strided_slice %52 {offsets = [0, 0], sizes = [8, 1], strides = [1, 1]} : vector<8x4xf32> to vector<8x1xf32>
    %54 = vector.broadcast %53 : vector<8x1xf32> to vector<8x128xf32>
    %55 = arith.cmpf one, %17, %54 : vector<8x128xf32>
    %56 = arith.minimumf %28, %51 : vector<8x128xf32>
    %57 = arith.select %55, %56, %28 : vector<8x128xi1>, vector<8x128xf32>
    %58 = vector.extract_strided_slice %52 {offsets = [0, 1], sizes = [8, 1], strides = [1, 1]} : vector<8x4xf32> to vector<8x1xf32>
    %59 = vector.broadcast %58 : vector<8x1xf32> to vector<8x128xf32>
    %60 = arith.cmpf one, %20, %59 : vector<8x128xf32>
    %61 = arith.minimumf %29, %51 : vector<8x128xf32>
    %62 = arith.select %60, %61, %29 : vector<8x128xi1>, vector<8x128xf32>
    %63 = vector.extract_strided_slice %52 {offsets = [0, 2], sizes = [8, 1], strides = [1, 1]} : vector<8x4xf32> to vector<8x1xf32>
    %64 = vector.broadcast %63 : vector<8x1xf32> to vector<8x128xf32>
    %65 = arith.cmpf one, %23, %64 : vector<8x128xf32>
    %66 = arith.minimumf %30, %51 : vector<8x128xf32>
    %67 = arith.select %65, %66, %30 : vector<8x128xi1>, vector<8x128xf32>
    %68 = vector.extract_strided_slice %52 {offsets = [0, 3], sizes = [8, 1], strides = [1, 1]} : vector<8x4xf32> to vector<8x1xf32>
    %69 = vector.broadcast %68 : vector<8x1xf32> to vector<8x128xf32>
    %70 = arith.cmpf one, %26, %69 : vector<8x128xf32>
    %71 = arith.minimumf %31, %51 : vector<8x128xf32>
    %72 = arith.select %70, %71, %31 : vector<8x128xi1>, vector<8x128xf32>
    %73 = tpu.iota {dimensions = array<i32: 0>} : vector<8x1xi32>
    %c8_i32 = arith.constant 8 : i32
    %74 = arith.addi %27, %c8_i32 : i32
    %75 = vector.broadcast %74 : i32 to vector<8x1xi32>
    %76 = arith.addi %73, %75 : vector<8x1xi32>
    %77 = arith.sitofp %76 : vector<8x1xi32> to vector<8x1xf32>
    %cst_12 = arith.constant 1.600000e+01 : f32
    %78 = vector.broadcast %cst_12 : f32 to vector<8x1xf32>
    %79 = arith.divf %77, %78 : vector<8x1xf32>
    %80 = math.floor %79 : vector<8x1xf32>
    %cst_13 = arith.constant 1.600000e+01 : f32
    %81 = vector.broadcast %cst_13 : f32 to vector<8x1xf32>
    %82 = arith.mulf %80, %81 : vector<8x1xf32>
    %83 = arith.subf %77, %82 : vector<8x1xf32>
    %84 = vector.broadcast %80 : vector<8x1xf32> to vector<8x128xf32>
    %85 = vector.broadcast %10 : vector<1x128xf32> to vector<8x128xf32>
    %86 = arith.subf %84, %85 : vector<8x128xf32>
    %87 = vector.broadcast %83 : vector<8x1xf32> to vector<8x128xf32>
    %88 = vector.broadcast %13 : vector<1x128xf32> to vector<8x128xf32>
    %89 = arith.subf %87, %88 : vector<8x128xf32>
    %90 = arith.mulf %86, %86 : vector<8x128xf32>
    %91 = arith.mulf %89, %89 : vector<8x128xf32>
    %92 = arith.addf %90, %91 : vector<8x128xf32>
    %c8 = arith.constant 8 : index
    %c0_14 = arith.constant 0 : index
    %93 = vector.load %arg3[%c8, %c0_14] : memref<256x4xf32, #tpu.memory_space<vmem>>, vector<8x4xf32>
    %94 = vector.extract_strided_slice %93 {offsets = [0, 0], sizes = [8, 1], strides = [1, 1]} : vector<8x4xf32> to vector<8x1xf32>
    %95 = vector.broadcast %94 : vector<8x1xf32> to vector<8x128xf32>
    %96 = arith.cmpf one, %17, %95 : vector<8x128xf32>
    %97 = arith.minimumf %57, %92 : vector<8x128xf32>
    %98 = arith.select %96, %97, %57 : vector<8x128xi1>, vector<8x128xf32>
    %99 = vector.extract_strided_slice %93 {offsets = [0, 1], sizes = [8, 1], strides = [1, 1]} : vector<8x4xf32> to vector<8x1xf32>
    %100 = vector.broadcast %99 : vector<8x1xf32> to vector<8x128xf32>
    %101 = arith.cmpf one, %20, %100 : vector<8x128xf32>
    %102 = arith.minimumf %62, %92 : vector<8x128xf32>
    %103 = arith.select %101, %102, %62 : vector<8x128xi1>, vector<8x128xf32>
    %104 = vector.extract_strided_slice %93 {offsets = [0, 2], sizes = [8, 1], strides = [1, 1]} : vector<8x4xf32> to vector<8x1xf32>
    %105 = vector.broadcast %104 : vector<8x1xf32> to vector<8x128xf32>
    %106 = arith.cmpf one, %23, %105 : vector<8x128xf32>
    %107 = arith.minimumf %67, %92 : vector<8x128xf32>
    %108 = arith.select %106, %107, %67 : vector<8x128xi1>, vector<8x128xf32>
    %109 = vector.extract_strided_slice %93 {offsets = [0, 3], sizes = [8, 1], strides = [1, 1]} : vector<8x4xf32> to vector<8x1xf32>
    %110 = vector.broadcast %109 : vector<8x1xf32> to vector<8x128xf32>
    %111 = arith.cmpf one, %26, %110 : vector<8x128xf32>
    %112 = arith.minimumf %72, %92 : vector<8x128xf32>
    %113 = arith.select %111, %112, %72 : vector<8x128xi1>, vector<8x128xf32>
    %114 = tpu.iota {dimensions = array<i32: 0>} : vector<8x1xi32>
    %c16_i32 = arith.constant 16 : i32
    %115 = arith.addi %27, %c16_i32 : i32
    %116 = vector.broadcast %115 : i32 to vector<8x1xi32>
    %117 = arith.addi %114, %116 : vector<8x1xi32>
    %118 = arith.sitofp %117 : vector<8x1xi32> to vector<8x1xf32>
    %cst_15 = arith.constant 1.600000e+01 : f32
    %119 = vector.broadcast %cst_15 : f32 to vector<8x1xf32>
    %120 = arith.divf %118, %119 : vector<8x1xf32>
    %121 = math.floor %120 : vector<8x1xf32>
    %cst_16 = arith.constant 1.600000e+01 : f32
    %122 = vector.broadcast %cst_16 : f32 to vector<8x1xf32>
    %123 = arith.mulf %121, %122 : vector<8x1xf32>
    %124 = arith.subf %118, %123 : vector<8x1xf32>
    %125 = vector.broadcast %121 : vector<8x1xf32> to vector<8x128xf32>
    %126 = vector.broadcast %10 : vector<1x128xf32> to vector<8x128xf32>
    %127 = arith.subf %125, %126 : vector<8x128xf32>
    %128 = vector.broadcast %124 : vector<8x1xf32> to vector<8x128xf32>
    %129 = vector.broadcast %13 : vector<1x128xf32> to vector<8x128xf32>
    %130 = arith.subf %128, %129 : vector<8x128xf32>
    %131 = arith.mulf %127, %127 : vector<8x128xf32>
    %132 = arith.mulf %130, %130 : vector<8x128xf32>
    %133 = arith.addf %131, %132 : vector<8x128xf32>
    %c16 = arith.constant 16 : index
    %c0_17 = arith.constant 0 : index
    %134 = vector.load %arg3[%c16, %c0_17] : memref<256x4xf32, #tpu.memory_space<vmem>>, vector<8x4xf32>
    %135 = vector.extract_strided_slice %134 {offsets = [0, 0], sizes = [8, 1], strides = [1, 1]} : vector<8x4xf32> to vector<8x1xf32>
    %136 = vector.broadcast %135 : vector<8x1xf32> to vector<8x128xf32>
    %137 = arith.cmpf one, %17, %136 : vector<8x128xf32>
    %138 = arith.minimumf %98, %133 : vector<8x128xf32>
    %139 = arith.select %137, %138, %98 : vector<8x128xi1>, vector<8x128xf32>
    %140 = vector.extract_strided_slice %134 {offsets = [0, 1], sizes = [8, 1], strides = [1, 1]} : vector<8x4xf32> to vector<8x1xf32>
    %141 = vector.broadcast %140 : vector<8x1xf32> to vector<8x128xf32>
    %142 = arith.cmpf one, %20, %141 : vector<8x128xf32>
    %143 = arith.minimumf %103, %133 : vector<8x128xf32>
    %144 = arith.select %142, %143, %103 : vector<8x128xi1>, vector<8x128xf32>
    %145 = vector.extract_strided_slice %134 {offsets = [0, 2], sizes = [8, 1], strides = [1, 1]} : vector<8x4xf32> to vector<8x1xf32>
    %146 = vector.broadcast %145 : vector<8x1xf32> to vector<8x128xf32>
    %147 = arith.cmpf one, %23, %146 : vector<8x128xf32>
    %148 = arith.minimumf %108, %133 : vector<8x128xf32>
    %149 = arith.select %147, %148, %108 : vector<8x128xi1>, vector<8x128xf32>
    %150 = vector.extract_strided_slice %134 {offsets = [0, 3], sizes = [8, 1], strides = [1, 1]} : vector<8x4xf32> to vector<8x1xf32>
    %151 = vector.broadcast %150 : vector<8x1xf32> to vector<8x128xf32>
    %152 = arith.cmpf one, %26, %151 : vector<8x128xf32>
    %153 = arith.minimumf %113, %133 : vector<8x128xf32>
    %154 = arith.select %152, %153, %113 : vector<8x128xi1>, vector<8x128xf32>
    %155 = tpu.iota {dimensions = array<i32: 0>} : vector<8x1xi32>
    %c24_i32 = arith.constant 24 : i32
    %156 = arith.addi %27, %c24_i32 : i32
    %157 = vector.broadcast %156 : i32 to vector<8x1xi32>
    %158 = arith.addi %155, %157 : vector<8x1xi32>
    %159 = arith.sitofp %158 : vector<8x1xi32> to vector<8x1xf32>
    %cst_18 = arith.constant 1.600000e+01 : f32
    %160 = vector.broadcast %cst_18 : f32 to vector<8x1xf32>
    %161 = arith.divf %159, %160 : vector<8x1xf32>
    %162 = math.floor %161 : vector<8x1xf32>
    %cst_19 = arith.constant 1.600000e+01 : f32
    %163 = vector.broadcast %cst_19 : f32 to vector<8x1xf32>
    %164 = arith.mulf %162, %163 : vector<8x1xf32>
    %165 = arith.subf %159, %164 : vector<8x1xf32>
    %166 = vector.broadcast %162 : vector<8x1xf32> to vector<8x128xf32>
    %167 = vector.broadcast %10 : vector<1x128xf32> to vector<8x128xf32>
    %168 = arith.subf %166, %167 : vector<8x128xf32>
    %169 = vector.broadcast %165 : vector<8x1xf32> to vector<8x128xf32>
    %170 = vector.broadcast %13 : vector<1x128xf32> to vector<8x128xf32>
    %171 = arith.subf %169, %170 : vector<8x128xf32>
    %172 = arith.mulf %168, %168 : vector<8x128xf32>
    %173 = arith.mulf %171, %171 : vector<8x128xf32>
    %174 = arith.addf %172, %173 : vector<8x128xf32>
    %c24 = arith.constant 24 : index
    %c0_20 = arith.constant 0 : index
    %175 = vector.load %arg3[%c24, %c0_20] : memref<256x4xf32, #tpu.memory_space<vmem>>, vector<8x4xf32>
    %176 = vector.extract_strided_slice %175 {offsets = [0, 0], sizes = [8, 1], strides = [1, 1]} : vector<8x4xf32> to vector<8x1xf32>
    %177 = vector.broadcast %176 : vector<8x1xf32> to vector<8x128xf32>
    %178 = arith.cmpf one, %17, %177 : vector<8x128xf32>
    %179 = arith.minimumf %139, %174 : vector<8x128xf32>
    %180 = arith.select %178, %179, %139 : vector<8x128xi1>, vector<8x128xf32>
    %181 = vector.extract_strided_slice %175 {offsets = [0, 1], sizes = [8, 1], strides = [1, 1]} : vector<8x4xf32> to vector<8x1xf32>
    %182 = vector.broadcast %181 : vector<8x1xf32> to vector<8x128xf32>
    %183 = arith.cmpf one, %20, %182 : vector<8x128xf32>
    %184 = arith.minimumf %144, %174 : vector<8x128xf32>
    %185 = arith.select %183, %184, %144 : vector<8x128xi1>, vector<8x128xf32>
    %186 = vector.extract_strided_slice %175 {offsets = [0, 2], sizes = [8, 1], strides = [1, 1]} : vector<8x4xf32> to vector<8x1xf32>
    %187 = vector.broadcast %186 : vector<8x1xf32> to vector<8x128xf32>
    %188 = arith.cmpf one, %23, %187 : vector<8x128xf32>
    %189 = arith.minimumf %149, %174 : vector<8x128xf32>
    %190 = arith.select %188, %189, %149 : vector<8x128xi1>, vector<8x128xf32>
    %191 = vector.extract_strided_slice %175 {offsets = [0, 3], sizes = [8, 1], strides = [1, 1]} : vector<8x4xf32> to vector<8x1xf32>
    %192 = vector.broadcast %191 : vector<8x1xf32> to vector<8x128xf32>
    %193 = arith.cmpf one, %26, %192 : vector<8x128xf32>
    %194 = arith.minimumf %154, %174 : vector<8x128xf32>
    %195 = arith.select %193, %194, %154 : vector<8x128xi1>, vector<8x128xf32>
    %196 = tpu.iota {dimensions = array<i32: 0>} : vector<8x1xi32>
    %c32_i32 = arith.constant 32 : i32
    %197 = arith.addi %27, %c32_i32 : i32
    %198 = vector.broadcast %197 : i32 to vector<8x1xi32>
    %199 = arith.addi %196, %198 : vector<8x1xi32>
    %200 = arith.sitofp %199 : vector<8x1xi32> to vector<8x1xf32>
    %cst_21 = arith.constant 1.600000e+01 : f32
    %201 = vector.broadcast %cst_21 : f32 to vector<8x1xf32>
    %202 = arith.divf %200, %201 : vector<8x1xf32>
    %203 = math.floor %202 : vector<8x1xf32>
    %cst_22 = arith.constant 1.600000e+01 : f32
    %204 = vector.broadcast %cst_22 : f32 to vector<8x1xf32>
    %205 = arith.mulf %203, %204 : vector<8x1xf32>
    %206 = arith.subf %200, %205 : vector<8x1xf32>
    %207 = vector.broadcast %203 : vector<8x1xf32> to vector<8x128xf32>
    %208 = vector.broadcast %10 : vector<1x128xf32> to vector<8x128xf32>
    %209 = arith.subf %207, %208 : vector<8x128xf32>
    %210 = vector.broadcast %206 : vector<8x1xf32> to vector<8x128xf32>
    %211 = vector.broadcast %13 : vector<1x128xf32> to vector<8x128xf32>
    %212 = arith.subf %210, %211 : vector<8x128xf32>
    %213 = arith.mulf %209, %209 : vector<8x128xf32>
    %214 = arith.mulf %212, %212 : vector<8x128xf32>
    %215 = arith.addf %213, %214 : vector<8x128xf32>
    %c32 = arith.constant 32 : index
    %c0_23 = arith.constant 0 : index
    %216 = vector.load %arg3[%c32, %c0_23] : memref<256x4xf32, #tpu.memory_space<vmem>>, vector<8x4xf32>
    %217 = vector.extract_strided_slice %216 {offsets = [0, 0], sizes = [8, 1], strides = [1, 1]} : vector<8x4xf32> to vector<8x1xf32>
    %218 = vector.broadcast %217 : vector<8x1xf32> to vector<8x128xf32>
    %219 = arith.cmpf one, %17, %218 : vector<8x128xf32>
    %220 = arith.minimumf %180, %215 : vector<8x128xf32>
    %221 = arith.select %219, %220, %180 : vector<8x128xi1>, vector<8x128xf32>
    %222 = vector.extract_strided_slice %216 {offsets = [0, 1], sizes = [8, 1], strides = [1, 1]} : vector<8x4xf32> to vector<8x1xf32>
    %223 = vector.broadcast %222 : vector<8x1xf32> to vector<8x128xf32>
    %224 = arith.cmpf one, %20, %223 : vector<8x128xf32>
    %225 = arith.minimumf %185, %215 : vector<8x128xf32>
    %226 = arith.select %224, %225, %185 : vector<8x128xi1>, vector<8x128xf32>
    %227 = vector.extract_strided_slice %216 {offsets = [0, 2], sizes = [8, 1], strides = [1, 1]} : vector<8x4xf32> to vector<8x1xf32>
    %228 = vector.broadcast %227 : vector<8x1xf32> to vector<8x128xf32>
    %229 = arith.cmpf one, %23, %228 : vector<8x128xf32>
    %230 = arith.minimumf %190, %215 : vector<8x128xf32>
    %231 = arith.select %229, %230, %190 : vector<8x128xi1>, vector<8x128xf32>
    %232 = vector.extract_strided_slice %216 {offsets = [0, 3], sizes = [8, 1], strides = [1, 1]} : vector<8x4xf32> to vector<8x1xf32>
    %233 = vector.broadcast %232 : vector<8x1xf32> to vector<8x128xf32>
    %234 = arith.cmpf one, %26, %233 : vector<8x128xf32>
    %235 = arith.minimumf %195, %215 : vector<8x128xf32>
    %236 = arith.select %234, %235, %195 : vector<8x128xi1>, vector<8x128xf32>
    %237 = tpu.iota {dimensions = array<i32: 0>} : vector<8x1xi32>
    %c40_i32 = arith.constant 40 : i32
    %238 = arith.addi %27, %c40_i32 : i32
    %239 = vector.broadcast %238 : i32 to vector<8x1xi32>
    %240 = arith.addi %237, %239 : vector<8x1xi32>
    %241 = arith.sitofp %240 : vector<8x1xi32> to vector<8x1xf32>
    %cst_24 = arith.constant 1.600000e+01 : f32
    %242 = vector.broadcast %cst_24 : f32 to vector<8x1xf32>
    %243 = arith.divf %241, %242 : vector<8x1xf32>
    %244 = math.floor %243 : vector<8x1xf32>
    %cst_25 = arith.constant 1.600000e+01 : f32
    %245 = vector.broadcast %cst_25 : f32 to vector<8x1xf32>
    %246 = arith.mulf %244, %245 : vector<8x1xf32>
    %247 = arith.subf %241, %246 : vector<8x1xf32>
    %248 = vector.broadcast %244 : vector<8x1xf32> to vector<8x128xf32>
    %249 = vector.broadcast %10 : vector<1x128xf32> to vector<8x128xf32>
    %250 = arith.subf %248, %249 : vector<8x128xf32>
    %251 = vector.broadcast %247 : vector<8x1xf32> to vector<8x128xf32>
    %252 = vector.broadcast %13 : vector<1x128xf32> to vector<8x128xf32>
    %253 = arith.subf %251, %252 : vector<8x128xf32>
    %254 = arith.mulf %250, %250 : vector<8x128xf32>
    %255 = arith.mulf %253, %253 : vector<8x128xf32>
    %256 = arith.addf %254, %255 : vector<8x128xf32>
    %c40 = arith.constant 40 : index
    %c0_26 = arith.constant 0 : index
    %257 = vector.load %arg3[%c40, %c0_26] : memref<256x4xf32, #tpu.memory_space<vmem>>, vector<8x4xf32>
    %258 = vector.extract_strided_slice %257 {offsets = [0, 0], sizes = [8, 1], strides = [1, 1]} : vector<8x4xf32> to vector<8x1xf32>
    %259 = vector.broadcast %258 : vector<8x1xf32> to vector<8x128xf32>
    %260 = arith.cmpf one, %17, %259 : vector<8x128xf32>
    %261 = arith.minimumf %221, %256 : vector<8x128xf32>
    %262 = arith.select %260, %261, %221 : vector<8x128xi1>, vector<8x128xf32>
    %263 = vector.extract_strided_slice %257 {offsets = [0, 1], sizes = [8, 1], strides = [1, 1]} : vector<8x4xf32> to vector<8x1xf32>
    %264 = vector.broadcast %263 : vector<8x1xf32> to vector<8x128xf32>
    %265 = arith.cmpf one, %20, %264 : vector<8x128xf32>
    %266 = arith.minimumf %226, %256 : vector<8x128xf32>
    %267 = arith.select %265, %266, %226 : vector<8x128xi1>, vector<8x128xf32>
    %268 = vector.extract_strided_slice %257 {offsets = [0, 2], sizes = [8, 1], strides = [1, 1]} : vector<8x4xf32> to vector<8x1xf32>
    %269 = vector.broadcast %268 : vector<8x1xf32> to vector<8x128xf32>
    %270 = arith.cmpf one, %23, %269 : vector<8x128xf32>
    %271 = arith.minimumf %231, %256 : vector<8x128xf32>
    %272 = arith.select %270, %271, %231 : vector<8x128xi1>, vector<8x128xf32>
    %273 = vector.extract_strided_slice %257 {offsets = [0, 3], sizes = [8, 1], strides = [1, 1]} : vector<8x4xf32> to vector<8x1xf32>
    %274 = vector.broadcast %273 : vector<8x1xf32> to vector<8x128xf32>
    %275 = arith.cmpf one, %26, %274 : vector<8x128xf32>
    %276 = arith.minimumf %236, %256 : vector<8x128xf32>
    %277 = arith.select %275, %276, %236 : vector<8x128xi1>, vector<8x128xf32>
    %278 = tpu.iota {dimensions = array<i32: 0>} : vector<8x1xi32>
    %c48_i32 = arith.constant 48 : i32
    %279 = arith.addi %27, %c48_i32 : i32
    %280 = vector.broadcast %279 : i32 to vector<8x1xi32>
    %281 = arith.addi %278, %280 : vector<8x1xi32>
    %282 = arith.sitofp %281 : vector<8x1xi32> to vector<8x1xf32>
    %cst_27 = arith.constant 1.600000e+01 : f32
    %283 = vector.broadcast %cst_27 : f32 to vector<8x1xf32>
    %284 = arith.divf %282, %283 : vector<8x1xf32>
    %285 = math.floor %284 : vector<8x1xf32>
    %cst_28 = arith.constant 1.600000e+01 : f32
    %286 = vector.broadcast %cst_28 : f32 to vector<8x1xf32>
    %287 = arith.mulf %285, %286 : vector<8x1xf32>
    %288 = arith.subf %282, %287 : vector<8x1xf32>
    %289 = vector.broadcast %285 : vector<8x1xf32> to vector<8x128xf32>
    %290 = vector.broadcast %10 : vector<1x128xf32> to vector<8x128xf32>
    %291 = arith.subf %289, %290 : vector<8x128xf32>
    %292 = vector.broadcast %288 : vector<8x1xf32> to vector<8x128xf32>
    %293 = vector.broadcast %13 : vector<1x128xf32> to vector<8x128xf32>
    %294 = arith.subf %292, %293 : vector<8x128xf32>
    %295 = arith.mulf %291, %291 : vector<8x128xf32>
    %296 = arith.mulf %294, %294 : vector<8x128xf32>
    %297 = arith.addf %295, %296 : vector<8x128xf32>
    %c48 = arith.constant 48 : index
    %c0_29 = arith.constant 0 : index
    %298 = vector.load %arg3[%c48, %c0_29] : memref<256x4xf32, #tpu.memory_space<vmem>>, vector<8x4xf32>
    %299 = vector.extract_strided_slice %298 {offsets = [0, 0], sizes = [8, 1], strides = [1, 1]} : vector<8x4xf32> to vector<8x1xf32>
    %300 = vector.broadcast %299 : vector<8x1xf32> to vector<8x128xf32>
    %301 = arith.cmpf one, %17, %300 : vector<8x128xf32>
    %302 = arith.minimumf %262, %297 : vector<8x128xf32>
    %303 = arith.select %301, %302, %262 : vector<8x128xi1>, vector<8x128xf32>
    %304 = vector.extract_strided_slice %298 {offsets = [0, 1], sizes = [8, 1], strides = [1, 1]} : vector<8x4xf32> to vector<8x1xf32>
    %305 = vector.broadcast %304 : vector<8x1xf32> to vector<8x128xf32>
    %306 = arith.cmpf one, %20, %305 : vector<8x128xf32>
    %307 = arith.minimumf %267, %297 : vector<8x128xf32>
    %308 = arith.select %306, %307, %267 : vector<8x128xi1>, vector<8x128xf32>
    %309 = vector.extract_strided_slice %298 {offsets = [0, 2], sizes = [8, 1], strides = [1, 1]} : vector<8x4xf32> to vector<8x1xf32>
    %310 = vector.broadcast %309 : vector<8x1xf32> to vector<8x128xf32>
    %311 = arith.cmpf one, %23, %310 : vector<8x128xf32>
    %312 = arith.minimumf %272, %297 : vector<8x128xf32>
    %313 = arith.select %311, %312, %272 : vector<8x128xi1>, vector<8x128xf32>
    %314 = vector.extract_strided_slice %298 {offsets = [0, 3], sizes = [8, 1], strides = [1, 1]} : vector<8x4xf32> to vector<8x1xf32>
    %315 = vector.broadcast %314 : vector<8x1xf32> to vector<8x128xf32>
    %316 = arith.cmpf one, %26, %315 : vector<8x128xf32>
    %317 = arith.minimumf %277, %297 : vector<8x128xf32>
    %318 = arith.select %316, %317, %277 : vector<8x128xi1>, vector<8x128xf32>
    %319 = tpu.iota {dimensions = array<i32: 0>} : vector<8x1xi32>
    %c56_i32 = arith.constant 56 : i32
    %320 = arith.addi %27, %c56_i32 : i32
    %321 = vector.broadcast %320 : i32 to vector<8x1xi32>
    %322 = arith.addi %319, %321 : vector<8x1xi32>
    %323 = arith.sitofp %322 : vector<8x1xi32> to vector<8x1xf32>
    %cst_30 = arith.constant 1.600000e+01 : f32
    %324 = vector.broadcast %cst_30 : f32 to vector<8x1xf32>
    %325 = arith.divf %323, %324 : vector<8x1xf32>
    %326 = math.floor %325 : vector<8x1xf32>
    %cst_31 = arith.constant 1.600000e+01 : f32
    %327 = vector.broadcast %cst_31 : f32 to vector<8x1xf32>
    %328 = arith.mulf %326, %327 : vector<8x1xf32>
    %329 = arith.subf %323, %328 : vector<8x1xf32>
    %330 = vector.broadcast %326 : vector<8x1xf32> to vector<8x128xf32>
    %331 = vector.broadcast %10 : vector<1x128xf32> to vector<8x128xf32>
    %332 = arith.subf %330, %331 : vector<8x128xf32>
    %333 = vector.broadcast %329 : vector<8x1xf32> to vector<8x128xf32>
    %334 = vector.broadcast %13 : vector<1x128xf32> to vector<8x128xf32>
    %335 = arith.subf %333, %334 : vector<8x128xf32>
    %336 = arith.mulf %332, %332 : vector<8x128xf32>
    %337 = arith.mulf %335, %335 : vector<8x128xf32>
    %338 = arith.addf %336, %337 : vector<8x128xf32>
    %c56 = arith.constant 56 : index
    %c0_32 = arith.constant 0 : index
    %339 = vector.load %arg3[%c56, %c0_32] : memref<256x4xf32, #tpu.memory_space<vmem>>, vector<8x4xf32>
    %340 = vector.extract_strided_slice %339 {offsets = [0, 0], sizes = [8, 1], strides = [1, 1]} : vector<8x4xf32> to vector<8x1xf32>
    %341 = vector.broadcast %340 : vector<8x1xf32> to vector<8x128xf32>
    %342 = arith.cmpf one, %17, %341 : vector<8x128xf32>
    %343 = arith.minimumf %303, %338 : vector<8x128xf32>
    %344 = arith.select %342, %343, %303 : vector<8x128xi1>, vector<8x128xf32>
    %345 = vector.extract_strided_slice %339 {offsets = [0, 1], sizes = [8, 1], strides = [1, 1]} : vector<8x4xf32> to vector<8x1xf32>
    %346 = vector.broadcast %345 : vector<8x1xf32> to vector<8x128xf32>
    %347 = arith.cmpf one, %20, %346 : vector<8x128xf32>
    %348 = arith.minimumf %308, %338 : vector<8x128xf32>
    %349 = arith.select %347, %348, %308 : vector<8x128xi1>, vector<8x128xf32>
    %350 = vector.extract_strided_slice %339 {offsets = [0, 2], sizes = [8, 1], strides = [1, 1]} : vector<8x4xf32> to vector<8x1xf32>
    %351 = vector.broadcast %350 : vector<8x1xf32> to vector<8x128xf32>
    %352 = arith.cmpf one, %23, %351 : vector<8x128xf32>
    %353 = arith.minimumf %313, %338 : vector<8x128xf32>
    %354 = arith.select %352, %353, %313 : vector<8x128xi1>, vector<8x128xf32>
    %355 = vector.extract_strided_slice %339 {offsets = [0, 3], sizes = [8, 1], strides = [1, 1]} : vector<8x4xf32> to vector<8x1xf32>
    %356 = vector.broadcast %355 : vector<8x1xf32> to vector<8x128xf32>
    %357 = arith.cmpf one, %26, %356 : vector<8x128xf32>
    %358 = arith.minimumf %318, %338 : vector<8x128xf32>
    %359 = arith.select %357, %358, %318 : vector<8x128xi1>, vector<8x128xf32>
    %360 = tpu.iota {dimensions = array<i32: 0>} : vector<8x1xi32>
    %c64_i32 = arith.constant 64 : i32
    %361 = arith.addi %27, %c64_i32 : i32
    %362 = vector.broadcast %361 : i32 to vector<8x1xi32>
    %363 = arith.addi %360, %362 : vector<8x1xi32>
    %364 = arith.sitofp %363 : vector<8x1xi32> to vector<8x1xf32>
    %cst_33 = arith.constant 1.600000e+01 : f32
    %365 = vector.broadcast %cst_33 : f32 to vector<8x1xf32>
    %366 = arith.divf %364, %365 : vector<8x1xf32>
    %367 = math.floor %366 : vector<8x1xf32>
    %cst_34 = arith.constant 1.600000e+01 : f32
    %368 = vector.broadcast %cst_34 : f32 to vector<8x1xf32>
    %369 = arith.mulf %367, %368 : vector<8x1xf32>
    %370 = arith.subf %364, %369 : vector<8x1xf32>
    %371 = vector.broadcast %367 : vector<8x1xf32> to vector<8x128xf32>
    %372 = vector.broadcast %10 : vector<1x128xf32> to vector<8x128xf32>
    %373 = arith.subf %371, %372 : vector<8x128xf32>
    %374 = vector.broadcast %370 : vector<8x1xf32> to vector<8x128xf32>
    %375 = vector.broadcast %13 : vector<1x128xf32> to vector<8x128xf32>
    %376 = arith.subf %374, %375 : vector<8x128xf32>
    %377 = arith.mulf %373, %373 : vector<8x128xf32>
    %378 = arith.mulf %376, %376 : vector<8x128xf32>
    %379 = arith.addf %377, %378 : vector<8x128xf32>
    %c64 = arith.constant 64 : index
    %c0_35 = arith.constant 0 : index
    %380 = vector.load %arg3[%c64, %c0_35] : memref<256x4xf32, #tpu.memory_space<vmem>>, vector<8x4xf32>
    %381 = vector.extract_strided_slice %380 {offsets = [0, 0], sizes = [8, 1], strides = [1, 1]} : vector<8x4xf32> to vector<8x1xf32>
    %382 = vector.broadcast %381 : vector<8x1xf32> to vector<8x128xf32>
    %383 = arith.cmpf one, %17, %382 : vector<8x128xf32>
    %384 = arith.minimumf %344, %379 : vector<8x128xf32>
    %385 = arith.select %383, %384, %344 : vector<8x128xi1>, vector<8x128xf32>
    %386 = vector.extract_strided_slice %380 {offsets = [0, 1], sizes = [8, 1], strides = [1, 1]} : vector<8x4xf32> to vector<8x1xf32>
    %387 = vector.broadcast %386 : vector<8x1xf32> to vector<8x128xf32>
    %388 = arith.cmpf one, %20, %387 : vector<8x128xf32>
    %389 = arith.minimumf %349, %379 : vector<8x128xf32>
    %390 = arith.select %388, %389, %349 : vector<8x128xi1>, vector<8x128xf32>
    %391 = vector.extract_strided_slice %380 {offsets = [0, 2], sizes = [8, 1], strides = [1, 1]} : vector<8x4xf32> to vector<8x1xf32>
    %392 = vector.broadcast %391 : vector<8x1xf32> to vector<8x128xf32>
    %393 = arith.cmpf one, %23, %392 : vector<8x128xf32>
    %394 = arith.minimumf %354, %379 : vector<8x128xf32>
    %395 = arith.select %393, %394, %354 : vector<8x128xi1>, vector<8x128xf32>
    %396 = vector.extract_strided_slice %380 {offsets = [0, 3], sizes = [8, 1], strides = [1, 1]} : vector<8x4xf32> to vector<8x1xf32>
    %397 = vector.broadcast %396 : vector<8x1xf32> to vector<8x128xf32>
    %398 = arith.cmpf one, %26, %397 : vector<8x128xf32>
    %399 = arith.minimumf %359, %379 : vector<8x128xf32>
    %400 = arith.select %398, %399, %359 : vector<8x128xi1>, vector<8x128xf32>
    %401 = tpu.iota {dimensions = array<i32: 0>} : vector<8x1xi32>
    %c72_i32 = arith.constant 72 : i32
    %402 = arith.addi %27, %c72_i32 : i32
    %403 = vector.broadcast %402 : i32 to vector<8x1xi32>
    %404 = arith.addi %401, %403 : vector<8x1xi32>
    %405 = arith.sitofp %404 : vector<8x1xi32> to vector<8x1xf32>
    %cst_36 = arith.constant 1.600000e+01 : f32
    %406 = vector.broadcast %cst_36 : f32 to vector<8x1xf32>
    %407 = arith.divf %405, %406 : vector<8x1xf32>
    %408 = math.floor %407 : vector<8x1xf32>
    %cst_37 = arith.constant 1.600000e+01 : f32
    %409 = vector.broadcast %cst_37 : f32 to vector<8x1xf32>
    %410 = arith.mulf %408, %409 : vector<8x1xf32>
    %411 = arith.subf %405, %410 : vector<8x1xf32>
    %412 = vector.broadcast %408 : vector<8x1xf32> to vector<8x128xf32>
    %413 = vector.broadcast %10 : vector<1x128xf32> to vector<8x128xf32>
    %414 = arith.subf %412, %413 : vector<8x128xf32>
    %415 = vector.broadcast %411 : vector<8x1xf32> to vector<8x128xf32>
    %416 = vector.broadcast %13 : vector<1x128xf32> to vector<8x128xf32>
    %417 = arith.subf %415, %416 : vector<8x128xf32>
    %418 = arith.mulf %414, %414 : vector<8x128xf32>
    %419 = arith.mulf %417, %417 : vector<8x128xf32>
    %420 = arith.addf %418, %419 : vector<8x128xf32>
    %c72 = arith.constant 72 : index
    %c0_38 = arith.constant 0 : index
    %421 = vector.load %arg3[%c72, %c0_38] : memref<256x4xf32, #tpu.memory_space<vmem>>, vector<8x4xf32>
    %422 = vector.extract_strided_slice %421 {offsets = [0, 0], sizes = [8, 1], strides = [1, 1]} : vector<8x4xf32> to vector<8x1xf32>
    %423 = vector.broadcast %422 : vector<8x1xf32> to vector<8x128xf32>
    %424 = arith.cmpf one, %17, %423 : vector<8x128xf32>
    %425 = arith.minimumf %385, %420 : vector<8x128xf32>
    %426 = arith.select %424, %425, %385 : vector<8x128xi1>, vector<8x128xf32>
    %427 = vector.extract_strided_slice %421 {offsets = [0, 1], sizes = [8, 1], strides = [1, 1]} : vector<8x4xf32> to vector<8x1xf32>
    %428 = vector.broadcast %427 : vector<8x1xf32> to vector<8x128xf32>
    %429 = arith.cmpf one, %20, %428 : vector<8x128xf32>
    %430 = arith.minimumf %390, %420 : vector<8x128xf32>
    %431 = arith.select %429, %430, %390 : vector<8x128xi1>, vector<8x128xf32>
    %432 = vector.extract_strided_slice %421 {offsets = [0, 2], sizes = [8, 1], strides = [1, 1]} : vector<8x4xf32> to vector<8x1xf32>
    %433 = vector.broadcast %432 : vector<8x1xf32> to vector<8x128xf32>
    %434 = arith.cmpf one, %23, %433 : vector<8x128xf32>
    %435 = arith.minimumf %395, %420 : vector<8x128xf32>
    %436 = arith.select %434, %435, %395 : vector<8x128xi1>, vector<8x128xf32>
    %437 = vector.extract_strided_slice %421 {offsets = [0, 3], sizes = [8, 1], strides = [1, 1]} : vector<8x4xf32> to vector<8x1xf32>
    %438 = vector.broadcast %437 : vector<8x1xf32> to vector<8x128xf32>
    %439 = arith.cmpf one, %26, %438 : vector<8x128xf32>
    %440 = arith.minimumf %400, %420 : vector<8x128xf32>
    %441 = arith.select %439, %440, %400 : vector<8x128xi1>, vector<8x128xf32>
    %442 = tpu.iota {dimensions = array<i32: 0>} : vector<8x1xi32>
    %c80_i32 = arith.constant 80 : i32
    %443 = arith.addi %27, %c80_i32 : i32
    %444 = vector.broadcast %443 : i32 to vector<8x1xi32>
    %445 = arith.addi %442, %444 : vector<8x1xi32>
    %446 = arith.sitofp %445 : vector<8x1xi32> to vector<8x1xf32>
    %cst_39 = arith.constant 1.600000e+01 : f32
    %447 = vector.broadcast %cst_39 : f32 to vector<8x1xf32>
    %448 = arith.divf %446, %447 : vector<8x1xf32>
    %449 = math.floor %448 : vector<8x1xf32>
    %cst_40 = arith.constant 1.600000e+01 : f32
    %450 = vector.broadcast %cst_40 : f32 to vector<8x1xf32>
    %451 = arith.mulf %449, %450 : vector<8x1xf32>
    %452 = arith.subf %446, %451 : vector<8x1xf32>
    %453 = vector.broadcast %449 : vector<8x1xf32> to vector<8x128xf32>
    %454 = vector.broadcast %10 : vector<1x128xf32> to vector<8x128xf32>
    %455 = arith.subf %453, %454 : vector<8x128xf32>
    %456 = vector.broadcast %452 : vector<8x1xf32> to vector<8x128xf32>
    %457 = vector.broadcast %13 : vector<1x128xf32> to vector<8x128xf32>
    %458 = arith.subf %456, %457 : vector<8x128xf32>
    %459 = arith.mulf %455, %455 : vector<8x128xf32>
    %460 = arith.mulf %458, %458 : vector<8x128xf32>
    %461 = arith.addf %459, %460 : vector<8x128xf32>
    %c80 = arith.constant 80 : index
    %c0_41 = arith.constant 0 : index
    %462 = vector.load %arg3[%c80, %c0_41] : memref<256x4xf32, #tpu.memory_space<vmem>>, vector<8x4xf32>
    %463 = vector.extract_strided_slice %462 {offsets = [0, 0], sizes = [8, 1], strides = [1, 1]} : vector<8x4xf32> to vector<8x1xf32>
    %464 = vector.broadcast %463 : vector<8x1xf32> to vector<8x128xf32>
    %465 = arith.cmpf one, %17, %464 : vector<8x128xf32>
    %466 = arith.minimumf %426, %461 : vector<8x128xf32>
    %467 = arith.select %465, %466, %426 : vector<8x128xi1>, vector<8x128xf32>
    %468 = vector.extract_strided_slice %462 {offsets = [0, 1], sizes = [8, 1], strides = [1, 1]} : vector<8x4xf32> to vector<8x1xf32>
    %469 = vector.broadcast %468 : vector<8x1xf32> to vector<8x128xf32>
    %470 = arith.cmpf one, %20, %469 : vector<8x128xf32>
    %471 = arith.minimumf %431, %461 : vector<8x128xf32>
    %472 = arith.select %470, %471, %431 : vector<8x128xi1>, vector<8x128xf32>
    %473 = vector.extract_strided_slice %462 {offsets = [0, 2], sizes = [8, 1], strides = [1, 1]} : vector<8x4xf32> to vector<8x1xf32>
    %474 = vector.broadcast %473 : vector<8x1xf32> to vector<8x128xf32>
    %475 = arith.cmpf one, %23, %474 : vector<8x128xf32>
    %476 = arith.minimumf %436, %461 : vector<8x128xf32>
    %477 = arith.select %475, %476, %436 : vector<8x128xi1>, vector<8x128xf32>
    %478 = vector.extract_strided_slice %462 {offsets = [0, 3], sizes = [8, 1], strides = [1, 1]} : vector<8x4xf32> to vector<8x1xf32>
    %479 = vector.broadcast %478 : vector<8x1xf32> to vector<8x128xf32>
    %480 = arith.cmpf one, %26, %479 : vector<8x128xf32>
    %481 = arith.minimumf %441, %461 : vector<8x128xf32>
    %482 = arith.select %480, %481, %441 : vector<8x128xi1>, vector<8x128xf32>
    %483 = tpu.iota {dimensions = array<i32: 0>} : vector<8x1xi32>
    %c88_i32 = arith.constant 88 : i32
    %484 = arith.addi %27, %c88_i32 : i32
    %485 = vector.broadcast %484 : i32 to vector<8x1xi32>
    %486 = arith.addi %483, %485 : vector<8x1xi32>
    %487 = arith.sitofp %486 : vector<8x1xi32> to vector<8x1xf32>
    %cst_42 = arith.constant 1.600000e+01 : f32
    %488 = vector.broadcast %cst_42 : f32 to vector<8x1xf32>
    %489 = arith.divf %487, %488 : vector<8x1xf32>
    %490 = math.floor %489 : vector<8x1xf32>
    %cst_43 = arith.constant 1.600000e+01 : f32
    %491 = vector.broadcast %cst_43 : f32 to vector<8x1xf32>
    %492 = arith.mulf %490, %491 : vector<8x1xf32>
    %493 = arith.subf %487, %492 : vector<8x1xf32>
    %494 = vector.broadcast %490 : vector<8x1xf32> to vector<8x128xf32>
    %495 = vector.broadcast %10 : vector<1x128xf32> to vector<8x128xf32>
    %496 = arith.subf %494, %495 : vector<8x128xf32>
    %497 = vector.broadcast %493 : vector<8x1xf32> to vector<8x128xf32>
    %498 = vector.broadcast %13 : vector<1x128xf32> to vector<8x128xf32>
    %499 = arith.subf %497, %498 : vector<8x128xf32>
    %500 = arith.mulf %496, %496 : vector<8x128xf32>
    %501 = arith.mulf %499, %499 : vector<8x128xf32>
    %502 = arith.addf %500, %501 : vector<8x128xf32>
    %c88 = arith.constant 88 : index
    %c0_44 = arith.constant 0 : index
    %503 = vector.load %arg3[%c88, %c0_44] : memref<256x4xf32, #tpu.memory_space<vmem>>, vector<8x4xf32>
    %504 = vector.extract_strided_slice %503 {offsets = [0, 0], sizes = [8, 1], strides = [1, 1]} : vector<8x4xf32> to vector<8x1xf32>
    %505 = vector.broadcast %504 : vector<8x1xf32> to vector<8x128xf32>
    %506 = arith.cmpf one, %17, %505 : vector<8x128xf32>
    %507 = arith.minimumf %467, %502 : vector<8x128xf32>
    %508 = arith.select %506, %507, %467 : vector<8x128xi1>, vector<8x128xf32>
    %509 = vector.extract_strided_slice %503 {offsets = [0, 1], sizes = [8, 1], strides = [1, 1]} : vector<8x4xf32> to vector<8x1xf32>
    %510 = vector.broadcast %509 : vector<8x1xf32> to vector<8x128xf32>
    %511 = arith.cmpf one, %20, %510 : vector<8x128xf32>
    %512 = arith.minimumf %472, %502 : vector<8x128xf32>
    %513 = arith.select %511, %512, %472 : vector<8x128xi1>, vector<8x128xf32>
    %514 = vector.extract_strided_slice %503 {offsets = [0, 2], sizes = [8, 1], strides = [1, 1]} : vector<8x4xf32> to vector<8x1xf32>
    %515 = vector.broadcast %514 : vector<8x1xf32> to vector<8x128xf32>
    %516 = arith.cmpf one, %23, %515 : vector<8x128xf32>
    %517 = arith.minimumf %477, %502 : vector<8x128xf32>
    %518 = arith.select %516, %517, %477 : vector<8x128xi1>, vector<8x128xf32>
    %519 = vector.extract_strided_slice %503 {offsets = [0, 3], sizes = [8, 1], strides = [1, 1]} : vector<8x4xf32> to vector<8x1xf32>
    %520 = vector.broadcast %519 : vector<8x1xf32> to vector<8x128xf32>
    %521 = arith.cmpf one, %26, %520 : vector<8x128xf32>
    %522 = arith.minimumf %482, %502 : vector<8x128xf32>
    %523 = arith.select %521, %522, %482 : vector<8x128xi1>, vector<8x128xf32>
    %524 = tpu.iota {dimensions = array<i32: 0>} : vector<8x1xi32>
    %c96_i32 = arith.constant 96 : i32
    %525 = arith.addi %27, %c96_i32 : i32
    %526 = vector.broadcast %525 : i32 to vector<8x1xi32>
    %527 = arith.addi %524, %526 : vector<8x1xi32>
    %528 = arith.sitofp %527 : vector<8x1xi32> to vector<8x1xf32>
    %cst_45 = arith.constant 1.600000e+01 : f32
    %529 = vector.broadcast %cst_45 : f32 to vector<8x1xf32>
    %530 = arith.divf %528, %529 : vector<8x1xf32>
    %531 = math.floor %530 : vector<8x1xf32>
    %cst_46 = arith.constant 1.600000e+01 : f32
    %532 = vector.broadcast %cst_46 : f32 to vector<8x1xf32>
    %533 = arith.mulf %531, %532 : vector<8x1xf32>
    %534 = arith.subf %528, %533 : vector<8x1xf32>
    %535 = vector.broadcast %531 : vector<8x1xf32> to vector<8x128xf32>
    %536 = vector.broadcast %10 : vector<1x128xf32> to vector<8x128xf32>
    %537 = arith.subf %535, %536 : vector<8x128xf32>
    %538 = vector.broadcast %534 : vector<8x1xf32> to vector<8x128xf32>
    %539 = vector.broadcast %13 : vector<1x128xf32> to vector<8x128xf32>
    %540 = arith.subf %538, %539 : vector<8x128xf32>
    %541 = arith.mulf %537, %537 : vector<8x128xf32>
    %542 = arith.mulf %540, %540 : vector<8x128xf32>
    %543 = arith.addf %541, %542 : vector<8x128xf32>
    %c96 = arith.constant 96 : index
    %c0_47 = arith.constant 0 : index
    %544 = vector.load %arg3[%c96, %c0_47] : memref<256x4xf32, #tpu.memory_space<vmem>>, vector<8x4xf32>
    %545 = vector.extract_strided_slice %544 {offsets = [0, 0], sizes = [8, 1], strides = [1, 1]} : vector<8x4xf32> to vector<8x1xf32>
    %546 = vector.broadcast %545 : vector<8x1xf32> to vector<8x128xf32>
    %547 = arith.cmpf one, %17, %546 : vector<8x128xf32>
    %548 = arith.minimumf %508, %543 : vector<8x128xf32>
    %549 = arith.select %547, %548, %508 : vector<8x128xi1>, vector<8x128xf32>
    %550 = vector.extract_strided_slice %544 {offsets = [0, 1], sizes = [8, 1], strides = [1, 1]} : vector<8x4xf32> to vector<8x1xf32>
    %551 = vector.broadcast %550 : vector<8x1xf32> to vector<8x128xf32>
    %552 = arith.cmpf one, %20, %551 : vector<8x128xf32>
    %553 = arith.minimumf %513, %543 : vector<8x128xf32>
    %554 = arith.select %552, %553, %513 : vector<8x128xi1>, vector<8x128xf32>
    %555 = vector.extract_strided_slice %544 {offsets = [0, 2], sizes = [8, 1], strides = [1, 1]} : vector<8x4xf32> to vector<8x1xf32>
    %556 = vector.broadcast %555 : vector<8x1xf32> to vector<8x128xf32>
    %557 = arith.cmpf one, %23, %556 : vector<8x128xf32>
    %558 = arith.minimumf %518, %543 : vector<8x128xf32>
    %559 = arith.select %557, %558, %518 : vector<8x128xi1>, vector<8x128xf32>
    %560 = vector.extract_strided_slice %544 {offsets = [0, 3], sizes = [8, 1], strides = [1, 1]} : vector<8x4xf32> to vector<8x1xf32>
    %561 = vector.broadcast %560 : vector<8x1xf32> to vector<8x128xf32>
    %562 = arith.cmpf one, %26, %561 : vector<8x128xf32>
    %563 = arith.minimumf %523, %543 : vector<8x128xf32>
    %564 = arith.select %562, %563, %523 : vector<8x128xi1>, vector<8x128xf32>
    %565 = tpu.iota {dimensions = array<i32: 0>} : vector<8x1xi32>
    %c104_i32 = arith.constant 104 : i32
    %566 = arith.addi %27, %c104_i32 : i32
    %567 = vector.broadcast %566 : i32 to vector<8x1xi32>
    %568 = arith.addi %565, %567 : vector<8x1xi32>
    %569 = arith.sitofp %568 : vector<8x1xi32> to vector<8x1xf32>
    %cst_48 = arith.constant 1.600000e+01 : f32
    %570 = vector.broadcast %cst_48 : f32 to vector<8x1xf32>
    %571 = arith.divf %569, %570 : vector<8x1xf32>
    %572 = math.floor %571 : vector<8x1xf32>
    %cst_49 = arith.constant 1.600000e+01 : f32
    %573 = vector.broadcast %cst_49 : f32 to vector<8x1xf32>
    %574 = arith.mulf %572, %573 : vector<8x1xf32>
    %575 = arith.subf %569, %574 : vector<8x1xf32>
    %576 = vector.broadcast %572 : vector<8x1xf32> to vector<8x128xf32>
    %577 = vector.broadcast %10 : vector<1x128xf32> to vector<8x128xf32>
    %578 = arith.subf %576, %577 : vector<8x128xf32>
    %579 = vector.broadcast %575 : vector<8x1xf32> to vector<8x128xf32>
    %580 = vector.broadcast %13 : vector<1x128xf32> to vector<8x128xf32>
    %581 = arith.subf %579, %580 : vector<8x128xf32>
    %582 = arith.mulf %578, %578 : vector<8x128xf32>
    %583 = arith.mulf %581, %581 : vector<8x128xf32>
    %584 = arith.addf %582, %583 : vector<8x128xf32>
    %c104 = arith.constant 104 : index
    %c0_50 = arith.constant 0 : index
    %585 = vector.load %arg3[%c104, %c0_50] : memref<256x4xf32, #tpu.memory_space<vmem>>, vector<8x4xf32>
    %586 = vector.extract_strided_slice %585 {offsets = [0, 0], sizes = [8, 1], strides = [1, 1]} : vector<8x4xf32> to vector<8x1xf32>
    %587 = vector.broadcast %586 : vector<8x1xf32> to vector<8x128xf32>
    %588 = arith.cmpf one, %17, %587 : vector<8x128xf32>
    %589 = arith.minimumf %549, %584 : vector<8x128xf32>
    %590 = arith.select %588, %589, %549 : vector<8x128xi1>, vector<8x128xf32>
    %591 = vector.extract_strided_slice %585 {offsets = [0, 1], sizes = [8, 1], strides = [1, 1]} : vector<8x4xf32> to vector<8x1xf32>
    %592 = vector.broadcast %591 : vector<8x1xf32> to vector<8x128xf32>
    %593 = arith.cmpf one, %20, %592 : vector<8x128xf32>
    %594 = arith.minimumf %554, %584 : vector<8x128xf32>
    %595 = arith.select %593, %594, %554 : vector<8x128xi1>, vector<8x128xf32>
    %596 = vector.extract_strided_slice %585 {offsets = [0, 2], sizes = [8, 1], strides = [1, 1]} : vector<8x4xf32> to vector<8x1xf32>
    %597 = vector.broadcast %596 : vector<8x1xf32> to vector<8x128xf32>
    %598 = arith.cmpf one, %23, %597 : vector<8x128xf32>
    %599 = arith.minimumf %559, %584 : vector<8x128xf32>
    %600 = arith.select %598, %599, %559 : vector<8x128xi1>, vector<8x128xf32>
    %601 = vector.extract_strided_slice %585 {offsets = [0, 3], sizes = [8, 1], strides = [1, 1]} : vector<8x4xf32> to vector<8x1xf32>
    %602 = vector.broadcast %601 : vector<8x1xf32> to vector<8x128xf32>
    %603 = arith.cmpf one, %26, %602 : vector<8x128xf32>
    %604 = arith.minimumf %564, %584 : vector<8x128xf32>
    %605 = arith.select %603, %604, %564 : vector<8x128xi1>, vector<8x128xf32>
    %606 = tpu.iota {dimensions = array<i32: 0>} : vector<8x1xi32>
    %c112_i32 = arith.constant 112 : i32
    %607 = arith.addi %27, %c112_i32 : i32
    %608 = vector.broadcast %607 : i32 to vector<8x1xi32>
    %609 = arith.addi %606, %608 : vector<8x1xi32>
    %610 = arith.sitofp %609 : vector<8x1xi32> to vector<8x1xf32>
    %cst_51 = arith.constant 1.600000e+01 : f32
    %611 = vector.broadcast %cst_51 : f32 to vector<8x1xf32>
    %612 = arith.divf %610, %611 : vector<8x1xf32>
    %613 = math.floor %612 : vector<8x1xf32>
    %cst_52 = arith.constant 1.600000e+01 : f32
    %614 = vector.broadcast %cst_52 : f32 to vector<8x1xf32>
    %615 = arith.mulf %613, %614 : vector<8x1xf32>
    %616 = arith.subf %610, %615 : vector<8x1xf32>
    %617 = vector.broadcast %613 : vector<8x1xf32> to vector<8x128xf32>
    %618 = vector.broadcast %10 : vector<1x128xf32> to vector<8x128xf32>
    %619 = arith.subf %617, %618 : vector<8x128xf32>
    %620 = vector.broadcast %616 : vector<8x1xf32> to vector<8x128xf32>
    %621 = vector.broadcast %13 : vector<1x128xf32> to vector<8x128xf32>
    %622 = arith.subf %620, %621 : vector<8x128xf32>
    %623 = arith.mulf %619, %619 : vector<8x128xf32>
    %624 = arith.mulf %622, %622 : vector<8x128xf32>
    %625 = arith.addf %623, %624 : vector<8x128xf32>
    %c112 = arith.constant 112 : index
    %c0_53 = arith.constant 0 : index
    %626 = vector.load %arg3[%c112, %c0_53] : memref<256x4xf32, #tpu.memory_space<vmem>>, vector<8x4xf32>
    %627 = vector.extract_strided_slice %626 {offsets = [0, 0], sizes = [8, 1], strides = [1, 1]} : vector<8x4xf32> to vector<8x1xf32>
    %628 = vector.broadcast %627 : vector<8x1xf32> to vector<8x128xf32>
    %629 = arith.cmpf one, %17, %628 : vector<8x128xf32>
    %630 = arith.minimumf %590, %625 : vector<8x128xf32>
    %631 = arith.select %629, %630, %590 : vector<8x128xi1>, vector<8x128xf32>
    %632 = vector.extract_strided_slice %626 {offsets = [0, 1], sizes = [8, 1], strides = [1, 1]} : vector<8x4xf32> to vector<8x1xf32>
    %633 = vector.broadcast %632 : vector<8x1xf32> to vector<8x128xf32>
    %634 = arith.cmpf one, %20, %633 : vector<8x128xf32>
    %635 = arith.minimumf %595, %625 : vector<8x128xf32>
    %636 = arith.select %634, %635, %595 : vector<8x128xi1>, vector<8x128xf32>
    %637 = vector.extract_strided_slice %626 {offsets = [0, 2], sizes = [8, 1], strides = [1, 1]} : vector<8x4xf32> to vector<8x1xf32>
    %638 = vector.broadcast %637 : vector<8x1xf32> to vector<8x128xf32>
    %639 = arith.cmpf one, %23, %638 : vector<8x128xf32>
    %640 = arith.minimumf %600, %625 : vector<8x128xf32>
    %641 = arith.select %639, %640, %600 : vector<8x128xi1>, vector<8x128xf32>
    %642 = vector.extract_strided_slice %626 {offsets = [0, 3], sizes = [8, 1], strides = [1, 1]} : vector<8x4xf32> to vector<8x1xf32>
    %643 = vector.broadcast %642 : vector<8x1xf32> to vector<8x128xf32>
    %644 = arith.cmpf one, %26, %643 : vector<8x128xf32>
    %645 = arith.minimumf %605, %625 : vector<8x128xf32>
    %646 = arith.select %644, %645, %605 : vector<8x128xi1>, vector<8x128xf32>
    %647 = tpu.iota {dimensions = array<i32: 0>} : vector<8x1xi32>
    %c120_i32 = arith.constant 120 : i32
    %648 = arith.addi %27, %c120_i32 : i32
    %649 = vector.broadcast %648 : i32 to vector<8x1xi32>
    %650 = arith.addi %647, %649 : vector<8x1xi32>
    %651 = arith.sitofp %650 : vector<8x1xi32> to vector<8x1xf32>
    %cst_54 = arith.constant 1.600000e+01 : f32
    %652 = vector.broadcast %cst_54 : f32 to vector<8x1xf32>
    %653 = arith.divf %651, %652 : vector<8x1xf32>
    %654 = math.floor %653 : vector<8x1xf32>
    %cst_55 = arith.constant 1.600000e+01 : f32
    %655 = vector.broadcast %cst_55 : f32 to vector<8x1xf32>
    %656 = arith.mulf %654, %655 : vector<8x1xf32>
    %657 = arith.subf %651, %656 : vector<8x1xf32>
    %658 = vector.broadcast %654 : vector<8x1xf32> to vector<8x128xf32>
    %659 = vector.broadcast %10 : vector<1x128xf32> to vector<8x128xf32>
    %660 = arith.subf %658, %659 : vector<8x128xf32>
    %661 = vector.broadcast %657 : vector<8x1xf32> to vector<8x128xf32>
    %662 = vector.broadcast %13 : vector<1x128xf32> to vector<8x128xf32>
    %663 = arith.subf %661, %662 : vector<8x128xf32>
    %664 = arith.mulf %660, %660 : vector<8x128xf32>
    %665 = arith.mulf %663, %663 : vector<8x128xf32>
    %666 = arith.addf %664, %665 : vector<8x128xf32>
    %c120 = arith.constant 120 : index
    %c0_56 = arith.constant 0 : index
    %667 = vector.load %arg3[%c120, %c0_56] : memref<256x4xf32, #tpu.memory_space<vmem>>, vector<8x4xf32>
    %668 = vector.extract_strided_slice %667 {offsets = [0, 0], sizes = [8, 1], strides = [1, 1]} : vector<8x4xf32> to vector<8x1xf32>
    %669 = vector.broadcast %668 : vector<8x1xf32> to vector<8x128xf32>
    %670 = arith.cmpf one, %17, %669 : vector<8x128xf32>
    %671 = arith.minimumf %631, %666 : vector<8x128xf32>
    %672 = arith.select %670, %671, %631 : vector<8x128xi1>, vector<8x128xf32>
    %673 = vector.extract_strided_slice %667 {offsets = [0, 1], sizes = [8, 1], strides = [1, 1]} : vector<8x4xf32> to vector<8x1xf32>
    %674 = vector.broadcast %673 : vector<8x1xf32> to vector<8x128xf32>
    %675 = arith.cmpf one, %20, %674 : vector<8x128xf32>
    %676 = arith.minimumf %636, %666 : vector<8x128xf32>
    %677 = arith.select %675, %676, %636 : vector<8x128xi1>, vector<8x128xf32>
    %678 = vector.extract_strided_slice %667 {offsets = [0, 2], sizes = [8, 1], strides = [1, 1]} : vector<8x4xf32> to vector<8x1xf32>
    %679 = vector.broadcast %678 : vector<8x1xf32> to vector<8x128xf32>
    %680 = arith.cmpf one, %23, %679 : vector<8x128xf32>
    %681 = arith.minimumf %641, %666 : vector<8x128xf32>
    %682 = arith.select %680, %681, %641 : vector<8x128xi1>, vector<8x128xf32>
    %683 = vector.extract_strided_slice %667 {offsets = [0, 3], sizes = [8, 1], strides = [1, 1]} : vector<8x4xf32> to vector<8x1xf32>
    %684 = vector.broadcast %683 : vector<8x1xf32> to vector<8x128xf32>
    %685 = arith.cmpf one, %26, %684 : vector<8x128xf32>
    %686 = arith.minimumf %646, %666 : vector<8x128xf32>
    %687 = arith.select %685, %686, %646 : vector<8x128xi1>, vector<8x128xf32>
    %688 = tpu.iota {dimensions = array<i32: 0>} : vector<8x1xi32>
    %c128_i32_57 = arith.constant 128 : i32
    %689 = arith.addi %27, %c128_i32_57 : i32
    %690 = vector.broadcast %689 : i32 to vector<8x1xi32>
    %691 = arith.addi %688, %690 : vector<8x1xi32>
    %692 = arith.sitofp %691 : vector<8x1xi32> to vector<8x1xf32>
    %cst_58 = arith.constant 1.600000e+01 : f32
    %693 = vector.broadcast %cst_58 : f32 to vector<8x1xf32>
    %694 = arith.divf %692, %693 : vector<8x1xf32>
    %695 = math.floor %694 : vector<8x1xf32>
    %cst_59 = arith.constant 1.600000e+01 : f32
    %696 = vector.broadcast %cst_59 : f32 to vector<8x1xf32>
    %697 = arith.mulf %695, %696 : vector<8x1xf32>
    %698 = arith.subf %692, %697 : vector<8x1xf32>
    %699 = vector.broadcast %695 : vector<8x1xf32> to vector<8x128xf32>
    %700 = vector.broadcast %10 : vector<1x128xf32> to vector<8x128xf32>
    %701 = arith.subf %699, %700 : vector<8x128xf32>
    %702 = vector.broadcast %698 : vector<8x1xf32> to vector<8x128xf32>
    %703 = vector.broadcast %13 : vector<1x128xf32> to vector<8x128xf32>
    %704 = arith.subf %702, %703 : vector<8x128xf32>
    %705 = arith.mulf %701, %701 : vector<8x128xf32>
    %706 = arith.mulf %704, %704 : vector<8x128xf32>
    %707 = arith.addf %705, %706 : vector<8x128xf32>
    %c128 = arith.constant 128 : index
    %c0_60 = arith.constant 0 : index
    %708 = vector.load %arg3[%c128, %c0_60] : memref<256x4xf32, #tpu.memory_space<vmem>>, vector<8x4xf32>
    %709 = vector.extract_strided_slice %708 {offsets = [0, 0], sizes = [8, 1], strides = [1, 1]} : vector<8x4xf32> to vector<8x1xf32>
    %710 = vector.broadcast %709 : vector<8x1xf32> to vector<8x128xf32>
    %711 = arith.cmpf one, %17, %710 : vector<8x128xf32>
    %712 = arith.minimumf %672, %707 : vector<8x128xf32>
    %713 = arith.select %711, %712, %672 : vector<8x128xi1>, vector<8x128xf32>
    %714 = vector.extract_strided_slice %708 {offsets = [0, 1], sizes = [8, 1], strides = [1, 1]} : vector<8x4xf32> to vector<8x1xf32>
    %715 = vector.broadcast %714 : vector<8x1xf32> to vector<8x128xf32>
    %716 = arith.cmpf one, %20, %715 : vector<8x128xf32>
    %717 = arith.minimumf %677, %707 : vector<8x128xf32>
    %718 = arith.select %716, %717, %677 : vector<8x128xi1>, vector<8x128xf32>
    %719 = vector.extract_strided_slice %708 {offsets = [0, 2], sizes = [8, 1], strides = [1, 1]} : vector<8x4xf32> to vector<8x1xf32>
    %720 = vector.broadcast %719 : vector<8x1xf32> to vector<8x128xf32>
    %721 = arith.cmpf one, %23, %720 : vector<8x128xf32>
    %722 = arith.minimumf %682, %707 : vector<8x128xf32>
    %723 = arith.select %721, %722, %682 : vector<8x128xi1>, vector<8x128xf32>
    %724 = vector.extract_strided_slice %708 {offsets = [0, 3], sizes = [8, 1], strides = [1, 1]} : vector<8x4xf32> to vector<8x1xf32>
    %725 = vector.broadcast %724 : vector<8x1xf32> to vector<8x128xf32>
    %726 = arith.cmpf one, %26, %725 : vector<8x128xf32>
    %727 = arith.minimumf %687, %707 : vector<8x128xf32>
    %728 = arith.select %726, %727, %687 : vector<8x128xi1>, vector<8x128xf32>
    %729 = tpu.iota {dimensions = array<i32: 0>} : vector<8x1xi32>
    %c136_i32 = arith.constant 136 : i32
    %730 = arith.addi %27, %c136_i32 : i32
    %731 = vector.broadcast %730 : i32 to vector<8x1xi32>
    %732 = arith.addi %729, %731 : vector<8x1xi32>
    %733 = arith.sitofp %732 : vector<8x1xi32> to vector<8x1xf32>
    %cst_61 = arith.constant 1.600000e+01 : f32
    %734 = vector.broadcast %cst_61 : f32 to vector<8x1xf32>
    %735 = arith.divf %733, %734 : vector<8x1xf32>
    %736 = math.floor %735 : vector<8x1xf32>
    %cst_62 = arith.constant 1.600000e+01 : f32
    %737 = vector.broadcast %cst_62 : f32 to vector<8x1xf32>
    %738 = arith.mulf %736, %737 : vector<8x1xf32>
    %739 = arith.subf %733, %738 : vector<8x1xf32>
    %740 = vector.broadcast %736 : vector<8x1xf32> to vector<8x128xf32>
    %741 = vector.broadcast %10 : vector<1x128xf32> to vector<8x128xf32>
    %742 = arith.subf %740, %741 : vector<8x128xf32>
    %743 = vector.broadcast %739 : vector<8x1xf32> to vector<8x128xf32>
    %744 = vector.broadcast %13 : vector<1x128xf32> to vector<8x128xf32>
    %745 = arith.subf %743, %744 : vector<8x128xf32>
    %746 = arith.mulf %742, %742 : vector<8x128xf32>
    %747 = arith.mulf %745, %745 : vector<8x128xf32>
    %748 = arith.addf %746, %747 : vector<8x128xf32>
    %c136 = arith.constant 136 : index
    %c0_63 = arith.constant 0 : index
    %749 = vector.load %arg3[%c136, %c0_63] : memref<256x4xf32, #tpu.memory_space<vmem>>, vector<8x4xf32>
    %750 = vector.extract_strided_slice %749 {offsets = [0, 0], sizes = [8, 1], strides = [1, 1]} : vector<8x4xf32> to vector<8x1xf32>
    %751 = vector.broadcast %750 : vector<8x1xf32> to vector<8x128xf32>
    %752 = arith.cmpf one, %17, %751 : vector<8x128xf32>
    %753 = arith.minimumf %713, %748 : vector<8x128xf32>
    %754 = arith.select %752, %753, %713 : vector<8x128xi1>, vector<8x128xf32>
    %755 = vector.extract_strided_slice %749 {offsets = [0, 1], sizes = [8, 1], strides = [1, 1]} : vector<8x4xf32> to vector<8x1xf32>
    %756 = vector.broadcast %755 : vector<8x1xf32> to vector<8x128xf32>
    %757 = arith.cmpf one, %20, %756 : vector<8x128xf32>
    %758 = arith.minimumf %718, %748 : vector<8x128xf32>
    %759 = arith.select %757, %758, %718 : vector<8x128xi1>, vector<8x128xf32>
    %760 = vector.extract_strided_slice %749 {offsets = [0, 2], sizes = [8, 1], strides = [1, 1]} : vector<8x4xf32> to vector<8x1xf32>
    %761 = vector.broadcast %760 : vector<8x1xf32> to vector<8x128xf32>
    %762 = arith.cmpf one, %23, %761 : vector<8x128xf32>
    %763 = arith.minimumf %723, %748 : vector<8x128xf32>
    %764 = arith.select %762, %763, %723 : vector<8x128xi1>, vector<8x128xf32>
    %765 = vector.extract_strided_slice %749 {offsets = [0, 3], sizes = [8, 1], strides = [1, 1]} : vector<8x4xf32> to vector<8x1xf32>
    %766 = vector.broadcast %765 : vector<8x1xf32> to vector<8x128xf32>
    %767 = arith.cmpf one, %26, %766 : vector<8x128xf32>
    %768 = arith.minimumf %728, %748 : vector<8x128xf32>
    %769 = arith.select %767, %768, %728 : vector<8x128xi1>, vector<8x128xf32>
    %770 = tpu.iota {dimensions = array<i32: 0>} : vector<8x1xi32>
    %c144_i32 = arith.constant 144 : i32
    %771 = arith.addi %27, %c144_i32 : i32
    %772 = vector.broadcast %771 : i32 to vector<8x1xi32>
    %773 = arith.addi %770, %772 : vector<8x1xi32>
    %774 = arith.sitofp %773 : vector<8x1xi32> to vector<8x1xf32>
    %cst_64 = arith.constant 1.600000e+01 : f32
    %775 = vector.broadcast %cst_64 : f32 to vector<8x1xf32>
    %776 = arith.divf %774, %775 : vector<8x1xf32>
    %777 = math.floor %776 : vector<8x1xf32>
    %cst_65 = arith.constant 1.600000e+01 : f32
    %778 = vector.broadcast %cst_65 : f32 to vector<8x1xf32>
    %779 = arith.mulf %777, %778 : vector<8x1xf32>
    %780 = arith.subf %774, %779 : vector<8x1xf32>
    %781 = vector.broadcast %777 : vector<8x1xf32> to vector<8x128xf32>
    %782 = vector.broadcast %10 : vector<1x128xf32> to vector<8x128xf32>
    %783 = arith.subf %781, %782 : vector<8x128xf32>
    %784 = vector.broadcast %780 : vector<8x1xf32> to vector<8x128xf32>
    %785 = vector.broadcast %13 : vector<1x128xf32> to vector<8x128xf32>
    %786 = arith.subf %784, %785 : vector<8x128xf32>
    %787 = arith.mulf %783, %783 : vector<8x128xf32>
    %788 = arith.mulf %786, %786 : vector<8x128xf32>
    %789 = arith.addf %787, %788 : vector<8x128xf32>
    %c144 = arith.constant 144 : index
    %c0_66 = arith.constant 0 : index
    %790 = vector.load %arg3[%c144, %c0_66] : memref<256x4xf32, #tpu.memory_space<vmem>>, vector<8x4xf32>
    %791 = vector.extract_strided_slice %790 {offsets = [0, 0], sizes = [8, 1], strides = [1, 1]} : vector<8x4xf32> to vector<8x1xf32>
    %792 = vector.broadcast %791 : vector<8x1xf32> to vector<8x128xf32>
    %793 = arith.cmpf one, %17, %792 : vector<8x128xf32>
    %794 = arith.minimumf %754, %789 : vector<8x128xf32>
    %795 = arith.select %793, %794, %754 : vector<8x128xi1>, vector<8x128xf32>
    %796 = vector.extract_strided_slice %790 {offsets = [0, 1], sizes = [8, 1], strides = [1, 1]} : vector<8x4xf32> to vector<8x1xf32>
    %797 = vector.broadcast %796 : vector<8x1xf32> to vector<8x128xf32>
    %798 = arith.cmpf one, %20, %797 : vector<8x128xf32>
    %799 = arith.minimumf %759, %789 : vector<8x128xf32>
    %800 = arith.select %798, %799, %759 : vector<8x128xi1>, vector<8x128xf32>
    %801 = vector.extract_strided_slice %790 {offsets = [0, 2], sizes = [8, 1], strides = [1, 1]} : vector<8x4xf32> to vector<8x1xf32>
    %802 = vector.broadcast %801 : vector<8x1xf32> to vector<8x128xf32>
    %803 = arith.cmpf one, %23, %802 : vector<8x128xf32>
    %804 = arith.minimumf %764, %789 : vector<8x128xf32>
    %805 = arith.select %803, %804, %764 : vector<8x128xi1>, vector<8x128xf32>
    %806 = vector.extract_strided_slice %790 {offsets = [0, 3], sizes = [8, 1], strides = [1, 1]} : vector<8x4xf32> to vector<8x1xf32>
    %807 = vector.broadcast %806 : vector<8x1xf32> to vector<8x128xf32>
    %808 = arith.cmpf one, %26, %807 : vector<8x128xf32>
    %809 = arith.minimumf %769, %789 : vector<8x128xf32>
    %810 = arith.select %808, %809, %769 : vector<8x128xi1>, vector<8x128xf32>
    %811 = tpu.iota {dimensions = array<i32: 0>} : vector<8x1xi32>
    %c152_i32 = arith.constant 152 : i32
    %812 = arith.addi %27, %c152_i32 : i32
    %813 = vector.broadcast %812 : i32 to vector<8x1xi32>
    %814 = arith.addi %811, %813 : vector<8x1xi32>
    %815 = arith.sitofp %814 : vector<8x1xi32> to vector<8x1xf32>
    %cst_67 = arith.constant 1.600000e+01 : f32
    %816 = vector.broadcast %cst_67 : f32 to vector<8x1xf32>
    %817 = arith.divf %815, %816 : vector<8x1xf32>
    %818 = math.floor %817 : vector<8x1xf32>
    %cst_68 = arith.constant 1.600000e+01 : f32
    %819 = vector.broadcast %cst_68 : f32 to vector<8x1xf32>
    %820 = arith.mulf %818, %819 : vector<8x1xf32>
    %821 = arith.subf %815, %820 : vector<8x1xf32>
    %822 = vector.broadcast %818 : vector<8x1xf32> to vector<8x128xf32>
    %823 = vector.broadcast %10 : vector<1x128xf32> to vector<8x128xf32>
    %824 = arith.subf %822, %823 : vector<8x128xf32>
    %825 = vector.broadcast %821 : vector<8x1xf32> to vector<8x128xf32>
    %826 = vector.broadcast %13 : vector<1x128xf32> to vector<8x128xf32>
    %827 = arith.subf %825, %826 : vector<8x128xf32>
    %828 = arith.mulf %824, %824 : vector<8x128xf32>
    %829 = arith.mulf %827, %827 : vector<8x128xf32>
    %830 = arith.addf %828, %829 : vector<8x128xf32>
    %c152 = arith.constant 152 : index
    %c0_69 = arith.constant 0 : index
    %831 = vector.load %arg3[%c152, %c0_69] : memref<256x4xf32, #tpu.memory_space<vmem>>, vector<8x4xf32>
    %832 = vector.extract_strided_slice %831 {offsets = [0, 0], sizes = [8, 1], strides = [1, 1]} : vector<8x4xf32> to vector<8x1xf32>
    %833 = vector.broadcast %832 : vector<8x1xf32> to vector<8x128xf32>
    %834 = arith.cmpf one, %17, %833 : vector<8x128xf32>
    %835 = arith.minimumf %795, %830 : vector<8x128xf32>
    %836 = arith.select %834, %835, %795 : vector<8x128xi1>, vector<8x128xf32>
    %837 = vector.extract_strided_slice %831 {offsets = [0, 1], sizes = [8, 1], strides = [1, 1]} : vector<8x4xf32> to vector<8x1xf32>
    %838 = vector.broadcast %837 : vector<8x1xf32> to vector<8x128xf32>
    %839 = arith.cmpf one, %20, %838 : vector<8x128xf32>
    %840 = arith.minimumf %800, %830 : vector<8x128xf32>
    %841 = arith.select %839, %840, %800 : vector<8x128xi1>, vector<8x128xf32>
    %842 = vector.extract_strided_slice %831 {offsets = [0, 2], sizes = [8, 1], strides = [1, 1]} : vector<8x4xf32> to vector<8x1xf32>
    %843 = vector.broadcast %842 : vector<8x1xf32> to vector<8x128xf32>
    %844 = arith.cmpf one, %23, %843 : vector<8x128xf32>
    %845 = arith.minimumf %805, %830 : vector<8x128xf32>
    %846 = arith.select %844, %845, %805 : vector<8x128xi1>, vector<8x128xf32>
    %847 = vector.extract_strided_slice %831 {offsets = [0, 3], sizes = [8, 1], strides = [1, 1]} : vector<8x4xf32> to vector<8x1xf32>
    %848 = vector.broadcast %847 : vector<8x1xf32> to vector<8x128xf32>
    %849 = arith.cmpf one, %26, %848 : vector<8x128xf32>
    %850 = arith.minimumf %810, %830 : vector<8x128xf32>
    %851 = arith.select %849, %850, %810 : vector<8x128xi1>, vector<8x128xf32>
    %852 = tpu.iota {dimensions = array<i32: 0>} : vector<8x1xi32>
    %c160_i32 = arith.constant 160 : i32
    %853 = arith.addi %27, %c160_i32 : i32
    %854 = vector.broadcast %853 : i32 to vector<8x1xi32>
    %855 = arith.addi %852, %854 : vector<8x1xi32>
    %856 = arith.sitofp %855 : vector<8x1xi32> to vector<8x1xf32>
    %cst_70 = arith.constant 1.600000e+01 : f32
    %857 = vector.broadcast %cst_70 : f32 to vector<8x1xf32>
    %858 = arith.divf %856, %857 : vector<8x1xf32>
    %859 = math.floor %858 : vector<8x1xf32>
    %cst_71 = arith.constant 1.600000e+01 : f32
    %860 = vector.broadcast %cst_71 : f32 to vector<8x1xf32>
    %861 = arith.mulf %859, %860 : vector<8x1xf32>
    %862 = arith.subf %856, %861 : vector<8x1xf32>
    %863 = vector.broadcast %859 : vector<8x1xf32> to vector<8x128xf32>
    %864 = vector.broadcast %10 : vector<1x128xf32> to vector<8x128xf32>
    %865 = arith.subf %863, %864 : vector<8x128xf32>
    %866 = vector.broadcast %862 : vector<8x1xf32> to vector<8x128xf32>
    %867 = vector.broadcast %13 : vector<1x128xf32> to vector<8x128xf32>
    %868 = arith.subf %866, %867 : vector<8x128xf32>
    %869 = arith.mulf %865, %865 : vector<8x128xf32>
    %870 = arith.mulf %868, %868 : vector<8x128xf32>
    %871 = arith.addf %869, %870 : vector<8x128xf32>
    %c160 = arith.constant 160 : index
    %c0_72 = arith.constant 0 : index
    %872 = vector.load %arg3[%c160, %c0_72] : memref<256x4xf32, #tpu.memory_space<vmem>>, vector<8x4xf32>
    %873 = vector.extract_strided_slice %872 {offsets = [0, 0], sizes = [8, 1], strides = [1, 1]} : vector<8x4xf32> to vector<8x1xf32>
    %874 = vector.broadcast %873 : vector<8x1xf32> to vector<8x128xf32>
    %875 = arith.cmpf one, %17, %874 : vector<8x128xf32>
    %876 = arith.minimumf %836, %871 : vector<8x128xf32>
    %877 = arith.select %875, %876, %836 : vector<8x128xi1>, vector<8x128xf32>
    %878 = vector.extract_strided_slice %872 {offsets = [0, 1], sizes = [8, 1], strides = [1, 1]} : vector<8x4xf32> to vector<8x1xf32>
    %879 = vector.broadcast %878 : vector<8x1xf32> to vector<8x128xf32>
    %880 = arith.cmpf one, %20, %879 : vector<8x128xf32>
    %881 = arith.minimumf %841, %871 : vector<8x128xf32>
    %882 = arith.select %880, %881, %841 : vector<8x128xi1>, vector<8x128xf32>
    %883 = vector.extract_strided_slice %872 {offsets = [0, 2], sizes = [8, 1], strides = [1, 1]} : vector<8x4xf32> to vector<8x1xf32>
    %884 = vector.broadcast %883 : vector<8x1xf32> to vector<8x128xf32>
    %885 = arith.cmpf one, %23, %884 : vector<8x128xf32>
    %886 = arith.minimumf %846, %871 : vector<8x128xf32>
    %887 = arith.select %885, %886, %846 : vector<8x128xi1>, vector<8x128xf32>
    %888 = vector.extract_strided_slice %872 {offsets = [0, 3], sizes = [8, 1], strides = [1, 1]} : vector<8x4xf32> to vector<8x1xf32>
    %889 = vector.broadcast %888 : vector<8x1xf32> to vector<8x128xf32>
    %890 = arith.cmpf one, %26, %889 : vector<8x128xf32>
    %891 = arith.minimumf %851, %871 : vector<8x128xf32>
    %892 = arith.select %890, %891, %851 : vector<8x128xi1>, vector<8x128xf32>
    %893 = tpu.iota {dimensions = array<i32: 0>} : vector<8x1xi32>
    %c168_i32 = arith.constant 168 : i32
    %894 = arith.addi %27, %c168_i32 : i32
    %895 = vector.broadcast %894 : i32 to vector<8x1xi32>
    %896 = arith.addi %893, %895 : vector<8x1xi32>
    %897 = arith.sitofp %896 : vector<8x1xi32> to vector<8x1xf32>
    %cst_73 = arith.constant 1.600000e+01 : f32
    %898 = vector.broadcast %cst_73 : f32 to vector<8x1xf32>
    %899 = arith.divf %897, %898 : vector<8x1xf32>
    %900 = math.floor %899 : vector<8x1xf32>
    %cst_74 = arith.constant 1.600000e+01 : f32
    %901 = vector.broadcast %cst_74 : f32 to vector<8x1xf32>
    %902 = arith.mulf %900, %901 : vector<8x1xf32>
    %903 = arith.subf %897, %902 : vector<8x1xf32>
    %904 = vector.broadcast %900 : vector<8x1xf32> to vector<8x128xf32>
    %905 = vector.broadcast %10 : vector<1x128xf32> to vector<8x128xf32>
    %906 = arith.subf %904, %905 : vector<8x128xf32>
    %907 = vector.broadcast %903 : vector<8x1xf32> to vector<8x128xf32>
    %908 = vector.broadcast %13 : vector<1x128xf32> to vector<8x128xf32>
    %909 = arith.subf %907, %908 : vector<8x128xf32>
    %910 = arith.mulf %906, %906 : vector<8x128xf32>
    %911 = arith.mulf %909, %909 : vector<8x128xf32>
    %912 = arith.addf %910, %911 : vector<8x128xf32>
    %c168 = arith.constant 168 : index
    %c0_75 = arith.constant 0 : index
    %913 = vector.load %arg3[%c168, %c0_75] : memref<256x4xf32, #tpu.memory_space<vmem>>, vector<8x4xf32>
    %914 = vector.extract_strided_slice %913 {offsets = [0, 0], sizes = [8, 1], strides = [1, 1]} : vector<8x4xf32> to vector<8x1xf32>
    %915 = vector.broadcast %914 : vector<8x1xf32> to vector<8x128xf32>
    %916 = arith.cmpf one, %17, %915 : vector<8x128xf32>
    %917 = arith.minimumf %877, %912 : vector<8x128xf32>
    %918 = arith.select %916, %917, %877 : vector<8x128xi1>, vector<8x128xf32>
    %919 = vector.extract_strided_slice %913 {offsets = [0, 1], sizes = [8, 1], strides = [1, 1]} : vector<8x4xf32> to vector<8x1xf32>
    %920 = vector.broadcast %919 : vector<8x1xf32> to vector<8x128xf32>
    %921 = arith.cmpf one, %20, %920 : vector<8x128xf32>
    %922 = arith.minimumf %882, %912 : vector<8x128xf32>
    %923 = arith.select %921, %922, %882 : vector<8x128xi1>, vector<8x128xf32>
    %924 = vector.extract_strided_slice %913 {offsets = [0, 2], sizes = [8, 1], strides = [1, 1]} : vector<8x4xf32> to vector<8x1xf32>
    %925 = vector.broadcast %924 : vector<8x1xf32> to vector<8x128xf32>
    %926 = arith.cmpf one, %23, %925 : vector<8x128xf32>
    %927 = arith.minimumf %887, %912 : vector<8x128xf32>
    %928 = arith.select %926, %927, %887 : vector<8x128xi1>, vector<8x128xf32>
    %929 = vector.extract_strided_slice %913 {offsets = [0, 3], sizes = [8, 1], strides = [1, 1]} : vector<8x4xf32> to vector<8x1xf32>
    %930 = vector.broadcast %929 : vector<8x1xf32> to vector<8x128xf32>
    %931 = arith.cmpf one, %26, %930 : vector<8x128xf32>
    %932 = arith.minimumf %892, %912 : vector<8x128xf32>
    %933 = arith.select %931, %932, %892 : vector<8x128xi1>, vector<8x128xf32>
    %934 = tpu.iota {dimensions = array<i32: 0>} : vector<8x1xi32>
    %c176_i32 = arith.constant 176 : i32
    %935 = arith.addi %27, %c176_i32 : i32
    %936 = vector.broadcast %935 : i32 to vector<8x1xi32>
    %937 = arith.addi %934, %936 : vector<8x1xi32>
    %938 = arith.sitofp %937 : vector<8x1xi32> to vector<8x1xf32>
    %cst_76 = arith.constant 1.600000e+01 : f32
    %939 = vector.broadcast %cst_76 : f32 to vector<8x1xf32>
    %940 = arith.divf %938, %939 : vector<8x1xf32>
    %941 = math.floor %940 : vector<8x1xf32>
    %cst_77 = arith.constant 1.600000e+01 : f32
    %942 = vector.broadcast %cst_77 : f32 to vector<8x1xf32>
    %943 = arith.mulf %941, %942 : vector<8x1xf32>
    %944 = arith.subf %938, %943 : vector<8x1xf32>
    %945 = vector.broadcast %941 : vector<8x1xf32> to vector<8x128xf32>
    %946 = vector.broadcast %10 : vector<1x128xf32> to vector<8x128xf32>
    %947 = arith.subf %945, %946 : vector<8x128xf32>
    %948 = vector.broadcast %944 : vector<8x1xf32> to vector<8x128xf32>
    %949 = vector.broadcast %13 : vector<1x128xf32> to vector<8x128xf32>
    %950 = arith.subf %948, %949 : vector<8x128xf32>
    %951 = arith.mulf %947, %947 : vector<8x128xf32>
    %952 = arith.mulf %950, %950 : vector<8x128xf32>
    %953 = arith.addf %951, %952 : vector<8x128xf32>
    %c176 = arith.constant 176 : index
    %c0_78 = arith.constant 0 : index
    %954 = vector.load %arg3[%c176, %c0_78] : memref<256x4xf32, #tpu.memory_space<vmem>>, vector<8x4xf32>
    %955 = vector.extract_strided_slice %954 {offsets = [0, 0], sizes = [8, 1], strides = [1, 1]} : vector<8x4xf32> to vector<8x1xf32>
    %956 = vector.broadcast %955 : vector<8x1xf32> to vector<8x128xf32>
    %957 = arith.cmpf one, %17, %956 : vector<8x128xf32>
    %958 = arith.minimumf %918, %953 : vector<8x128xf32>
    %959 = arith.select %957, %958, %918 : vector<8x128xi1>, vector<8x128xf32>
    %960 = vector.extract_strided_slice %954 {offsets = [0, 1], sizes = [8, 1], strides = [1, 1]} : vector<8x4xf32> to vector<8x1xf32>
    %961 = vector.broadcast %960 : vector<8x1xf32> to vector<8x128xf32>
    %962 = arith.cmpf one, %20, %961 : vector<8x128xf32>
    %963 = arith.minimumf %923, %953 : vector<8x128xf32>
    %964 = arith.select %962, %963, %923 : vector<8x128xi1>, vector<8x128xf32>
    %965 = vector.extract_strided_slice %954 {offsets = [0, 2], sizes = [8, 1], strides = [1, 1]} : vector<8x4xf32> to vector<8x1xf32>
    %966 = vector.broadcast %965 : vector<8x1xf32> to vector<8x128xf32>
    %967 = arith.cmpf one, %23, %966 : vector<8x128xf32>
    %968 = arith.minimumf %928, %953 : vector<8x128xf32>
    %969 = arith.select %967, %968, %928 : vector<8x128xi1>, vector<8x128xf32>
    %970 = vector.extract_strided_slice %954 {offsets = [0, 3], sizes = [8, 1], strides = [1, 1]} : vector<8x4xf32> to vector<8x1xf32>
    %971 = vector.broadcast %970 : vector<8x1xf32> to vector<8x128xf32>
    %972 = arith.cmpf one, %26, %971 : vector<8x128xf32>
    %973 = arith.minimumf %933, %953 : vector<8x128xf32>
    %974 = arith.select %972, %973, %933 : vector<8x128xi1>, vector<8x128xf32>
    %975 = tpu.iota {dimensions = array<i32: 0>} : vector<8x1xi32>
    %c184_i32 = arith.constant 184 : i32
    %976 = arith.addi %27, %c184_i32 : i32
    %977 = vector.broadcast %976 : i32 to vector<8x1xi32>
    %978 = arith.addi %975, %977 : vector<8x1xi32>
    %979 = arith.sitofp %978 : vector<8x1xi32> to vector<8x1xf32>
    %cst_79 = arith.constant 1.600000e+01 : f32
    %980 = vector.broadcast %cst_79 : f32 to vector<8x1xf32>
    %981 = arith.divf %979, %980 : vector<8x1xf32>
    %982 = math.floor %981 : vector<8x1xf32>
    %cst_80 = arith.constant 1.600000e+01 : f32
    %983 = vector.broadcast %cst_80 : f32 to vector<8x1xf32>
    %984 = arith.mulf %982, %983 : vector<8x1xf32>
    %985 = arith.subf %979, %984 : vector<8x1xf32>
    %986 = vector.broadcast %982 : vector<8x1xf32> to vector<8x128xf32>
    %987 = vector.broadcast %10 : vector<1x128xf32> to vector<8x128xf32>
    %988 = arith.subf %986, %987 : vector<8x128xf32>
    %989 = vector.broadcast %985 : vector<8x1xf32> to vector<8x128xf32>
    %990 = vector.broadcast %13 : vector<1x128xf32> to vector<8x128xf32>
    %991 = arith.subf %989, %990 : vector<8x128xf32>
    %992 = arith.mulf %988, %988 : vector<8x128xf32>
    %993 = arith.mulf %991, %991 : vector<8x128xf32>
    %994 = arith.addf %992, %993 : vector<8x128xf32>
    %c184 = arith.constant 184 : index
    %c0_81 = arith.constant 0 : index
    %995 = vector.load %arg3[%c184, %c0_81] : memref<256x4xf32, #tpu.memory_space<vmem>>, vector<8x4xf32>
    %996 = vector.extract_strided_slice %995 {offsets = [0, 0], sizes = [8, 1], strides = [1, 1]} : vector<8x4xf32> to vector<8x1xf32>
    %997 = vector.broadcast %996 : vector<8x1xf32> to vector<8x128xf32>
    %998 = arith.cmpf one, %17, %997 : vector<8x128xf32>
    %999 = arith.minimumf %959, %994 : vector<8x128xf32>
    %1000 = arith.select %998, %999, %959 : vector<8x128xi1>, vector<8x128xf32>
    %1001 = vector.extract_strided_slice %995 {offsets = [0, 1], sizes = [8, 1], strides = [1, 1]} : vector<8x4xf32> to vector<8x1xf32>
    %1002 = vector.broadcast %1001 : vector<8x1xf32> to vector<8x128xf32>
    %1003 = arith.cmpf one, %20, %1002 : vector<8x128xf32>
    %1004 = arith.minimumf %964, %994 : vector<8x128xf32>
    %1005 = arith.select %1003, %1004, %964 : vector<8x128xi1>, vector<8x128xf32>
    %1006 = vector.extract_strided_slice %995 {offsets = [0, 2], sizes = [8, 1], strides = [1, 1]} : vector<8x4xf32> to vector<8x1xf32>
    %1007 = vector.broadcast %1006 : vector<8x1xf32> to vector<8x128xf32>
    %1008 = arith.cmpf one, %23, %1007 : vector<8x128xf32>
    %1009 = arith.minimumf %969, %994 : vector<8x128xf32>
    %1010 = arith.select %1008, %1009, %969 : vector<8x128xi1>, vector<8x128xf32>
    %1011 = vector.extract_strided_slice %995 {offsets = [0, 3], sizes = [8, 1], strides = [1, 1]} : vector<8x4xf32> to vector<8x1xf32>
    %1012 = vector.broadcast %1011 : vector<8x1xf32> to vector<8x128xf32>
    %1013 = arith.cmpf one, %26, %1012 : vector<8x128xf32>
    %1014 = arith.minimumf %974, %994 : vector<8x128xf32>
    %1015 = arith.select %1013, %1014, %974 : vector<8x128xi1>, vector<8x128xf32>
    %1016 = tpu.iota {dimensions = array<i32: 0>} : vector<8x1xi32>
    %c192_i32 = arith.constant 192 : i32
    %1017 = arith.addi %27, %c192_i32 : i32
    %1018 = vector.broadcast %1017 : i32 to vector<8x1xi32>
    %1019 = arith.addi %1016, %1018 : vector<8x1xi32>
    %1020 = arith.sitofp %1019 : vector<8x1xi32> to vector<8x1xf32>
    %cst_82 = arith.constant 1.600000e+01 : f32
    %1021 = vector.broadcast %cst_82 : f32 to vector<8x1xf32>
    %1022 = arith.divf %1020, %1021 : vector<8x1xf32>
    %1023 = math.floor %1022 : vector<8x1xf32>
    %cst_83 = arith.constant 1.600000e+01 : f32
    %1024 = vector.broadcast %cst_83 : f32 to vector<8x1xf32>
    %1025 = arith.mulf %1023, %1024 : vector<8x1xf32>
    %1026 = arith.subf %1020, %1025 : vector<8x1xf32>
    %1027 = vector.broadcast %1023 : vector<8x1xf32> to vector<8x128xf32>
    %1028 = vector.broadcast %10 : vector<1x128xf32> to vector<8x128xf32>
    %1029 = arith.subf %1027, %1028 : vector<8x128xf32>
    %1030 = vector.broadcast %1026 : vector<8x1xf32> to vector<8x128xf32>
    %1031 = vector.broadcast %13 : vector<1x128xf32> to vector<8x128xf32>
    %1032 = arith.subf %1030, %1031 : vector<8x128xf32>
    %1033 = arith.mulf %1029, %1029 : vector<8x128xf32>
    %1034 = arith.mulf %1032, %1032 : vector<8x128xf32>
    %1035 = arith.addf %1033, %1034 : vector<8x128xf32>
    %c192 = arith.constant 192 : index
    %c0_84 = arith.constant 0 : index
    %1036 = vector.load %arg3[%c192, %c0_84] : memref<256x4xf32, #tpu.memory_space<vmem>>, vector<8x4xf32>
    %1037 = vector.extract_strided_slice %1036 {offsets = [0, 0], sizes = [8, 1], strides = [1, 1]} : vector<8x4xf32> to vector<8x1xf32>
    %1038 = vector.broadcast %1037 : vector<8x1xf32> to vector<8x128xf32>
    %1039 = arith.cmpf one, %17, %1038 : vector<8x128xf32>
    %1040 = arith.minimumf %1000, %1035 : vector<8x128xf32>
    %1041 = arith.select %1039, %1040, %1000 : vector<8x128xi1>, vector<8x128xf32>
    %1042 = vector.extract_strided_slice %1036 {offsets = [0, 1], sizes = [8, 1], strides = [1, 1]} : vector<8x4xf32> to vector<8x1xf32>
    %1043 = vector.broadcast %1042 : vector<8x1xf32> to vector<8x128xf32>
    %1044 = arith.cmpf one, %20, %1043 : vector<8x128xf32>
    %1045 = arith.minimumf %1005, %1035 : vector<8x128xf32>
    %1046 = arith.select %1044, %1045, %1005 : vector<8x128xi1>, vector<8x128xf32>
    %1047 = vector.extract_strided_slice %1036 {offsets = [0, 2], sizes = [8, 1], strides = [1, 1]} : vector<8x4xf32> to vector<8x1xf32>
    %1048 = vector.broadcast %1047 : vector<8x1xf32> to vector<8x128xf32>
    %1049 = arith.cmpf one, %23, %1048 : vector<8x128xf32>
    %1050 = arith.minimumf %1010, %1035 : vector<8x128xf32>
    %1051 = arith.select %1049, %1050, %1010 : vector<8x128xi1>, vector<8x128xf32>
    %1052 = vector.extract_strided_slice %1036 {offsets = [0, 3], sizes = [8, 1], strides = [1, 1]} : vector<8x4xf32> to vector<8x1xf32>
    %1053 = vector.broadcast %1052 : vector<8x1xf32> to vector<8x128xf32>
    %1054 = arith.cmpf one, %26, %1053 : vector<8x128xf32>
    %1055 = arith.minimumf %1015, %1035 : vector<8x128xf32>
    %1056 = arith.select %1054, %1055, %1015 : vector<8x128xi1>, vector<8x128xf32>
    %1057 = tpu.iota {dimensions = array<i32: 0>} : vector<8x1xi32>
    %c200_i32 = arith.constant 200 : i32
    %1058 = arith.addi %27, %c200_i32 : i32
    %1059 = vector.broadcast %1058 : i32 to vector<8x1xi32>
    %1060 = arith.addi %1057, %1059 : vector<8x1xi32>
    %1061 = arith.sitofp %1060 : vector<8x1xi32> to vector<8x1xf32>
    %cst_85 = arith.constant 1.600000e+01 : f32
    %1062 = vector.broadcast %cst_85 : f32 to vector<8x1xf32>
    %1063 = arith.divf %1061, %1062 : vector<8x1xf32>
    %1064 = math.floor %1063 : vector<8x1xf32>
    %cst_86 = arith.constant 1.600000e+01 : f32
    %1065 = vector.broadcast %cst_86 : f32 to vector<8x1xf32>
    %1066 = arith.mulf %1064, %1065 : vector<8x1xf32>
    %1067 = arith.subf %1061, %1066 : vector<8x1xf32>
    %1068 = vector.broadcast %1064 : vector<8x1xf32> to vector<8x128xf32>
    %1069 = vector.broadcast %10 : vector<1x128xf32> to vector<8x128xf32>
    %1070 = arith.subf %1068, %1069 : vector<8x128xf32>
    %1071 = vector.broadcast %1067 : vector<8x1xf32> to vector<8x128xf32>
    %1072 = vector.broadcast %13 : vector<1x128xf32> to vector<8x128xf32>
    %1073 = arith.subf %1071, %1072 : vector<8x128xf32>
    %1074 = arith.mulf %1070, %1070 : vector<8x128xf32>
    %1075 = arith.mulf %1073, %1073 : vector<8x128xf32>
    %1076 = arith.addf %1074, %1075 : vector<8x128xf32>
    %c200 = arith.constant 200 : index
    %c0_87 = arith.constant 0 : index
    %1077 = vector.load %arg3[%c200, %c0_87] : memref<256x4xf32, #tpu.memory_space<vmem>>, vector<8x4xf32>
    %1078 = vector.extract_strided_slice %1077 {offsets = [0, 0], sizes = [8, 1], strides = [1, 1]} : vector<8x4xf32> to vector<8x1xf32>
    %1079 = vector.broadcast %1078 : vector<8x1xf32> to vector<8x128xf32>
    %1080 = arith.cmpf one, %17, %1079 : vector<8x128xf32>
    %1081 = arith.minimumf %1041, %1076 : vector<8x128xf32>
    %1082 = arith.select %1080, %1081, %1041 : vector<8x128xi1>, vector<8x128xf32>
    %1083 = vector.extract_strided_slice %1077 {offsets = [0, 1], sizes = [8, 1], strides = [1, 1]} : vector<8x4xf32> to vector<8x1xf32>
    %1084 = vector.broadcast %1083 : vector<8x1xf32> to vector<8x128xf32>
    %1085 = arith.cmpf one, %20, %1084 : vector<8x128xf32>
    %1086 = arith.minimumf %1046, %1076 : vector<8x128xf32>
    %1087 = arith.select %1085, %1086, %1046 : vector<8x128xi1>, vector<8x128xf32>
    %1088 = vector.extract_strided_slice %1077 {offsets = [0, 2], sizes = [8, 1], strides = [1, 1]} : vector<8x4xf32> to vector<8x1xf32>
    %1089 = vector.broadcast %1088 : vector<8x1xf32> to vector<8x128xf32>
    %1090 = arith.cmpf one, %23, %1089 : vector<8x128xf32>
    %1091 = arith.minimumf %1051, %1076 : vector<8x128xf32>
    %1092 = arith.select %1090, %1091, %1051 : vector<8x128xi1>, vector<8x128xf32>
    %1093 = vector.extract_strided_slice %1077 {offsets = [0, 3], sizes = [8, 1], strides = [1, 1]} : vector<8x4xf32> to vector<8x1xf32>
    %1094 = vector.broadcast %1093 : vector<8x1xf32> to vector<8x128xf32>
    %1095 = arith.cmpf one, %26, %1094 : vector<8x128xf32>
    %1096 = arith.minimumf %1056, %1076 : vector<8x128xf32>
    %1097 = arith.select %1095, %1096, %1056 : vector<8x128xi1>, vector<8x128xf32>
    %1098 = tpu.iota {dimensions = array<i32: 0>} : vector<8x1xi32>
    %c208_i32 = arith.constant 208 : i32
    %1099 = arith.addi %27, %c208_i32 : i32
    %1100 = vector.broadcast %1099 : i32 to vector<8x1xi32>
    %1101 = arith.addi %1098, %1100 : vector<8x1xi32>
    %1102 = arith.sitofp %1101 : vector<8x1xi32> to vector<8x1xf32>
    %cst_88 = arith.constant 1.600000e+01 : f32
    %1103 = vector.broadcast %cst_88 : f32 to vector<8x1xf32>
    %1104 = arith.divf %1102, %1103 : vector<8x1xf32>
    %1105 = math.floor %1104 : vector<8x1xf32>
    %cst_89 = arith.constant 1.600000e+01 : f32
    %1106 = vector.broadcast %cst_89 : f32 to vector<8x1xf32>
    %1107 = arith.mulf %1105, %1106 : vector<8x1xf32>
    %1108 = arith.subf %1102, %1107 : vector<8x1xf32>
    %1109 = vector.broadcast %1105 : vector<8x1xf32> to vector<8x128xf32>
    %1110 = vector.broadcast %10 : vector<1x128xf32> to vector<8x128xf32>
    %1111 = arith.subf %1109, %1110 : vector<8x128xf32>
    %1112 = vector.broadcast %1108 : vector<8x1xf32> to vector<8x128xf32>
    %1113 = vector.broadcast %13 : vector<1x128xf32> to vector<8x128xf32>
    %1114 = arith.subf %1112, %1113 : vector<8x128xf32>
    %1115 = arith.mulf %1111, %1111 : vector<8x128xf32>
    %1116 = arith.mulf %1114, %1114 : vector<8x128xf32>
    %1117 = arith.addf %1115, %1116 : vector<8x128xf32>
    %c208 = arith.constant 208 : index
    %c0_90 = arith.constant 0 : index
    %1118 = vector.load %arg3[%c208, %c0_90] : memref<256x4xf32, #tpu.memory_space<vmem>>, vector<8x4xf32>
    %1119 = vector.extract_strided_slice %1118 {offsets = [0, 0], sizes = [8, 1], strides = [1, 1]} : vector<8x4xf32> to vector<8x1xf32>
    %1120 = vector.broadcast %1119 : vector<8x1xf32> to vector<8x128xf32>
    %1121 = arith.cmpf one, %17, %1120 : vector<8x128xf32>
    %1122 = arith.minimumf %1082, %1117 : vector<8x128xf32>
    %1123 = arith.select %1121, %1122, %1082 : vector<8x128xi1>, vector<8x128xf32>
    %1124 = vector.extract_strided_slice %1118 {offsets = [0, 1], sizes = [8, 1], strides = [1, 1]} : vector<8x4xf32> to vector<8x1xf32>
    %1125 = vector.broadcast %1124 : vector<8x1xf32> to vector<8x128xf32>
    %1126 = arith.cmpf one, %20, %1125 : vector<8x128xf32>
    %1127 = arith.minimumf %1087, %1117 : vector<8x128xf32>
    %1128 = arith.select %1126, %1127, %1087 : vector<8x128xi1>, vector<8x128xf32>
    %1129 = vector.extract_strided_slice %1118 {offsets = [0, 2], sizes = [8, 1], strides = [1, 1]} : vector<8x4xf32> to vector<8x1xf32>
    %1130 = vector.broadcast %1129 : vector<8x1xf32> to vector<8x128xf32>
    %1131 = arith.cmpf one, %23, %1130 : vector<8x128xf32>
    %1132 = arith.minimumf %1092, %1117 : vector<8x128xf32>
    %1133 = arith.select %1131, %1132, %1092 : vector<8x128xi1>, vector<8x128xf32>
    %1134 = vector.extract_strided_slice %1118 {offsets = [0, 3], sizes = [8, 1], strides = [1, 1]} : vector<8x4xf32> to vector<8x1xf32>
    %1135 = vector.broadcast %1134 : vector<8x1xf32> to vector<8x128xf32>
    %1136 = arith.cmpf one, %26, %1135 : vector<8x128xf32>
    %1137 = arith.minimumf %1097, %1117 : vector<8x128xf32>
    %1138 = arith.select %1136, %1137, %1097 : vector<8x128xi1>, vector<8x128xf32>
    %1139 = tpu.iota {dimensions = array<i32: 0>} : vector<8x1xi32>
    %c216_i32 = arith.constant 216 : i32
    %1140 = arith.addi %27, %c216_i32 : i32
    %1141 = vector.broadcast %1140 : i32 to vector<8x1xi32>
    %1142 = arith.addi %1139, %1141 : vector<8x1xi32>
    %1143 = arith.sitofp %1142 : vector<8x1xi32> to vector<8x1xf32>
    %cst_91 = arith.constant 1.600000e+01 : f32
    %1144 = vector.broadcast %cst_91 : f32 to vector<8x1xf32>
    %1145 = arith.divf %1143, %1144 : vector<8x1xf32>
    %1146 = math.floor %1145 : vector<8x1xf32>
    %cst_92 = arith.constant 1.600000e+01 : f32
    %1147 = vector.broadcast %cst_92 : f32 to vector<8x1xf32>
    %1148 = arith.mulf %1146, %1147 : vector<8x1xf32>
    %1149 = arith.subf %1143, %1148 : vector<8x1xf32>
    %1150 = vector.broadcast %1146 : vector<8x1xf32> to vector<8x128xf32>
    %1151 = vector.broadcast %10 : vector<1x128xf32> to vector<8x128xf32>
    %1152 = arith.subf %1150, %1151 : vector<8x128xf32>
    %1153 = vector.broadcast %1149 : vector<8x1xf32> to vector<8x128xf32>
    %1154 = vector.broadcast %13 : vector<1x128xf32> to vector<8x128xf32>
    %1155 = arith.subf %1153, %1154 : vector<8x128xf32>
    %1156 = arith.mulf %1152, %1152 : vector<8x128xf32>
    %1157 = arith.mulf %1155, %1155 : vector<8x128xf32>
    %1158 = arith.addf %1156, %1157 : vector<8x128xf32>
    %c216 = arith.constant 216 : index
    %c0_93 = arith.constant 0 : index
    %1159 = vector.load %arg3[%c216, %c0_93] : memref<256x4xf32, #tpu.memory_space<vmem>>, vector<8x4xf32>
    %1160 = vector.extract_strided_slice %1159 {offsets = [0, 0], sizes = [8, 1], strides = [1, 1]} : vector<8x4xf32> to vector<8x1xf32>
    %1161 = vector.broadcast %1160 : vector<8x1xf32> to vector<8x128xf32>
    %1162 = arith.cmpf one, %17, %1161 : vector<8x128xf32>
    %1163 = arith.minimumf %1123, %1158 : vector<8x128xf32>
    %1164 = arith.select %1162, %1163, %1123 : vector<8x128xi1>, vector<8x128xf32>
    %1165 = vector.extract_strided_slice %1159 {offsets = [0, 1], sizes = [8, 1], strides = [1, 1]} : vector<8x4xf32> to vector<8x1xf32>
    %1166 = vector.broadcast %1165 : vector<8x1xf32> to vector<8x128xf32>
    %1167 = arith.cmpf one, %20, %1166 : vector<8x128xf32>
    %1168 = arith.minimumf %1128, %1158 : vector<8x128xf32>
    %1169 = arith.select %1167, %1168, %1128 : vector<8x128xi1>, vector<8x128xf32>
    %1170 = vector.extract_strided_slice %1159 {offsets = [0, 2], sizes = [8, 1], strides = [1, 1]} : vector<8x4xf32> to vector<8x1xf32>
    %1171 = vector.broadcast %1170 : vector<8x1xf32> to vector<8x128xf32>
    %1172 = arith.cmpf one, %23, %1171 : vector<8x128xf32>
    %1173 = arith.minimumf %1133, %1158 : vector<8x128xf32>
    %1174 = arith.select %1172, %1173, %1133 : vector<8x128xi1>, vector<8x128xf32>
    %1175 = vector.extract_strided_slice %1159 {offsets = [0, 3], sizes = [8, 1], strides = [1, 1]} : vector<8x4xf32> to vector<8x1xf32>
    %1176 = vector.broadcast %1175 : vector<8x1xf32> to vector<8x128xf32>
    %1177 = arith.cmpf one, %26, %1176 : vector<8x128xf32>
    %1178 = arith.minimumf %1138, %1158 : vector<8x128xf32>
    %1179 = arith.select %1177, %1178, %1138 : vector<8x128xi1>, vector<8x128xf32>
    %1180 = tpu.iota {dimensions = array<i32: 0>} : vector<8x1xi32>
    %c224_i32 = arith.constant 224 : i32
    %1181 = arith.addi %27, %c224_i32 : i32
    %1182 = vector.broadcast %1181 : i32 to vector<8x1xi32>
    %1183 = arith.addi %1180, %1182 : vector<8x1xi32>
    %1184 = arith.sitofp %1183 : vector<8x1xi32> to vector<8x1xf32>
    %cst_94 = arith.constant 1.600000e+01 : f32
    %1185 = vector.broadcast %cst_94 : f32 to vector<8x1xf32>
    %1186 = arith.divf %1184, %1185 : vector<8x1xf32>
    %1187 = math.floor %1186 : vector<8x1xf32>
    %cst_95 = arith.constant 1.600000e+01 : f32
    %1188 = vector.broadcast %cst_95 : f32 to vector<8x1xf32>
    %1189 = arith.mulf %1187, %1188 : vector<8x1xf32>
    %1190 = arith.subf %1184, %1189 : vector<8x1xf32>
    %1191 = vector.broadcast %1187 : vector<8x1xf32> to vector<8x128xf32>
    %1192 = vector.broadcast %10 : vector<1x128xf32> to vector<8x128xf32>
    %1193 = arith.subf %1191, %1192 : vector<8x128xf32>
    %1194 = vector.broadcast %1190 : vector<8x1xf32> to vector<8x128xf32>
    %1195 = vector.broadcast %13 : vector<1x128xf32> to vector<8x128xf32>
    %1196 = arith.subf %1194, %1195 : vector<8x128xf32>
    %1197 = arith.mulf %1193, %1193 : vector<8x128xf32>
    %1198 = arith.mulf %1196, %1196 : vector<8x128xf32>
    %1199 = arith.addf %1197, %1198 : vector<8x128xf32>
    %c224 = arith.constant 224 : index
    %c0_96 = arith.constant 0 : index
    %1200 = vector.load %arg3[%c224, %c0_96] : memref<256x4xf32, #tpu.memory_space<vmem>>, vector<8x4xf32>
    %1201 = vector.extract_strided_slice %1200 {offsets = [0, 0], sizes = [8, 1], strides = [1, 1]} : vector<8x4xf32> to vector<8x1xf32>
    %1202 = vector.broadcast %1201 : vector<8x1xf32> to vector<8x128xf32>
    %1203 = arith.cmpf one, %17, %1202 : vector<8x128xf32>
    %1204 = arith.minimumf %1164, %1199 : vector<8x128xf32>
    %1205 = arith.select %1203, %1204, %1164 : vector<8x128xi1>, vector<8x128xf32>
    %1206 = vector.extract_strided_slice %1200 {offsets = [0, 1], sizes = [8, 1], strides = [1, 1]} : vector<8x4xf32> to vector<8x1xf32>
    %1207 = vector.broadcast %1206 : vector<8x1xf32> to vector<8x128xf32>
    %1208 = arith.cmpf one, %20, %1207 : vector<8x128xf32>
    %1209 = arith.minimumf %1169, %1199 : vector<8x128xf32>
    %1210 = arith.select %1208, %1209, %1169 : vector<8x128xi1>, vector<8x128xf32>
    %1211 = vector.extract_strided_slice %1200 {offsets = [0, 2], sizes = [8, 1], strides = [1, 1]} : vector<8x4xf32> to vector<8x1xf32>
    %1212 = vector.broadcast %1211 : vector<8x1xf32> to vector<8x128xf32>
    %1213 = arith.cmpf one, %23, %1212 : vector<8x128xf32>
    %1214 = arith.minimumf %1174, %1199 : vector<8x128xf32>
    %1215 = arith.select %1213, %1214, %1174 : vector<8x128xi1>, vector<8x128xf32>
    %1216 = vector.extract_strided_slice %1200 {offsets = [0, 3], sizes = [8, 1], strides = [1, 1]} : vector<8x4xf32> to vector<8x1xf32>
    %1217 = vector.broadcast %1216 : vector<8x1xf32> to vector<8x128xf32>
    %1218 = arith.cmpf one, %26, %1217 : vector<8x128xf32>
    %1219 = arith.minimumf %1179, %1199 : vector<8x128xf32>
    %1220 = arith.select %1218, %1219, %1179 : vector<8x128xi1>, vector<8x128xf32>
    %1221 = tpu.iota {dimensions = array<i32: 0>} : vector<8x1xi32>
    %c232_i32 = arith.constant 232 : i32
    %1222 = arith.addi %27, %c232_i32 : i32
    %1223 = vector.broadcast %1222 : i32 to vector<8x1xi32>
    %1224 = arith.addi %1221, %1223 : vector<8x1xi32>
    %1225 = arith.sitofp %1224 : vector<8x1xi32> to vector<8x1xf32>
    %cst_97 = arith.constant 1.600000e+01 : f32
    %1226 = vector.broadcast %cst_97 : f32 to vector<8x1xf32>
    %1227 = arith.divf %1225, %1226 : vector<8x1xf32>
    %1228 = math.floor %1227 : vector<8x1xf32>
    %cst_98 = arith.constant 1.600000e+01 : f32
    %1229 = vector.broadcast %cst_98 : f32 to vector<8x1xf32>
    %1230 = arith.mulf %1228, %1229 : vector<8x1xf32>
    %1231 = arith.subf %1225, %1230 : vector<8x1xf32>
    %1232 = vector.broadcast %1228 : vector<8x1xf32> to vector<8x128xf32>
    %1233 = vector.broadcast %10 : vector<1x128xf32> to vector<8x128xf32>
    %1234 = arith.subf %1232, %1233 : vector<8x128xf32>
    %1235 = vector.broadcast %1231 : vector<8x1xf32> to vector<8x128xf32>
    %1236 = vector.broadcast %13 : vector<1x128xf32> to vector<8x128xf32>
    %1237 = arith.subf %1235, %1236 : vector<8x128xf32>
    %1238 = arith.mulf %1234, %1234 : vector<8x128xf32>
    %1239 = arith.mulf %1237, %1237 : vector<8x128xf32>
    %1240 = arith.addf %1238, %1239 : vector<8x128xf32>
    %c232 = arith.constant 232 : index
    %c0_99 = arith.constant 0 : index
    %1241 = vector.load %arg3[%c232, %c0_99] : memref<256x4xf32, #tpu.memory_space<vmem>>, vector<8x4xf32>
    %1242 = vector.extract_strided_slice %1241 {offsets = [0, 0], sizes = [8, 1], strides = [1, 1]} : vector<8x4xf32> to vector<8x1xf32>
    %1243 = vector.broadcast %1242 : vector<8x1xf32> to vector<8x128xf32>
    %1244 = arith.cmpf one, %17, %1243 : vector<8x128xf32>
    %1245 = arith.minimumf %1205, %1240 : vector<8x128xf32>
    %1246 = arith.select %1244, %1245, %1205 : vector<8x128xi1>, vector<8x128xf32>
    %1247 = vector.extract_strided_slice %1241 {offsets = [0, 1], sizes = [8, 1], strides = [1, 1]} : vector<8x4xf32> to vector<8x1xf32>
    %1248 = vector.broadcast %1247 : vector<8x1xf32> to vector<8x128xf32>
    %1249 = arith.cmpf one, %20, %1248 : vector<8x128xf32>
    %1250 = arith.minimumf %1210, %1240 : vector<8x128xf32>
    %1251 = arith.select %1249, %1250, %1210 : vector<8x128xi1>, vector<8x128xf32>
    %1252 = vector.extract_strided_slice %1241 {offsets = [0, 2], sizes = [8, 1], strides = [1, 1]} : vector<8x4xf32> to vector<8x1xf32>
    %1253 = vector.broadcast %1252 : vector<8x1xf32> to vector<8x128xf32>
    %1254 = arith.cmpf one, %23, %1253 : vector<8x128xf32>
    %1255 = arith.minimumf %1215, %1240 : vector<8x128xf32>
    %1256 = arith.select %1254, %1255, %1215 : vector<8x128xi1>, vector<8x128xf32>
    %1257 = vector.extract_strided_slice %1241 {offsets = [0, 3], sizes = [8, 1], strides = [1, 1]} : vector<8x4xf32> to vector<8x1xf32>
    %1258 = vector.broadcast %1257 : vector<8x1xf32> to vector<8x128xf32>
    %1259 = arith.cmpf one, %26, %1258 : vector<8x128xf32>
    %1260 = arith.minimumf %1220, %1240 : vector<8x128xf32>
    %1261 = arith.select %1259, %1260, %1220 : vector<8x128xi1>, vector<8x128xf32>
    %1262 = tpu.iota {dimensions = array<i32: 0>} : vector<8x1xi32>
    %c240_i32 = arith.constant 240 : i32
    %1263 = arith.addi %27, %c240_i32 : i32
    %1264 = vector.broadcast %1263 : i32 to vector<8x1xi32>
    %1265 = arith.addi %1262, %1264 : vector<8x1xi32>
    %1266 = arith.sitofp %1265 : vector<8x1xi32> to vector<8x1xf32>
    %cst_100 = arith.constant 1.600000e+01 : f32
    %1267 = vector.broadcast %cst_100 : f32 to vector<8x1xf32>
    %1268 = arith.divf %1266, %1267 : vector<8x1xf32>
    %1269 = math.floor %1268 : vector<8x1xf32>
    %cst_101 = arith.constant 1.600000e+01 : f32
    %1270 = vector.broadcast %cst_101 : f32 to vector<8x1xf32>
    %1271 = arith.mulf %1269, %1270 : vector<8x1xf32>
    %1272 = arith.subf %1266, %1271 : vector<8x1xf32>
    %1273 = vector.broadcast %1269 : vector<8x1xf32> to vector<8x128xf32>
    %1274 = vector.broadcast %10 : vector<1x128xf32> to vector<8x128xf32>
    %1275 = arith.subf %1273, %1274 : vector<8x128xf32>
    %1276 = vector.broadcast %1272 : vector<8x1xf32> to vector<8x128xf32>
    %1277 = vector.broadcast %13 : vector<1x128xf32> to vector<8x128xf32>
    %1278 = arith.subf %1276, %1277 : vector<8x128xf32>
    %1279 = arith.mulf %1275, %1275 : vector<8x128xf32>
    %1280 = arith.mulf %1278, %1278 : vector<8x128xf32>
    %1281 = arith.addf %1279, %1280 : vector<8x128xf32>
    %c240 = arith.constant 240 : index
    %c0_102 = arith.constant 0 : index
    %1282 = vector.load %arg3[%c240, %c0_102] : memref<256x4xf32, #tpu.memory_space<vmem>>, vector<8x4xf32>
    %1283 = vector.extract_strided_slice %1282 {offsets = [0, 0], sizes = [8, 1], strides = [1, 1]} : vector<8x4xf32> to vector<8x1xf32>
    %1284 = vector.broadcast %1283 : vector<8x1xf32> to vector<8x128xf32>
    %1285 = arith.cmpf one, %17, %1284 : vector<8x128xf32>
    %1286 = arith.minimumf %1246, %1281 : vector<8x128xf32>
    %1287 = arith.select %1285, %1286, %1246 : vector<8x128xi1>, vector<8x128xf32>
    %1288 = vector.extract_strided_slice %1282 {offsets = [0, 1], sizes = [8, 1], strides = [1, 1]} : vector<8x4xf32> to vector<8x1xf32>
    %1289 = vector.broadcast %1288 : vector<8x1xf32> to vector<8x128xf32>
    %1290 = arith.cmpf one, %20, %1289 : vector<8x128xf32>
    %1291 = arith.minimumf %1251, %1281 : vector<8x128xf32>
    %1292 = arith.select %1290, %1291, %1251 : vector<8x128xi1>, vector<8x128xf32>
    %1293 = vector.extract_strided_slice %1282 {offsets = [0, 2], sizes = [8, 1], strides = [1, 1]} : vector<8x4xf32> to vector<8x1xf32>
    %1294 = vector.broadcast %1293 : vector<8x1xf32> to vector<8x128xf32>
    %1295 = arith.cmpf one, %23, %1294 : vector<8x128xf32>
    %1296 = arith.minimumf %1256, %1281 : vector<8x128xf32>
    %1297 = arith.select %1295, %1296, %1256 : vector<8x128xi1>, vector<8x128xf32>
    %1298 = vector.extract_strided_slice %1282 {offsets = [0, 3], sizes = [8, 1], strides = [1, 1]} : vector<8x4xf32> to vector<8x1xf32>
    %1299 = vector.broadcast %1298 : vector<8x1xf32> to vector<8x128xf32>
    %1300 = arith.cmpf one, %26, %1299 : vector<8x128xf32>
    %1301 = arith.minimumf %1261, %1281 : vector<8x128xf32>
    %1302 = arith.select %1300, %1301, %1261 : vector<8x128xi1>, vector<8x128xf32>
    %1303 = tpu.iota {dimensions = array<i32: 0>} : vector<8x1xi32>
    %c248_i32 = arith.constant 248 : i32
    %1304 = arith.addi %27, %c248_i32 : i32
    %1305 = vector.broadcast %1304 : i32 to vector<8x1xi32>
    %1306 = arith.addi %1303, %1305 : vector<8x1xi32>
    %1307 = arith.sitofp %1306 : vector<8x1xi32> to vector<8x1xf32>
    %cst_103 = arith.constant 1.600000e+01 : f32
    %1308 = vector.broadcast %cst_103 : f32 to vector<8x1xf32>
    %1309 = arith.divf %1307, %1308 : vector<8x1xf32>
    %1310 = math.floor %1309 : vector<8x1xf32>
    %cst_104 = arith.constant 1.600000e+01 : f32
    %1311 = vector.broadcast %cst_104 : f32 to vector<8x1xf32>
    %1312 = arith.mulf %1310, %1311 : vector<8x1xf32>
    %1313 = arith.subf %1307, %1312 : vector<8x1xf32>
    %1314 = vector.broadcast %1310 : vector<8x1xf32> to vector<8x128xf32>
    %1315 = vector.broadcast %10 : vector<1x128xf32> to vector<8x128xf32>
    %1316 = arith.subf %1314, %1315 : vector<8x128xf32>
    %1317 = vector.broadcast %1313 : vector<8x1xf32> to vector<8x128xf32>
    %1318 = vector.broadcast %13 : vector<1x128xf32> to vector<8x128xf32>
    %1319 = arith.subf %1317, %1318 : vector<8x128xf32>
    %1320 = arith.mulf %1316, %1316 : vector<8x128xf32>
    %1321 = arith.mulf %1319, %1319 : vector<8x128xf32>
    %1322 = arith.addf %1320, %1321 : vector<8x128xf32>
    %c248 = arith.constant 248 : index
    %c0_105 = arith.constant 0 : index
    %1323 = vector.load %arg3[%c248, %c0_105] : memref<256x4xf32, #tpu.memory_space<vmem>>, vector<8x4xf32>
    %1324 = vector.extract_strided_slice %1323 {offsets = [0, 0], sizes = [8, 1], strides = [1, 1]} : vector<8x4xf32> to vector<8x1xf32>
    %1325 = vector.broadcast %1324 : vector<8x1xf32> to vector<8x128xf32>
    %1326 = arith.cmpf one, %17, %1325 : vector<8x128xf32>
    %1327 = arith.minimumf %1287, %1322 : vector<8x128xf32>
    %1328 = arith.select %1326, %1327, %1287 : vector<8x128xi1>, vector<8x128xf32>
    %1329 = vector.extract_strided_slice %1323 {offsets = [0, 1], sizes = [8, 1], strides = [1, 1]} : vector<8x4xf32> to vector<8x1xf32>
    %1330 = vector.broadcast %1329 : vector<8x1xf32> to vector<8x128xf32>
    %1331 = arith.cmpf one, %20, %1330 : vector<8x128xf32>
    %1332 = arith.minimumf %1292, %1322 : vector<8x128xf32>
    %1333 = arith.select %1331, %1332, %1292 : vector<8x128xi1>, vector<8x128xf32>
    %1334 = vector.extract_strided_slice %1323 {offsets = [0, 2], sizes = [8, 1], strides = [1, 1]} : vector<8x4xf32> to vector<8x1xf32>
    %1335 = vector.broadcast %1334 : vector<8x1xf32> to vector<8x128xf32>
    %1336 = arith.cmpf one, %23, %1335 : vector<8x128xf32>
    %1337 = arith.minimumf %1297, %1322 : vector<8x128xf32>
    %1338 = arith.select %1336, %1337, %1297 : vector<8x128xi1>, vector<8x128xf32>
    %1339 = vector.extract_strided_slice %1323 {offsets = [0, 3], sizes = [8, 1], strides = [1, 1]} : vector<8x4xf32> to vector<8x1xf32>
    %1340 = vector.broadcast %1339 : vector<8x1xf32> to vector<8x128xf32>
    %1341 = arith.cmpf one, %26, %1340 : vector<8x128xf32>
    %1342 = arith.minimumf %1302, %1322 : vector<8x128xf32>
    %1343 = arith.select %1341, %1342, %1302 : vector<8x128xi1>, vector<8x128xf32>
    %cst_106 = arith.constant dense<0x7F800000> : vector<128xf32>
    %1344 = vector.multi_reduction <minimumf>, %1328, %cst_106 [0] : vector<8x128xf32> to vector<128xf32>
    %1345 = vector.shape_cast %1344 : vector<128xf32> to vector<1x128xf32>
    %cst_107 = arith.constant dense<0x7F800000> : vector<128xf32>
    %1346 = vector.multi_reduction <minimumf>, %1333, %cst_107 [0] : vector<8x128xf32> to vector<128xf32>
    %1347 = vector.shape_cast %1346 : vector<128xf32> to vector<1x128xf32>
    %cst_108 = arith.constant dense<0x7F800000> : vector<128xf32>
    %1348 = vector.multi_reduction <minimumf>, %1338, %cst_108 [0] : vector<8x128xf32> to vector<128xf32>
    %1349 = vector.shape_cast %1348 : vector<128xf32> to vector<1x128xf32>
    %cst_109 = arith.constant dense<0x7F800000> : vector<128xf32>
    %1350 = vector.multi_reduction <minimumf>, %1343, %cst_109 [0] : vector<8x128xf32> to vector<128xf32>
    %1351 = vector.shape_cast %1350 : vector<128xf32> to vector<1x128xf32>
    %1352 = tpu.concatenate %1345, %1347, %1349, %1351 in 0 : vector<1x128xf32>, vector<1x128xf32>, vector<1x128xf32>, vector<1x128xf32> -> vector<4x128xf32>
    %c0_110 = arith.constant 0 : index
    %c0_111 = arith.constant 0 : index
    %1353 = vector.load %arg4[%c0_110, %c0_111] : memref<4x128xf32, #tpu.memory_space<vmem>>, vector<4x128xf32>
    %1354 = arith.minimumf %1353, %1352 : vector<4x128xf32>
    %c0_112 = arith.constant 0 : index
    %c0_113 = arith.constant 0 : index
    %1355 = vector.load %arg4[%c0_112, %c0_113] : memref<4x128xf32, #tpu.memory_space<vmem>>, vector<4x128xf32>
    tpu.vector_store %arg4[%c0_112, %c0_113], %1354 {strides = array<i32>} : memref<4x128xf32, #tpu.memory_space<vmem>>, vector<4x128xf32>,
    %c0_i32_114 = arith.constant 0 : i32
    %1356 = arith.cmpi eq, %arg1, %c0_i32_114 : i32
    %1357 = arith.extui %1356 : i1 to i32
    %c0_i32_115 = arith.constant 0 : i32
    %1358 = arith.cmpi ne, %1357, %c0_i32_115 : i32
    scf.if %1358 {
      %c0_116 = arith.constant 0 : index
      %c0_117 = arith.constant 0 : index
      %1359 = vector.load %arg4[%c0_116, %c0_117] : memref<4x128xf32, #tpu.memory_space<vmem>>, vector<4x128xf32>
      %cst_118 = arith.constant 2.000000e+00 : f32
      %1360 = vector.broadcast %cst_118 : f32 to vector<4x128xf32>
      %1361 = arith.mulf %1360, %14 : vector<4x128xf32>
      %cst_119 = arith.constant 1.000000e+00 : f32
      %1362 = vector.broadcast %cst_119 : f32 to vector<4x128xf32>
      %1363 = arith.subf %1361, %1362 : vector<4x128xf32>
      %1364 = math.sqrt %1359 : vector<4x128xf32>
      %1365 = arith.mulf %1363, %1364 : vector<4x128xf32>
      %cst_120 = arith.constant 5.000000e+29 : f32
      %1366 = vector.broadcast %cst_120 : f32 to vector<4x128xf32>
      %1367 = arith.cmpf oge, %1359, %1366 : vector<4x128xf32>
      %cst_121 = arith.constant 0.000000e+00 : f32
      %1368 = vector.broadcast %cst_121 : f32 to vector<4x128xf32>
      %1369 = arith.select %1367, %1368, %1365 : vector<4x128xi1>, vector<4x128xf32>
      %c0_122 = arith.constant 0 : index
      %c0_123 = arith.constant 0 : index
      %1370 = vector.load %arg4[%c0_122, %c0_123] : memref<4x128xf32, #tpu.memory_space<vmem>>, vector<4x128xf32>
      tpu.vector_store %arg4[%c0_122, %c0_123], %1369 {strides = array<i32>} : memref<4x128xf32, #tpu.memory_space<vmem>>, vector<4x128xf32>,
    } else {
    }
    return
  }
  func.func @transform_0(%arg0: i32, %arg1: i32) -> (i32, i32) {
    %c0_i32 = arith.constant 0 : i32
    %c0_i32_0 = arith.constant 0 : i32
    return %c0_i32, %arg0 : i32, i32
  }
  func.func @transform_1(%arg0: i32, %arg1: i32) -> (i32, i32) {
    %c0_i32 = arith.constant 0 : i32
    %c0_i32_0 = arith.constant 0 : i32
    return %arg1, %c0_i32 : i32, i32
  }
  func.func @transform_2(%arg0: i32, %arg1: i32) -> (i32, i32) {
    %c0_i32 = arith.constant 0 : i32
    %c0_i32_0 = arith.constant 0 : i32
    return %c0_i32, %arg0 : i32, i32
  }
}

</mosaic_0001>

<bundles_post_ra>
// kernel: tpu_custom_call.1
= control target key start
LH: loop header
LB: loop body
LE: loop exit
PB: predicated region body
PF: predicated region fallthrough
CT: control target
= control target key end

     0   :  { %7 = vsyncpa [#allocation3], 0  ;;  %s3123_s0 = inlined_call_operand.vmem [shape: f32[4,256], index: 0, kind: input, shape index: {}]   ;;  %s3124_s1 = inlined_call_operand.vmem [shape: f32[256,4], index: 1, kind: input, shape index: {}]   ;;  %s3125_s2 = inlined_call_operand.hbm [shape: f32[4,256], index: 2, kind: output, shape index: {}]  }
   0x1   :  { %9 = vsyncpa [#allocation3 + $0x1], 0  ;;  %s2002_s9 = smov 0   ;;  %s2004_s10 = smov 0  }
   0x2   :  { %s2006_s11 = smov 0   ;;  %s2008_s12 = smov 0  }
   0x3   :  { %s2010_s13 = smov 0   ;;  %s2012_s14 = smov 0  }
   0x4 LB: > { %s1727_s15 = sadd.s32 4294967295, %s1979_s14   ;;  %s1728_s16 = sadd.s32 4294967294, %s1979_s14   ;;  %s1979_s14 = sphi %s2012_s14, %s15_s14   ;;  %s1975_s13 = sphi %s2010_s13, %s3170_s13   ;;  %s1971_s12 = sphi %s2008_s12, %s3169_s12   ;;  %s1967_s11 = sphi %s2006_s11, %s3168_s11   ;;  %s1963_s10 = sphi %s2004_s10, %s3167_s10   ;;  %s1959_s9 = sphi %s2002_s9, %s3166_s9  }
   0x5   : > { %s27_s17 = sadd.s32 1, %s1975_s13  ;;  %s86_s18 = sadd.s32 1, %s1967_s11 }
   0x6   : > { %p29_p0 = scmp.ge.s32.totalorder %s27_s17, 2  ;;  %p96_p1 = scmp.ne.s32.totalorder %s1967_s11, %s1963_s10 }
   0x7   : > { %p97_p2 = scmp.eq.s32.totalorder %s1727_s15, 1  ;;  %p102_p3 = scmp.ne.s32.totalorder %s1963_s10, %s1959_s9 }
   0x8   : > { %s3172_s17 = smov (%p29_p0, %s27_s17), 0  ;;  %p103_p5 = scmp.eq.s32.totalorder %s1728_s16, 1 }
   0x9   : > { %p2042_p4 = por %p97_p2, %p96_p1  ;;  %s83_s20 = ssub.s32 %s1975_s13, %s3172_s17 }
   0xa   : > { %p1732_p6 = scmp.ge.s32.totalorder %s1979_s14, 1  ;;  %p84_p7 = scmp.eq.s32.totalorder %s83_s20, 0 }
   0xb   : > { %p2049_p8 = por %p103_p5, %p102_p3  ;;  %p137_p9 = scmp.lt.s32.totalorder %s1979_s14, 3 }
   0xc   : > { %s2055_s22 = scalar_select %p84_p7, %s1967_s11, %s86_s18  }
   0xd   : > { %p138_p10 = pnand %p1732_p6, %p137_p9 }
   0xf   : > { %141 = sbr.rel (%p138_p10) target bundleno = 625 (0x271), region = 28 }
  0x16   : > { %v304_v0 = vld [vmem:[%s3124_s1 + $0x10] sm:$0xff]  ;;  %v221_v1 = vld [vmem:[%s3124_s1] sm:$0xff]  ;;  %v3132_v2 = vmov 2   ;;  %v2068_v3 = vld [vmem:[%s3124_s1 + $0x28] sm:$0xff]  ;;  %v3128_v4 = vmov 3   ;;  %v3126_v7 = vmov 0   ;;  %v178_v23 = vlaneseq }
  0x17   : > { %1807 = vset.pattern.permute.xlu0 %v3132_v2  ;;  %1801 = vset.pattern.permute.xlu1 %v3132_v2  ;;  %v2075_v5 = vld [vmem:[%s3124_s1 + $0x40] sm:$0xff]  ;;  %v2080_v6 = vld [vmem:[%s3124_s1 + $0x8] sm:$0xff]  ;;  %v3130_v8 = vmov 1   ;;  %v347_v9 = vld [vmem:[%s3124_s1 + $0x18] sm:$0xff]  ;;  %s1735_s25 = sshll.u32 %s1971_s12, 7  ;;  %p163_p11 = scmp.lt.s32.totalorder %s1971_s12, 1 }
  0x18   : > { %321 = vperm.xlu0 %1807, %v304_v0   ;;  %237 = vperm.xlu1 %1801, %v221_v1   ;;  %v476_v10 = vld [vmem:[%s3124_s1 + $0x30] sm:$0xff]  ;;  %v2100_v11 = vld [vmem:[%s3124_s1 + $0x48] sm:$0xff]  ;;  %v2107_v12 = vld [vmem:[%s3124_s1 + $0x60] sm:$0xff]  ;;  %v179_v24 = vand.u32 127, %v178_v23  ;;  %v181_v25 = vstv %s1735_s25  ;;  %v2187_v27 = vshrl.u32 %v178_v23, 7 }
  0x19   : > { %v2114_v13 = vld [vmem:[%s3124_s1 + $0x78] sm:$0xff]  ;;  %v2120_v14 = vld [vmem:[%s3124_s1 + $0x90] sm:$0xff]  ;;  %v390_v15 = vld [vmem:[%s3124_s1 + $0x20] sm:$0xff]  ;;  %s164_s4 = scalar_select %p163_p11, %s1971_s12, 1 }
  0x1a   : > { %v519_v16 = vld [vmem:[%s3124_s1 + $0x38] sm:$0xff]  ;;  %v2137_v17 = vld [vmem:[%s3124_s1 + $0x50] sm:$0xff]  ;;  %v2144_v18 = vld [vmem:[%s3124_s1 + $0x68] sm:$0xff]  ;;  %v182_v26 = vadd.s32 %v181_v25, %v179_v24  ;;  %v211_v29 = vcvt.s32.f32 %v2187_v27  ;;  %v250_v30 = vadd.s32 8, %v2187_v27  ;;  %v293_v37 = vadd.s32 16, %v2187_v27 }
  0x1b   : > { %v2151_v19 = vld [vmem:[%s3124_s1 + $0x80] sm:$0xff]  ;;  %v2159_v20 = vld [vmem:[%s3124_s1 + $0x98] sm:$0xff]  ;;  %v2167_v21 = vld [vmem:[%s3124_s1 + $0xb0] sm:$0xff]  ;;  %v336_v44 = vadd.s32 24, %v2187_v27  ;;  %s1734_s7 = sshll.u32 %s164_s4, 2  ;;  %s160_s4 = sand.u32 1, %s1963_s10  }
  0x1c   : > { %450 = vperm.xlu0 %1807, %v2068_v3   ;;  %1802 = vset.pattern.permute.xlu1 %v3128_v4  ;;  %v1293_v22 = vld [vmem:[%s3124_s1 + $0xc8] sm:$0xff]  ;;  %v183_v28 = vcvt.s32.f32 %v182_v26  ;;  %v212_v32 = vmul.f32 0.0625, %v211_v29  ;;  %v251_v33 = vcvt.s32.f32 %v250_v30  ;;  %v2203_v36 = vld [vmem:[%s3124_s1 + $0xe0] sm:$0xff]  ;;  %v294_v41 = vcvt.s32.f32 %v293_v37  ;;  %v2213_v43 = vld [vmem:[%s3124_s1 + $0x58] sm:$0xff]  ;;  %s2251_s16 = scalar_lea.vmem %s3123_s0, %s1734_s7  ;;  %s1733_s5 = sshll.u32 %s160_s4, 2 }
  0x1d   : > { %243 = vperm.xlu1 %1802, %v221_v1   ;;  %v337_v49 = vcvt.s32.f32 %v336_v44  ;;  %v2226_v50 = vld [vmem:[%s3124_s1 + $0x70] sm:$0xff]  ;;  %v2240_v58 = vld [vmem:[%s3124_s1 + $0x88] sm:$0xff]  ;;  %s2886_s6 = scalar_lea.vmem [#allocation2], %s1733_s5  ;;  %s1738_s7 = sshll.u32 %s1971_s12, 6 }
  0x1e   : > { %v185_v31 = vmul.f32 0.0625, %v183_v28  ;;  %v213_v35 = vfloor.f32 %v212_v32  ;;  %v252_v38 = vmul.f32 0.0625, %v251_v33  ;;  %v295_v47 = vmul.f32 0.0625, %v294_v41  ;;  %s1645_s8 = sshll.u32 %s2886_s6, 4  ;;  %s1632_s20 = scalar_lea.sflag [#allocation3], %s160_s4  ;;  %s3075_s8 = int_to_ptr.vmem [resolvable:$true] %s1645_s8 }
  0x1f   : > { %v338_v57 = vmul.f32 0.0625, %v337_v49  ;;  %s1901_s23 = scalar_lea.vmem %s3075_s8, 64  ;;  %s1986_s12 = smov [#allocation2]  }
  0x20   : > { %579 = vperm.xlu0 %1807, %v2075_v5   ;;  %v2198_v34 = vfloor.f32 %v185_v31  ;;  %v214_v40 = vmul.f32 16.0, %v213_v35  ;;  %v253_v42 = vfloor.f32 %v252_v38  ;;  %v296_v55 = vfloor.f32 %v295_v47  ;;  %p1902_p12 = scmp.ne.s32.totalorder %s3075_s8, %s1901_s23  ;;  %s1905_s24 = sshll.u32 %s1986_s12, 4  ;;  %s1906_s24 = int_to_ptr.vmem [resolvable:$false] %s1905_s24 }
  0x21   : > { %1803 = vset.pattern.permute.xlu1 %v3126_v7  ;;  %s1907_s25 = scalar_lea.vmem %s1906_s24, 128  ;;  %p1908_p1 = scmp.lt.s32.totalorder %s3075_s8, %s1906_s24 }
  0x22   : > { %264 = vperm.xlu1 %1803, %v2080_v6   ;;  %v187_v39 = vmul.f32 16.0, %v2198_v34  ;;  %v215_v46 = vsub.f32 %v211_v29, %v214_v40  ;;  %v254_v48 = vmul.f32 16.0, %v253_v42  ;;  %v216_v53 = vsub.f32 %v213_v35, %v2198_v34  ;;  %p1903_p13 = pnand %p1902_p12, %p2042_p4  ;;  %p1909_p2 = scmp.lt.s32.totalorder %s1907_s25, %s1901_s23 }
  0x23   : > { %v297_v63 = vmul.f32 16.0, %v296_v55  ;;  %v299_v29 = vsub.f32 %v296_v55, %v2198_v34 }
  0x24   : > { %1824 = vset.pattern.permute.xlu0 %v3130_v8  ;;  %v2219_v45 = vsub.f32 %v183_v28, %v187_v39  ;;  %v255_v56 = vsub.f32 %v251_v33, %v254_v48  ;;  %v218_v60 = vmul.f32 %v216_v53, %v216_v53  ;;  %v1336_v33 = vld [vmem:[%s3124_s1 + $0xd0] sm:$0xff]  ;;  %p1904_p0 = pneg %p1903_p13  ;;  %p1910_p3 = por %p1909_p2, %p1908_p1 }
  0x25   : > { %231 = vperm.xlu0 %1824, %v221_v1   ;;  %v301_v39 = vmul.f32 %v299_v29, %v299_v29 }
  0x26   : > { %1804 = vset.pattern.permute.xlu1 %v3132_v2  ;;  %v217_v54 = vsub.f32 %v215_v46, %v2219_v45  ;;  %v1465_v46 = vld [vmem:[%s3124_s1 + $0xe8] sm:$0xff]  ;;  %p1911_p5 = pnand %p1910_p3, %p1904_p0 }
  0x27   : > { %278 = vperm.xlu1 %1804, %v2080_v6  }
  0x28   : > { %v219_v61 = vmul.f32 %v217_v54, %v217_v54  ;;  %v379_v54 = vadd.s32 32, %v2187_v27 }
  0x29   : > { %271 = vperm.xlu0 %1824, %v2080_v6  }
  0x2b   : > { %1805 = vset.pattern.permute.xlu1 %v3126_v7 }
  0x2c   : > { %307 = vperm.xlu1 %1805, %v304_v0  }
  0x2d   : > { %357 = vperm.xlu0 %1824, %v347_v9  }
  0x30   : > { %1806 = vset.pattern.permute.xlu1 %v3130_v8 }
  0x31   : > { %486 = vperm.xlu0 %1824, %v476_v10   ;;  %314 = vperm.xlu1 %1806, %v304_v0  }
  0x35   : > { %615 = vperm.xlu0 %1824, %v2100_v11   ;;  %1808 = vset.pattern.permute.xlu1 %v3128_v4 }
  0x36   : > { %328 = vperm.xlu1 %1808, %v304_v0   ;;  %v256_v0 = vsub.f32 %v253_v42, %v2198_v34 }
  0x39   : > { %744 = vperm.xlu0 %1824, %v2107_v12  }
  0x3a   : > { %1809 = vset.pattern.permute.xlu1 %v3126_v7 }
  0x3b   : > { %350 = vperm.xlu1 %1809, %v347_v9  }
  0x3d   : > { %873 = vperm.xlu0 %1824, %v2114_v13  }
  0x3f   : > { %1810 = vset.pattern.permute.xlu1 %v3132_v2 }
  0x40   : > { %364 = vperm.xlu1 %1810, %v347_v9  }
  0x41   : > { %1002 = vperm.xlu0 %1824, %v2120_v14  }
  0x44   : > { %1811 = vset.pattern.permute.xlu1 %v3128_v4 }
  0x45   : > { %1851 = vset.pattern.permute.xlu0 %v3126_v7  ;;  %371 = vperm.xlu1 %1811, %v347_v9  }
  0x46   : > { %224 = vperm.xlu0 %1851, %v221_v1   ;;  %v257_v1 = vsub.f32 %v255_v56, %v2219_v45 }
  0x49   : > { %1812 = vset.pattern.permute.xlu1 %v3130_v8 }
  0x4a   : > { %393 = vperm.xlu0 %1851, %v390_v15   ;;  %400 = vperm.xlu1 %1812, %v390_v15  }
  0x4e   : > { %522 = vperm.xlu0 %1851, %v519_v16   ;;  %1813 = vset.pattern.permute.xlu1 %v3132_v2 }
  0x4f   : > { %407 = vperm.xlu1 %1813, %v390_v15  }
  0x52   : > { %651 = vperm.xlu0 %1851, %v2137_v17  }
  0x53   : > { %1814 = vset.pattern.permute.xlu1 %v3126_v7 }
  0x54   : > { %436 = vperm.xlu1 %1814, %v2068_v3  }
  0x56   : > { %780 = vperm.xlu0 %1851, %v2144_v18  }
  0x58   : > { %1815 = vset.pattern.permute.xlu1 %v3130_v8 }
  0x59   : > { %443 = vperm.xlu1 %1815, %v2068_v3  }
  0x5a   : > { %909 = vperm.xlu0 %1851, %v2151_v19  }
  0x5d   : > { %1816 = vset.pattern.permute.xlu1 %v3128_v4 }
  0x5e   : > { %1038 = vperm.xlu0 %1851, %v2159_v20   ;;  %457 = vperm.xlu1 %1816, %v2068_v3   ;;  %v196_v3 = vsub.s32 1, %v2187_v27 }
  0x62   : > { %1167 = vperm.xlu0 %1851, %v2167_v21   ;;  %1817 = vset.pattern.permute.xlu1 %v3126_v7 }
  0x63   : > { %479 = vperm.xlu1 %1817, %v476_v10  }
  0x66   : > { %1296 = vperm.xlu0 %1851, %v1293_v22  }
  0x67   : > { %1818 = vset.pattern.permute.xlu1 %v3132_v2 }
  0x68   : > { %493 = vperm.xlu1 %1818, %v476_v10  }
  0x6a   : > { %1870 = vset.pattern.permute.xlu0 %v3128_v4 }
  0x6b   : > { %285 = vperm.xlu0 %1870, %v2080_v6   ;;  %v2259_v6 = vld [vmem:[%s3124_s1 + $0xa0] sm:$0xff] }
  0x6c   : > { %1819 = vset.pattern.permute.xlu1 %v3128_v4 }
  0x6d   : > { %500 = vperm.xlu1 %1819, %v476_v10   ;;  %v2266_v10 = vld [vmem:[%s2251_s16] sm:$0xf] }
  0x6e   : > { %v2272_v24 = vrot.slane %v2266_v10, %v196_v3 }
  0x6f   : > { %414 = vperm.xlu0 %1870, %v390_v15   ;;  %v298_v15 = vsub.f32 %v294_v41, %v297_v63  ;;  %v422_v63 = vadd.s32 40, %v2187_v27 }
  0x71   : > { %1820 = vset.pattern.permute.xlu1 %v3130_v8  ;;  %v300_v30 = vsub.f32 %v298_v15, %v2219_v45 }
  0x72   : > { %529 = vperm.xlu1 %1820, %v519_v16  }
  0x73   : > { %543 = vperm.xlu0 %1870, %v519_v16   ;;  %v302_v40 = vmul.f32 %v300_v30, %v300_v30 }
  0x76   : > { %1821 = vset.pattern.permute.xlu1 %v3132_v2 }
  0x77   : > { %536 = vperm.xlu1 %1821, %v519_v16   ;;  %672 = vperm.xlu0 %1870, %v2137_v17   ;;  %v258_v16 = vmul.f32 %v256_v0, %v256_v0 }
  0x7b   : > { %1822 = vset.pattern.permute.xlu1 %v3126_v7  ;;  %801 = vperm.xlu0 %1870, %v2144_v18  }
  0x7c   : > { %565 = vperm.xlu1 %1822, %v2075_v5  }
  0x7f   : > { %930 = vperm.xlu0 %1870, %v2151_v19  }
  0x80   : > { %1823 = vset.pattern.permute.xlu1 %v3130_v8 }
  0x81   : > { %572 = vperm.xlu1 %1823, %v2075_v5  }
  0x83   : > { %1059 = vperm.xlu0 %1870, %v2159_v20  }
  0x85   : > { %1825 = vset.pattern.permute.xlu1 %v3128_v4 }
  0x86   : > { %586 = vperm.xlu1 %1825, %v2075_v5   ;;  %v339_v5 = vfloor.f32 %v338_v57 }
  0x87   : > { %1188 = vperm.xlu0 %1870, %v2167_v21  }
  0x88   : > { %v340_v25 = vmul.f32 16.0, %v339_v5  ;;  %v342_v42 = vsub.f32 %v339_v5, %v2198_v34 }
  0x8a   : > { %1826 = vset.pattern.permute.xlu1 %v3126_v7  ;;  %v341_v32 = vsub.f32 %v337_v49, %v340_v25  ;;  %v2304_v49 = vadd.f32 %v302_v40, %v301_v39  ;;  %v344_v55 = vmul.f32 %v342_v42, %v342_v42 }
  0x8b   : > { %608 = vperm.xlu1 %1826, %v2100_v11   ;;  %1317 = vperm.xlu0 %1870, %v1293_v22   ;;  %v259_v22 = vmul.f32 %v257_v1, %v257_v1  ;;  %v380_v1 = vcvt.s32.f32 %v379_v54 }
  0x8c   : > { %v343_v44 = vsub.f32 %v341_v32, %v2219_v45 }
  0x8d   : > { %v2286_v31 = vadd.f32 %v259_v22, %v258_v16  ;;  %v423_v16 = vcvt.s32.f32 %v422_v63  ;;  %v381_v22 = vmul.f32 0.0625, %v380_v1 }
  0x8e   : > { %v345_v56 = vmul.f32 %v343_v44, %v343_v44 }
  0x8f   : > { %1827 = vset.pattern.permute.xlu1 %v3132_v2  ;;  %1446 = vperm.xlu0 %1870, %v2203_v36   ;;  %v424_v30 = vmul.f32 0.0625, %v423_v16  ;;  %v382_v32 = vfloor.f32 %v381_v22 }
  0x90   : > { %622 = vperm.xlu1 %1827, %v2100_v11   ;;  %v2320_v5 = vadd.f32 %v345_v56, %v344_v55 }
  0x91   : > { %v425_v40 = vfloor.f32 %v424_v30 }
  0x93   : > { %1881 = vset.pattern.permute.xlu0 %v3132_v2 }
  0x94   : > { %1828 = vset.pattern.permute.xlu1 %v3128_v4  ;;  %708 = vperm.xlu0 %1881, %v2213_v43  }
  0x95   : > { %629 = vperm.xlu1 %1828, %v2100_v11   ;;  %v220_v11 = vadd.f32 %v219_v61, %v218_v60  ;;  %v2313_v60 = vld [vmem:[%s3124_s1 + $0xa8] sm:$0xff]  ;;  %v200_v61 = vsub.s32 2, %v2187_v27 }
  0x97   : > { %v2229_v51 = vpop.permute.xlu1 %237  ;;  %v2231_v52 = vpop.permute.xlu0 %321  ;;  %v2280_v26 = vmin.f32 %v220_v11, 1e+30  ;;  %v2327_v11 = vrot.slane %v2266_v10, %v200_v61 }
  0x98   : > { %837 = vperm.xlu0 %1881, %v2226_v50  }
  0x99   : > { %1829 = vset.pattern.permute.xlu1 %v3130_v8  ;;  %vm240_vm4 = vcmp.ne.f32.partialorder %v2327_v11, %v2229_v51  ;;  %vm324_vm6 = vcmp.ne.f32.partialorder %v2327_v11, %v2231_v52 }
  0x9a   : > { %658 = vperm.xlu1 %1829, %v2137_v17  }
  0x9b   : > { %v2243_v59 = vpop.permute.xlu0 %450 }
  0x9c   : > { %v2245_v62 = vpop.permute.xlu1 %243  ;;  %966 = vperm.xlu0 %1881, %v2240_v58   ;;  %vm453_vm9 = vcmp.ne.f32.partialorder %v2327_v11, %v2243_v59 }
  0x9e   : > { %1830 = vset.pattern.permute.xlu1 %v3132_v2 }
  0x9f   : > { %665 = vperm.xlu1 %1830, %v2137_v17   ;;  %v2263_v9 = vpop.permute.xlu0 %579  ;;  %v2277_v17 = vld [vmem:[%s3124_s1 + $0xb8] sm:$0xff] }
  0xa0   : > { %1095 = vperm.xlu0 %1881, %v2259_v6  }
  0xa1   : > { %v2269_v23 = vpop.permute.xlu1 %264 }
  0xa3   : > { %1831 = vset.pattern.permute.xlu1 %v3126_v7 }
  0xa4   : > { %694 = vperm.xlu1 %1831, %v2213_v43   ;;  %v232_v28 = vpop.permute.xlu0 %231  ;;  %1224 = vperm.xlu0 %1881, %v2277_v17  }
  0xa5   : > { %vm234_vm0 = vcmp.ne.f32.partialorder %v2272_v24, %v232_v28 }
  0xa6   : > { %v235_v35 = vsel %vm234_vm0, %v2280_v26, 1e+30  ;;  %v279_v37 = vpop.permute.xlu1 %278  ;;  %vm582_vm0 = vcmp.ne.f32.partialorder %v2327_v11, %v2263_v9 }
  0xa7   : > { %v275_v38 = vmin.f32 %v235_v35, %v2286_v31  ;;  %vm281_vm5 = vcmp.ne.f32.partialorder %v2327_v11, %v279_v37 }
  0xa8   : > { %1832 = vset.pattern.permute.xlu1 %v3130_v8  ;;  %v272_v41 = vpop.permute.xlu0 %271  ;;  %1353 = vperm.xlu0 %1881, %v1336_v33   ;;  %v465_v33 = vadd.s32 48, %v2187_v27 }
  0xa9   : > { %vm274_vm1 = vcmp.ne.f32.partialorder %v2272_v24, %v272_v41  ;;  %701 = vperm.xlu1 %1832, %v2213_v43   ;;  %v383_v41 = vmul.f32 16.0, %v382_v32 }
  0xaa   : > { %v276_v47 = vsel %vm274_vm1, %v275_v38, %v235_v35  ;;  %v241_v35 = vsel %vm240_vm4, %v2280_v26, 1e+30  ;;  %v466_v42 = vcvt.s32.f32 %v465_v33 }
  0xab   : > { %v2302_v48 = vpop.permute.xlu1 %307  ;;  %v318_v57 = vmin.f32 %v276_v47, %v2304_v49  ;;  %v282_v51 = vmin.f32 %v241_v35, %v2286_v31 }
  0xac   : > { %v358_v53 = vpop.permute.xlu0 %357  ;;  %1482 = vperm.xlu0 %1881, %v1465_v46   ;;  %v467_v55 = vmul.f32 0.0625, %v466_v42 }
  0xad   : > { %1833 = vset.pattern.permute.xlu1 %v3128_v4  ;;  %vm360_vm3 = vcmp.ne.f32.partialorder %v2272_v24, %v358_v53  ;;  %v283_v44 = vsel %vm281_vm5, %v282_v51, %v241_v35  ;;  %v384_v53 = vsub.f32 %v380_v1, %v383_v41 }
  0xae   : > { %715 = vperm.xlu1 %1833, %v2213_v43   ;;  %v325_v56 = vmin.f32 %v283_v44, %v2304_v49  ;;  %v468_v63 = vfloor.f32 %v467_v55 }
  0xb0   : > { %v315_v0 = vpop.permute.xlu1 %314  ;;  %v2317_v3 = vpop.permute.xlu0 %486  ;;  %1884 = vset.pattern.permute.xlu0 %v3130_v8 }
  0xb1   : > { %vm317_vm2 = vcmp.ne.f32.partialorder %v2272_v24, %v315_v0  ;;  %1131 = vperm.xlu0 %1884, %v2313_v60   ;;  %v326_v0 = vsel %vm324_vm6, %v325_v56, %v283_v44  ;;  %vm489_vm12 = vcmp.ne.f32.partialorder %v2272_v24, %v2317_v3  ;;  %v594_v3 = vadd.s32 72, %v2187_v27 }
  0xb2   : > { %v319_v43 = vsel %vm317_vm2, %v318_v57, %v276_v47  ;;  %1834 = vset.pattern.permute.xlu1 %v3126_v7  ;;  %v426_v47 = vmul.f32 16.0, %v425_v40  ;;  %v386_v57 = vsub.f32 %v384_v53, %v2219_v45  ;;  %v368_v22 = vmin.f32 %v326_v0, %v2320_v5 }
  0xb3   : > { %v361_v15 = vmin.f32 %v319_v43, %v2320_v5  ;;  %737 = vperm.xlu1 %1834, %v2107_v12  }
  0xb4   : > { %v2331_v25 = vpop.permute.xlu0 %615  ;;  %v427_v37 = vsub.f32 %v423_v16, %v426_v47  ;;  %v388_v16 = vmul.f32 %v386_v57, %v386_v57 }
  0xb5   : > { %v2333_v28 = vsel %vm360_vm3, %v361_v15, %v319_v43  ;;  %v2335_v29 = vpop.permute.xlu1 %328  ;;  %v428_v43 = vsub.f32 %v425_v40, %v2198_v34  ;;  %vm618_vm4 = vcmp.ne.f32.partialorder %v2272_v24, %v2331_v25  ;;  %v680_v25 = vadd.s32 88, %v2187_v27 }
  0xb6   : > { %v429_v15 = vsub.f32 %v427_v37, %v2219_v45  ;;  %v471_v37 = vsub.f32 %v468_v63, %v2198_v34 }
  0xb7   : > { %1835 = vset.pattern.permute.xlu1 %v3132_v2  ;;  %v430_v35 = vmul.f32 %v428_v43, %v428_v43  ;;  %v508_v43 = vadd.s32 56, %v2187_v27 }
  0xb8   : > { %751 = vperm.xlu1 %1835, %v2107_v12   ;;  %v2343_v38 = vpop.permute.xlu0 %744  ;;  %v431_v41 = vmul.f32 %v429_v15, %v429_v15 }
  0xba   : > { %v2345_v39 = vpop.permute.xlu1 %350  ;;  %v2383_v53 = vadd.f32 %v431_v41, %v430_v35 }
  0xbc   : > { %1836 = vset.pattern.permute.xlu1 %v3128_v4  ;;  %v2351_v54 = vpop.permute.xlu0 %873 }
  0xbd   : > { %758 = vperm.xlu1 %1836, %v2107_v12   ;;  %3142 = vst [vmem:[#allocation5_spill] sm:$0xff] %v2351_v54  ;;  %v385_v12 = vsub.f32 %v382_v32, %v2198_v34  ;;  %v469_v32 = vmul.f32 16.0, %v468_v63  ;;  %v473_v63 = vmul.f32 %v471_v37, %v471_v37 }
  0xbf   : > { %v365_v46 = vpop.permute.xlu1 %364  ;;  %v387_v52 = vmul.f32 %v385_v12, %v385_v12  ;;  %v470_v44 = vsub.f32 %v466_v42, %v469_v32 }
  0xc0   : > { %v2362_v1 = vpop.permute.xlu0 %1002  ;;  %vm367_vm7 = vcmp.ne.f32.partialorder %v2327_v11, %v365_v46 }
  0xc1   : > { %1837 = vset.pattern.permute.xlu1 %v3130_v8  ;;  %3143 = vst [vmem:[#allocation6_spill] sm:$0xff] %v2362_v1  ;;  %v369_v33 = vsel %vm367_vm7, %v368_v22, %v326_v0  ;;  %v2376_v40 = vadd.f32 %v388_v16, %v387_v52  ;;  %v472_v12 = vsub.f32 %v470_v44, %v2219_v45  ;;  %v551_v16 = vadd.s32 64, %v2187_v27 }
  0xc2   : > { %787 = vperm.xlu1 %1837, %v2144_v18   ;;  %v3147_v1 = vmov 0  }
  0xc3   : > { %v411_v46 = vmin.f32 %v369_v33, %v2376_v40  ;;  %v404_v57 = vmin.f32 %v2333_v28, %v2376_v40  ;;  %v474_v52 = vmul.f32 %v472_v12, %v472_v12  ;;  %v552_v41 = vcvt.s32.f32 %v551_v16 }
  0xc4   : > { %v2360_v61 = vpop.permute.xlu1 %371 }
  0xc5   : > { %v2378_v51 = vpop.permute.xlu0 %224  ;;  %v2410_v35 = vadd.f32 %v474_v52, %v473_v63  ;;  %v595_v63 = vcvt.s32.f32 %v594_v3 }
  0xc6   : > { %1838 = vset.pattern.permute.xlu1 %v3132_v2 }
  0xc7   : > { %794 = vperm.xlu1 %1838, %v2144_v18   ;;  %v2374_v18 = vld [vmem:[%s3124_s1 + $0xc0] sm:$0xff] }
  0xc8   : > { %3144 = vst [vmem:[#allocation7_spill] sm:$0xff] %v2374_v18  ;;  %1260 = vperm.xlu0 %1884, %v2374_v18  }
  0xc9   : > { %v401_v30 = vpop.permute.xlu1 %400  ;;  %v2394_v42 = vpop.permute.xlu0 %393 }
  0xca   : > { %vm403_vm10 = vcmp.ne.f32.partialorder %v2272_v24, %v401_v30 }
  0xcb   : > { %1839 = vset.pattern.permute.xlu1 %v3126_v7  ;;  %v405_v15 = vsel %vm403_vm10, %v404_v57, %v2333_v28 }
  0xcc   : > { %823 = vperm.xlu1 %1839, %v2226_v50   ;;  %v447_v22 = vmin.f32 %v405_v15, %v2383_v53 }
  0xcd   : > { %v2408_v30 = vpop.permute.xlu0 %522 }
  0xce   : > { %v408_v47 = vpop.permute.xlu1 %407 }
  0xcf   : > { %vm410_vm8 = vcmp.ne.f32.partialorder %v2327_v11, %v408_v47 }
  0xd0   : > { %v412_v55 = vsel %vm410_vm8, %v411_v46, %v369_v33  ;;  %1840 = vset.pattern.permute.xlu1 %v3130_v8  ;;  %v509_v33 = vcvt.s32.f32 %v508_v43 }
  0xd1   : > { %v454_v56 = vmin.f32 %v412_v55, %v2383_v53  ;;  %830 = vperm.xlu1 %1840, %v2226_v50  }
  0xd2   : > { %v510_v44 = vmul.f32 0.0625, %v509_v33 }
  0xd3   : > { %v2398_v0 = vsel %vm453_vm9, %v454_v56, %v412_v55  ;;  %v2400_v59 = vpop.permute.xlu1 %436  ;;  %v2422_v55 = vpop.permute.xlu0 %651  ;;  %v553_v56 = vmul.f32 0.0625, %v552_v41 }
  0xd4   : > { %v511_v37 = vfloor.f32 %v510_v44 }
  0xd5   : > { %1841 = vset.pattern.permute.xlu1 %v3128_v4  ;;  %v554_v57 = vfloor.f32 %v553_v56 }
  0xd6   : > { %844 = vperm.xlu1 %1841, %v2226_v50   ;;  %v514_v44 = vsub.f32 %v511_v37, %v2198_v34 }
  0xd7   : > { %v2429_v43 = vpop.permute.xlu0 %780  ;;  %v555_v52 = vmul.f32 16.0, %v554_v57 }
  0xd8   : > { %v444_v32 = vpop.permute.xlu1 %443 }
  0xd9   : > { %vm446_vm11 = vcmp.ne.f32.partialorder %v2272_v24, %v444_v32  ;;  %v596_v32 = vmul.f32 0.0625, %v595_v63 }
  0xda   : > { %v448_v28 = vsel %vm446_vm11, %v447_v22, %v405_v15  ;;  %1842 = vset.pattern.permute.xlu1 %v3126_v7  ;;  %v512_v15 = vmul.f32 16.0, %v511_v37  ;;  %v497_v37 = vmin.f32 %v2398_v0, %v2410_v35 }
  0xdb   : > { %v490_v50 = vmin.f32 %v448_v28, %v2410_v35  ;;  %866 = vperm.xlu1 %1842, %v2114_v13  }
  0xdc   : > { %v513_v22 = vsub.f32 %v509_v33, %v512_v15  ;;  %v557_v33 = vsub.f32 %v554_v57, %v2198_v34  ;;  %v516_v15 = vmul.f32 %v514_v44, %v514_v44 }
  0xdd   : > { %v2418_v46 = vsel %vm489_vm12, %v490_v50, %v448_v28  ;;  %v2420_v47 = vpop.permute.xlu1 %457  ;;  %v2434_v28 = vpop.permute.xlu0 %909  ;;  %v556_v50 = vsub.f32 %v552_v41, %v555_v52 }
  0xde   : > { %3145 = vst [vmem:[#allocation8_spill] sm:$0xff] %v2434_v28  ;;  %v515_v56 = vsub.f32 %v513_v22, %v2219_v45 }
  0xdf   : > { %1843 = vset.pattern.permute.xlu1 %v3132_v2  ;;  %v558_v3 = vsub.f32 %v556_v50, %v2219_v45 }
  0xe0   : > { %880 = vperm.xlu1 %1843, %v2114_v13  }
  0xe1   : > { %v2446_v41 = vpop.permute.xlu0 %1038  ;;  %v560_v57 = vmul.f32 %v558_v3, %v558_v3 }
  0xe2   : > { %v2427_v12 = vpop.permute.xlu1 %479  ;;  %3146 = vst [vmem:[#allocation9_spill] sm:$0xff] %v2446_v41 }
  0xe4   : > { %1844 = vset.pattern.permute.xlu1 %v3128_v4  ;;  %v597_v4 = vfloor.f32 %v596_v32 }
  0xe5   : > { %887 = vperm.xlu1 %1844, %v2114_v13   ;;  %v192_v13 = vsub.s32 0, %v2187_v27 }
  0xe6   : > { %v598_v22 = vmul.f32 16.0, %v597_v4 }
  0xe7   : > { %v494_v16 = vpop.permute.xlu1 %493  ;;  %v2452_v32 = vrot.slane %v2266_v10, %v192_v13 }
  0xe8   : > { %vm496_vm13 = vcmp.ne.f32.partialorder %v2327_v11, %v494_v16  ;;  %v599_v44 = vsub.f32 %v595_v63, %v598_v22  ;;  %v2481_v63 = vld [vmem:[%s3124_s1 + $0xf0] sm:$0xff] }
  0xe9   : > { %1845 = vset.pattern.permute.xlu1 %v3130_v8  ;;  %v517_v8 = vmul.f32 %v515_v56, %v515_v56  ;;  %v498_v50 = vsel %vm496_vm13, %v497_v37, %v2398_v0  ;;  %vm227_vm14 = vcmp.ne.f32.partialorder %v2452_v32, %v2378_v51  ;;  %v2467_v56 = vpop.permute.xlu0 %1167  ;;  %v600_v51 = vsub.f32 %v597_v4, %v2198_v34 }
  0xea   : > { %916 = vperm.xlu1 %1845, %v2151_v19   ;;  %3149 = vst [vmem:[#allocation11_spill] sm:$0xff] %v2467_v56  ;;  %3151 = vst [vmem:[#allocation12_spill] sm:$0xff] %v2481_v63  ;;  %vm267_vm2 = vcmp.ne.f32.partialorder %v2452_v32, %v2269_v23  ;;  %v3153_v56 = vmov 3   ;;  %vm310_vm5 = vcmp.ne.f32.partialorder %v2452_v32, %v2302_v48  ;;  %v681_v48 = vcvt.s32.f32 %v680_v25 }
  0xeb   : > { %v2463_v16 = vadd.f32 %v517_v8, %v516_v15  ;;  %v3150_v15 = vmov 1   ;;  %vm353_vm7 = vcmp.ne.f32.partialorder %v2452_v32, %v2345_v39  ;;  %vm396_vm9 = vcmp.ne.f32.partialorder %v2452_v32, %v2394_v42 }
  0xec   : > { %v2439_v7 = vpop.permute.xlu1 %500  ;;  %vm439_vm11 = vcmp.ne.f32.partialorder %v2452_v32, %v2400_v59  ;;  %vm482_vm12 = vcmp.ne.f32.partialorder %v2452_v32, %v2427_v12 }
  0xed   : > { %v540_v0 = vmin.f32 %v498_v50, %v2463_v16  ;;  %v533_v4 = vmin.f32 %v2418_v46, %v2463_v16 }
  0xee   : > { %1846 = vset.pattern.permute.xlu1 %v3132_v2  ;;  %v559_v2 = vmul.f32 %v557_v33, %v557_v33  ;;  %v229_v33 = vsel %vm227_vm14, %v2280_v26, 1e+30 }
  0xef   : > { %923 = vperm.xlu1 %1846, %v2151_v19   ;;  %v2459_v19 = vld [vmem:[%s3124_s1 + $0xd8] sm:$0xff]  ;;  %v268_v9 = vmin.f32 %v229_v33, %v2286_v31 }
  0xf0   : > { %3148 = vst [vmem:[#allocation10_spill] sm:$0xff] %v2459_v19  ;;  %1389 = vperm.xlu0 %1884, %v2459_v19   ;;  %v2471_v3 = vadd.f32 %v560_v57, %v559_v2  ;;  %v601_v2 = vsub.f32 %v599_v44, %v2219_v45 }
  0xf1   : > { %v530_v52 = vpop.permute.xlu1 %529 }
  0xf2   : > { %vm532_vm1 = vcmp.ne.f32.partialorder %v2272_v24, %v530_v52  ;;  %v269_v52 = vsel %vm267_vm2, %v268_v9, %v229_v33 }
  0xf3   : > { %1847 = vset.pattern.permute.xlu1 %v3147_v1  ;;  %v534_v44 = vsel %vm532_vm1, %v533_v4, %v2418_v46  ;;  %v311_v23 = vmin.f32 %v269_v52, %v2304_v49 }
  0xf4   : > { %952 = vperm.xlu1 %1847, %v2240_v58   ;;  %1518 = vperm.xlu0 %1884, %v2481_v63  }
  0xf5   : > { %v312_v4 = vsel %vm310_vm5, %v311_v23, %v269_v52  ;;  %v723_v52 = vadd.s32 96, %v2187_v27 }
  0xf6   : > { %v537_v13 = vpop.permute.xlu1 %536 }
  0xf7   : > { %vm539_vm15 = vcmp.ne.f32.partialorder %v2327_v11, %v537_v13  ;;  %v603_v13 = vmul.f32 %v601_v2, %v601_v2  ;;  %v724_v25 = vcvt.s32.f32 %v723_v52 }
  0xf8   : > { %v541_v8 = vsel %vm539_vm15, %v540_v0, %v498_v50  ;;  %1848 = vset.pattern.permute.xlu1 %v3150_v15  ;;  %v2495_v50 = vpop.permute.xlu0 %1296  ;;  %v602_v0 = vmul.f32 %v600_v51, %v600_v51  ;;  %1887 = vset.pattern.permute.xlu0 %v3147_v1  ;;  %v576_v51 = vmin.f32 %v534_v44, %v2471_v3 }
  0xf9   : > { %v583_v37 = vmin.f32 %v541_v8, %v2471_v3  ;;  %959 = vperm.xlu1 %1848, %v2240_v58   ;;  %3152 = vst [vmem:[#allocation13_spill] sm:$0xff] %v2495_v50  ;;  %1425 = vperm.xlu0 %1887, %v2203_v36  }
  0xfa   : > { %v2508_v46 = vadd.f32 %v603_v13, %v602_v0 }
  0xfb   : > { %v2491_v22 = vsel %vm582_vm0, %v583_v37, %v541_v8  ;;  %v2493_v57 = vpop.permute.xlu1 %565  ;;  %v637_v8 = vadd.s32 80, %v2187_v27  ;;  %v204_v37 = vsub.s32 3, %v2187_v27  ;;  %vm525_vm0 = vcmp.ne.f32.partialorder %v2452_v32, %v2408_v30 }
  0xfc   : > { %v286_v33 = vpop.permute.xlu0 %285  ;;  %vm568_vm1 = vcmp.ne.f32.partialorder %v2452_v32, %v2493_v57 }
  0xfd   : > { %1849 = vset.pattern.permute.xlu1 %v3153_v56  ;;  %v638_v2 = vcvt.s32.f32 %v637_v8  ;;  %v2517_v9 = vrot.slane %v2266_v10, %v204_v37  ;;  %v354_v10 = vmin.f32 %v312_v4, %v2320_v5 }
  0xfe   : > { %973 = vperm.xlu1 %1849, %v2240_v58  }
  0xff   : > { %v639_v13 = vmul.f32 0.0625, %v638_v2  ;;  %vm246_vm6 = vcmp.ne.f32.partialorder %v2517_v9, %v2245_v62  ;;  %vm288_vm8 = vcmp.ne.f32.partialorder %v2517_v9, %v286_v33  ;;  %v682_v62 = vmul.f32 0.0625, %v681_v48 }
 0x100   : > { %v573_v50 = vpop.permute.xlu1 %572  ;;  %v247_v23 = vsel %vm246_vm6, %v2280_v26, 1e+30  ;;  %v725_v33 = vmul.f32 0.0625, %v724_v25  ;;  %vm331_vm10 = vcmp.ne.f32.partialorder %v2517_v9, %v2335_v29  ;;  %vm374_vm13 = vcmp.ne.f32.partialorder %v2517_v9, %v2360_v61 }
 0x101   : > { %vm575_vm3 = vcmp.ne.f32.partialorder %v2272_v24, %v573_v50  ;;  %v289_v63 = vmin.f32 %v247_v23, %v2286_v31 }
 0x102   : > { %v577_v58 = vsel %vm575_vm3, %v576_v51, %v534_v44  ;;  %1850 = vset.pattern.permute.xlu1 %v3147_v1  ;;  %v2526_v44 = vpop.permute.xlu0 %414  ;;  %v3154_v51 = vmov 2   ;;  %v726_v54 = vfloor.f32 %v725_v33  ;;  %vm747_vm3 = vcmp.ne.f32.partialorder %v2272_v24, %v2343_v38 }
 0x103   : > { %v619_v36 = vmin.f32 %v577_v58, %v2508_v46  ;;  %995 = vperm.xlu1 %1850, %v2120_v14   ;;  %v290_v39 = vsel %vm288_vm8, %v289_v63, %v247_v23  ;;  %vm417_vm14 = vcmp.ne.f32.partialorder %v2517_v9, %v2526_v44  ;;  %v2609_v44 = vld [vmem:[%s3124_s1 + $0xf8] sm:$0xff]  ;;  %vm654_vm8 = vcmp.ne.f32.partialorder %v2452_v32, %v2422_v55 }
 0x104   : > { %v332_v31 = vmin.f32 %v290_v39, %v2304_v49  ;;  %v729_v61 = vsub.f32 %v726_v54, %v2198_v34  ;;  %1554 = vperm.xlu0 %1887, %v2609_v44  }
 0x105   : > { %v2521_v50 = vsel %vm618_vm4, %v619_v36, %v577_v58  ;;  %v2523_v0 = vpop.permute.xlu1 %586  ;;  %v640_v58 = vfloor.f32 %v639_v13  ;;  %v355_v36 = vsel %vm353_vm7, %v354_v10, %v312_v4  ;;  %v683_v4 = vfloor.f32 %v682_v62 }
 0x106   : > { %v2534_v8 = vpop.permute.xlu0 %543  ;;  %v397_v19 = vmin.f32 %v355_v36, %v2376_v40  ;;  %vm460_vm4 = vcmp.ne.f32.partialorder %v2517_v9, %v2420_v47  ;;  %vm503_vm7 = vcmp.ne.f32.partialorder %v2517_v9, %v2439_v7 }
 0x107   : > { %1852 = vset.pattern.permute.xlu1 %v3154_v51  ;;  %v641_v26 = vmul.f32 16.0, %v640_v58  ;;  %v684_v18 = vmul.f32 16.0, %v683_v4  ;;  %v643_v49 = vsub.f32 %v640_v58, %v2198_v34  ;;  %v686_v59 = vsub.f32 %v683_v4, %v2198_v34 }
 0x108   : > { %1009 = vperm.xlu1 %1852, %v2120_v14   ;;  %1892 = vset.pattern.permute.xlu0 %v3153_v56 }
 0x109   : > { %v642_v13 = vsub.f32 %v638_v2, %v641_v26  ;;  %v685_v2 = vsub.f32 %v681_v48, %v684_v18  ;;  %v645_v33 = vmul.f32 %v643_v49, %v643_v49  ;;  %1575 = vperm.xlu0 %1892, %v2609_v44  }
 0x10a   : > { %v2536_v37 = vpop.permute.xlu1 %608  ;;  %v2545_v41 = vpop.permute.xlu0 %672 }
 0x10b   : > { %v644_v63 = vsub.f32 %v642_v13, %v2219_v45  ;;  %vm611_vm5 = vcmp.ne.f32.partialorder %v2452_v32, %v2536_v37  ;;  %v2656_v37 = vadd.s32 120, %v2187_v27 }
 0x10c   : > { %1853 = vset.pattern.permute.xlu1 %v3153_v56 }
 0x10d   : > { %1016 = vperm.xlu1 %1853, %v2120_v14   ;;  %v398_v14 = vsel %vm396_vm9, %v397_v19, %v355_v36  ;;  %v333_v19 = vsel %vm331_vm10, %v332_v31, %v290_v39  ;;  %v727_v36 = vmul.f32 16.0, %v726_v54  ;;  %v688_v31 = vmul.f32 %v686_v59, %v686_v59 }
 0x10e   : > { %v2555_v10 = vpop.permute.xlu0 %801  ;;  %v440_v42 = vmin.f32 %v398_v14, %v2383_v53  ;;  %v375_v29 = vmin.f32 %v333_v19, %v2320_v5  ;;  %v687_v5 = vsub.f32 %v685_v2, %v2219_v45  ;;  %vm546_vm10 = vcmp.ne.f32.partialorder %v2517_v9, %v2534_v8 }
 0x10f   : > { %v2548_v28 = vpop.permute.xlu1 %622  ;;  %3155 = vst [vmem:[#allocation14_spill] sm:$0xff] %v2555_v10  ;;  %v646_v10 = vmul.f32 %v644_v63, %v644_v63  ;;  %v728_v18 = vsub.f32 %v724_v25, %v727_v36  ;;  %v731_v63 = vmul.f32 %v729_v61, %v729_v61 }
 0x110   : > { %v441_v62 = vsel %vm439_vm11, %v440_v42, %v398_v14  ;;  %v376_v48 = vsel %vm374_vm13, %v375_v29, %v333_v19  ;;  %v689_v13 = vmul.f32 %v687_v5, %v687_v5  ;;  %vm625_vm6 = vcmp.ne.f32.partialorder %v2327_v11, %v2548_v28 }
 0x111   : > { %1854 = vset.pattern.permute.xlu1 %v3150_v15  ;;  %v2582_v14 = vadd.f32 %v646_v10, %v645_v33  ;;  %v418_v4 = vmin.f32 %v376_v48, %v2376_v40  ;;  %v730_v42 = vsub.f32 %v728_v18, %v2219_v45  ;;  %v2596_v10 = vadd.s32 104, %v2187_v27 }
 0x112   : > { %1045 = vperm.xlu1 %1854, %v2159_v20   ;;  %v2569_v26 = vpop.permute.xlu0 %930  ;;  %v2611_v36 = vadd.f32 %v689_v13, %v688_v31  ;;  %vm589_vm13 = vcmp.ne.f32.partialorder %v2517_v9, %v2523_v0  ;;  %v1895_v0 = vld [vmem:[%s3124_s1 + $0xb0] sm:$0xff] }
 0x113   : > { %v662_v54 = vmin.f32 %v2521_v50, %v2582_v14  ;;  %v419_v19 = vsel %vm417_vm14, %v418_v4, %v376_v48  ;;  %v732_v2 = vmul.f32 %v730_v42, %v730_v42 }
 0x114   : > { %v2557_v52 = vpop.permute.xlu1 %629  ;;  %v461_v29 = vmin.f32 %v419_v19, %v2383_v53 }
 0x115   : > { %v2626_v5 = vadd.f32 %v732_v2, %v731_v63 }
 0x116   : > { %1855 = vset.pattern.permute.xlu1 %v3154_v51  ;;  %v2584_v12 = vpop.permute.xlu0 %1059 }
 0x117   : > { %1052 = vperm.xlu1 %1855, %v2159_v20   ;;  %v483_v20 = vmin.f32 %v441_v62, %v2410_v35 }
 0x119   : > { %v659_v23 = vpop.permute.xlu1 %658  ;;  %v484_v39 = vsel %vm482_vm12, %v483_v20, %v441_v62  ;;  %v767_v62 = vcvt.s32.f32 %v2596_v10 }
 0x11a   : > { %v526_v25 = vmin.f32 %v484_v39, %v2463_v16  ;;  %vm661_vm15 = vcmp.ne.f32.partialorder %v2272_v24, %v659_v23  ;;  %v2613_v30 = vpop.permute.xlu0 %1188 }
 0x11b   : > { %1856 = vset.pattern.permute.xlu1 %v3147_v1  ;;  %v663_v49 = vsel %vm661_vm15, %v662_v54, %v2521_v50  ;;  %v2619_v50 = vadd.s32 112, %v2187_v27  ;;  %v768_v18 = vmul.f32 0.0625, %v767_v62 }
 0x11c   : > { %1081 = vperm.xlu1 %1856, %v2259_v6   ;;  %v527_v23 = vsel %vm525_vm0, %v526_v25, %v484_v39  ;;  %v705_v33 = vmin.f32 %v663_v49, %v2611_v36  ;;  %v462_v39 = vsel %vm460_vm4, %v461_v29, %v419_v19  ;;  %v626_v25 = vmin.f32 %v2491_v22, %v2508_v46 }
 0x11d   : > { %v569_v20 = vmin.f32 %v527_v23, %v2471_v3  ;;  %v810_v48 = vcvt.s32.f32 %v2619_v50  ;;  %v769_v13 = vfloor.f32 %v768_v18  ;;  %v504_v61 = vmin.f32 %v462_v39, %v2410_v35 }
 0x11e   : > { %v2580_v58 = vpop.permute.xlu1 %665  ;;  %v2639_v38 = vpop.permute.xlu0 %1317  ;;  %v627_v35 = vsel %vm625_vm6, %v626_v25, %v2491_v22  ;;  %v853_v22 = vcvt.s32.f32 %v2656_v37  ;;  %vm632_vm0 = vcmp.ne.f32.partialorder %v2517_v9, %v2557_v52 }
 0x11f   : > { %v570_v53 = vsel %vm568_vm1, %v569_v20, %v527_v23  ;;  %v811_v42 = vmul.f32 0.0625, %v810_v48  ;;  %v770_v28 = vmul.f32 16.0, %v769_v13  ;;  %vm668_vm9 = vcmp.ne.f32.partialorder %v2327_v11, %v2580_v58 }
 0x120   : > { %1857 = vset.pattern.permute.xlu1 %v3150_v15  ;;  %v612_v47 = vmin.f32 %v570_v53, %v2508_v46  ;;  %v669_v7 = vmin.f32 %v627_v35, %v2582_v14  ;;  %v772_v58 = vsub.f32 %v769_v13, %v2198_v34  ;;  %vm783_vm1 = vcmp.ne.f32.partialorder %v2452_v32, %v2429_v43 }
 0x121   : > { %1088 = vperm.xlu1 %1857, %v2259_v6   ;;  %v812_v2 = vfloor.f32 %v811_v42  ;;  %v771_v50 = vsub.f32 %v767_v62, %v770_v28 }
 0x122   : > { %v613_v10 = vsel %vm611_vm5, %v612_v47, %v570_v53  ;;  %v2661_v54 = vpop.permute.xlu0 %1446  ;;  %v2685_v53 = vadd.s32 128, %v2187_v27  ;;  %v774_v47 = vmul.f32 %v772_v58, %v772_v58 }
 0x123   : > { %v2602_v40 = vpop.permute.xlu1 %694  ;;  %v655_v63 = vmin.f32 %v613_v10, %v2582_v14  ;;  %v773_v8 = vsub.f32 %v771_v50, %v2219_v45 }
 0x124   : > { %vm697_vm11 = vcmp.ne.f32.partialorder %v2452_v32, %v2602_v40 }
 0x125   : > { %1858 = vset.pattern.permute.xlu1 %v3153_v56  ;;  %v656_v29 = vsel %vm654_vm8, %v655_v63, %v613_v10  ;;  %v775_v42 = vmul.f32 %v773_v8, %v773_v8  ;;  %v896_v10 = vcvt.s32.f32 %v2685_v53 }
 0x126   : > { %1102 = vperm.xlu1 %1858, %v2259_v6   ;;  %v709_v20 = vpop.permute.xlu0 %708 }
 0x127   : > { %vm711_vm12 = vcmp.ne.f32.partialorder %v2327_v11, %v709_v20  ;;  %v2706_v63 = vadd.f32 %v775_v42, %v774_v47  ;;  %v897_v50 = vmul.f32 0.0625, %v896_v10 }
 0x128   : > { %v702_v59 = vpop.permute.xlu1 %701 }
 0x129   : > { %vm704_vm2 = vcmp.ne.f32.partialorder %v2272_v24, %v702_v59  ;;  %v813_v59 = vmul.f32 16.0, %v812_v2  ;;  %v898_v58 = vfloor.f32 %v897_v50 }
 0x12a   : > { %v706_v6 = vsel %vm704_vm2, %v705_v33, %v663_v49  ;;  %1859 = vset.pattern.permute.xlu1 %v3147_v1  ;;  %v505_v49 = vsel %vm503_vm7, %v504_v61, %v462_v39  ;;  %v670_v33 = vsel %vm668_vm9, %v669_v7, %v627_v35 }
 0x12b   : > { %v748_v57 = vmin.f32 %v706_v6, %v2626_v5  ;;  %1124 = vperm.xlu1 %1859, %v2313_v60   ;;  %v547_v23 = vmin.f32 %v505_v49, %v2463_v16  ;;  %v698_v16 = vmin.f32 %v656_v29, %v2611_v36  ;;  %v712_v62 = vmin.f32 %v670_v33, %v2611_v36 }
 0x12c   : > { %v814_v18 = vsub.f32 %v810_v48, %v813_v59 }
 0x12d   : > { %v2643_v31 = vsel %vm747_vm3, %v748_v57, %v706_v6  ;;  %v2645_v4 = vpop.permute.xlu1 %715  ;;  %v548_v6 = vsel %vm546_vm10, %v547_v23, %v505_v49  ;;  %v699_v40 = vsel %vm697_vm11, %v698_v16, %v656_v29  ;;  %v713_v61 = vsel %vm711_vm12, %v712_v62, %v670_v33 }
 0x12e   : > { %v590_v39 = vmin.f32 %v548_v6, %v2471_v3  ;;  %v741_v25 = vmin.f32 %v699_v40, %v2626_v5  ;;  %v816_v3 = vsub.f32 %v814_v18, %v2219_v45  ;;  %v755_v37 = vmin.f32 %v713_v61, %v2626_v5 }
 0x12f   : > { %1860 = vset.pattern.permute.xlu1 %v3154_v51  ;;  %vm675_vm3 = vcmp.ne.f32.partialorder %v2517_v9, %v2545_v41  ;;  %v791_v16 = vmin.f32 %v2643_v31, %v2706_v63  ;;  %v899_v41 = vmul.f32 16.0, %v898_v58  ;;  %vm718_vm6 = vcmp.ne.f32.partialorder %v2517_v9, %v2645_v4  ;;  %v3156_v4 = vld [vmem:[#allocation5_spill] sm:$0xff] }
 0x130   : > { %1138 = vperm.xlu1 %1860, %v2313_v60   ;;  %v591_v48 = vsel %vm589_vm13, %v590_v39, %v548_v6  ;;  %v818_v23 = vmul.f32 %v816_v3, %v816_v3  ;;  %vm876_vm8 = vcmp.ne.f32.partialorder %v2272_v24, %v3156_v4 }
 0x131   : > { %v633_v49 = vmin.f32 %v591_v48, %v2508_v46 }
 0x132   : > { %v738_v19 = vpop.permute.xlu1 %737 }
 0x133   : > { %vm740_vm14 = vcmp.ne.f32.partialorder %v2452_v32, %v738_v19  ;;  %v634_v29 = vsel %vm632_vm0, %v633_v49, %v591_v48  ;;  %v838_v49 = vpop.permute.xlu0 %837 }
 0x134   : > { %1861 = vset.pattern.permute.xlu1 %v3153_v56  ;;  %v742_v35 = vsel %vm740_vm14, %v741_v25, %v699_v40  ;;  %v676_v59 = vmin.f32 %v634_v29, %v2582_v14  ;;  %vm840_vm11 = vcmp.ne.f32.partialorder %v2327_v11, %v838_v49 }
 0x135   : > { %1145 = vperm.xlu1 %1861, %v2313_v60   ;;  %v854_v60 = vmul.f32 0.0625, %v853_v22  ;;  %v784_v33 = vmin.f32 %v742_v35, %v2706_v63 }
 0x136   : > { %v677_v14 = vsel %vm675_vm3, %v676_v59, %v634_v29  ;;  %v981_v29 = vadd.s32 144, %v2187_v27  ;;  %v3159_v59 = vld [vmem:[#allocation8_spill] sm:$0xff] }
 0x137   : > { %v752_v55 = vpop.permute.xlu1 %751  ;;  %v855_v13 = vfloor.f32 %v854_v60  ;;  %v785_v43 = vsel %vm783_vm1, %v784_v33, %v742_v35  ;;  %v719_v47 = vmin.f32 %v677_v14, %v2611_v36  ;;  %v901_v36 = vsub.f32 %v898_v58, %v2198_v34 }
 0x138   : > { %vm754_vm15 = vcmp.ne.f32.partialorder %v2327_v11, %v752_v55  ;;  %vm912_vm13 = vcmp.ne.f32.partialorder %v2452_v32, %v3159_v59 }
 0x139   : > { %1862 = vset.pattern.permute.xlu1 %v3150_v15  ;;  %v856_v19 = vmul.f32 16.0, %v855_v13  ;;  %v858_v6 = vsub.f32 %v855_v13, %v2198_v34  ;;  %v900_v13 = vsub.f32 %v896_v10, %v899_v41  ;;  %v720_v42 = vsel %vm718_vm6, %v719_v47, %v677_v14  ;;  %v3157_v10 = vld [vmem:[#allocation7_spill] sm:$0xff] }
 0x13a   : > { %1174 = vperm.xlu1 %1862, %v2167_v21   ;;  %v815_v21 = vsub.f32 %v812_v2, %v2198_v34  ;;  %v756_v2 = vsel %vm754_vm15, %v755_v37, %v713_v61  ;;  %v938_v61 = vadd.s32 136, %v2187_v27  ;;  %v1024_v47 = vadd.s32 152, %v2187_v27 }
 0x13b   : > { %v857_v52 = vsub.f32 %v853_v22, %v856_v19  ;;  %v798_v55 = vmin.f32 %v756_v2, %v2706_v63  ;;  %v860_v18 = vmul.f32 %v858_v6, %v858_v6  ;;  %v902_v3 = vsub.f32 %v900_v13, %v2219_v45 }
 0x13c   : > { %v2689_v57 = vpop.permute.xlu1 %758  ;;  %v817_v7 = vmul.f32 %v815_v21, %v815_v21  ;;  %v939_v37 = vcvt.s32.f32 %v938_v61  ;;  %v1025_v4 = vcvt.s32.f32 %v1024_v47 }
 0x13d   : > { %v859_v22 = vsub.f32 %v857_v52, %v2219_v45  ;;  %vm761_vm9 = vcmp.ne.f32.partialorder %v2517_v9, %v2689_v57 }
 0x13e   : > { %1863 = vset.pattern.permute.xlu1 %v3154_v51  ;;  %v2715_v20 = vadd.f32 %v818_v23, %v817_v7  ;;  %v904_v7 = vmul.f32 %v902_v3, %v902_v3  ;;  %v940_v57 = vmul.f32 0.0625, %v939_v37 }
 0x13f   : > { %1181 = vperm.xlu1 %1863, %v1895_v0   ;;  %v861_v40 = vmul.f32 %v859_v22, %v859_v22  ;;  %v982_v22 = vcvt.s32.f32 %v981_v29 }
 0x140   : > { %v827_v8 = vmin.f32 %v785_v43, %v2715_v20 }
 0x141   : > { %v788_v28 = vpop.permute.xlu1 %787  ;;  %v862_v25 = vadd.f32 %v861_v40, %v860_v18  ;;  %v1896_v40 = vld [vmem:[%s3124_s1 + $0xc8] sm:$0xff] }
 0x142   : > { %vm790_vm4 = vcmp.ne.f32.partialorder %v2272_v24, %v788_v28 }
 0x143   : > { %1864 = vset.pattern.permute.xlu1 %v3147_v1  ;;  %v792_v53 = vsel %vm790_vm4, %v791_v16, %v2643_v31  ;;  %vm933_vm4 = vcmp.ne.f32.partialorder %v2517_v9, %v2569_v26 }
 0x144   : > { %1210 = vperm.xlu1 %1864, %v2277_v17   ;;  %v834_v21 = vmin.f32 %v792_v53, %v2715_v20 }
 0x146   : > { %v795_v46 = vpop.permute.xlu1 %794 }
 0x147   : > { %vm797_vm2 = vcmp.ne.f32.partialorder %v2327_v11, %v795_v46  ;;  %v941_v46 = vfloor.f32 %v940_v57 }
 0x148   : > { %v799_v60 = vsel %vm797_vm2, %v798_v55, %v756_v2  ;;  %1865 = vset.pattern.permute.xlu1 %v3150_v15  ;;  %v903_v2 = vmul.f32 %v901_v36, %v901_v36 }
 0x149   : > { %1217 = vperm.xlu1 %1865, %v2277_v17   ;;  %v841_v50 = vmin.f32 %v799_v60, %v2715_v20 }
 0x14a   : > { %v2755_v55 = vadd.f32 %v904_v7, %v903_v2 }
 0x14b   : > { %v824_v62 = vpop.permute.xlu1 %823 }
 0x14c   : > { %vm826_vm5 = vcmp.ne.f32.partialorder %v2452_v32, %v824_v62 }
 0x14d   : > { %v828_v39 = vsel %vm826_vm5, %v827_v8, %v785_v43  ;;  %1866 = vset.pattern.permute.xlu1 %v3153_v56  ;;  %v942_v8 = vmul.f32 16.0, %v941_v46 }
 0x14e   : > { %1231 = vperm.xlu1 %1866, %v2277_v17   ;;  %v762_v17 = vmin.f32 %v720_v42, %v2626_v5  ;;  %v3158_v5 = vld [vmem:[#allocation14_spill] sm:$0xff]  ;;  %v870_v33 = vmin.f32 %v828_v39, %v862_v25 }
 0x14f   : > { %vm804_vm10 = vcmp.ne.f32.partialorder %v2517_v9, %v3158_v5 }
 0x150   : > { %v831_v48 = vpop.permute.xlu1 %830  ;;  %v763_v35 = vsel %vm761_vm9, %v762_v17, %v720_v42 }
 0x151   : > { %vm833_vm7 = vcmp.ne.f32.partialorder %v2272_v24, %v831_v48  ;;  %v805_v23 = vmin.f32 %v763_v35, %v2706_v63  ;;  %v842_v63 = vsel %vm840_vm11, %v841_v50, %v799_v60 }
 0x152   : > { %v835_v31 = vsel %vm833_vm7, %v834_v21, %v792_v53  ;;  %1867 = vset.pattern.permute.xlu1 %v3147_v1  ;;  %v884_v14 = vmin.f32 %v842_v63, %v862_v25  ;;  %v983_v53 = vmul.f32 0.0625, %v982_v22  ;;  %v944_v21 = vsub.f32 %v941_v46, %v2198_v34 }
 0x153   : > { %v877_v0 = vmin.f32 %v835_v31, %v862_v25  ;;  %1253 = vperm.xlu1 %1867, %v3157_v10   ;;  %v806_v58 = vsel %vm804_vm10, %v805_v23, %v763_v35 }
 0x154   : > { %v848_v16 = vmin.f32 %v806_v58, %v2715_v20  ;;  %v984_v61 = vfloor.f32 %v983_v53 }
 0x155   : > { %v878_v28 = vsel %vm876_vm8, %v877_v0, %v835_v31  ;;  %v845_v19 = vpop.permute.xlu1 %844  ;;  %v946_v0 = vmul.f32 %v944_v21, %v944_v21 }
 0x156   : > { %vm847_vm14 = vcmp.ne.f32.partialorder %v2517_v9, %v845_v19  ;;  %v920_v31 = vmin.f32 %v878_v28, %v2755_v55  ;;  %v985_v17 = vmul.f32 16.0, %v984_v61 }
 0x157   : > { %1868 = vset.pattern.permute.xlu1 %v3154_v51  ;;  %v849_v60 = vsel %vm847_vm14, %v848_v16, %v806_v58  ;;  %v1067_v58 = vadd.s32 160, %v2187_v27 }
 0x158   : > { %1267 = vperm.xlu1 %1868, %v3157_v10   ;;  %v891_v13 = vmin.f32 %v849_v60, %v862_v25  ;;  %v986_v35 = vsub.f32 %v982_v22, %v985_v17 }
 0x15a   : > { %v867_v52 = vpop.permute.xlu1 %866  ;;  %v988_v23 = vsub.f32 %v986_v35, %v2219_v45 }
 0x15b   : > { %vm869_vm12 = vcmp.ne.f32.partialorder %v2452_v32, %v867_v52 }
 0x15c   : > { %v871_v6 = vsel %vm869_vm12, %v870_v33, %v828_v39  ;;  %1869 = vset.pattern.permute.xlu1 %v3153_v56  ;;  %v943_v39 = vsub.f32 %v939_v37, %v942_v8  ;;  %v1897_v37 = vld [vmem:[%s3124_s1 + $0xd0] sm:$0xff]  ;;  %v990_v52 = vmul.f32 %v988_v23, %v988_v23 }
 0x15d   : > { %v913_v43 = vmin.f32 %v871_v6, %v2755_v55  ;;  %1274 = vperm.xlu1 %1869, %v3157_v10   ;;  %v1026_v10 = vmul.f32 0.0625, %v1025_v4  ;;  %v3161_v8 = vld [vmem:[#allocation10_spill] sm:$0xff] }
 0x15e   : > { %v945_v48 = vsub.f32 %v943_v39, %v2219_v45  ;;  %v967_v39 = vpop.permute.xlu0 %966 }
 0x15f   : > { %v881_v62 = vpop.permute.xlu1 %880  ;;  %v914_v41 = vsel %vm912_vm13, %v913_v43, %v871_v6  ;;  %v1027_v7 = vfloor.f32 %v1026_v10  ;;  %vm969_vm8 = vcmp.ne.f32.partialorder %v2327_v11, %v967_v39 }
 0x160   : > { %vm883_vm15 = vcmp.ne.f32.partialorder %v2327_v11, %v881_v62  ;;  %v947_v3 = vmul.f32 %v945_v48, %v945_v48 }
 0x161   : > { %v885_v18 = vsel %vm883_vm15, %v884_v14, %v842_v63  ;;  %1871 = vset.pattern.permute.xlu1 %v3150_v15  ;;  %v1028_v29 = vmul.f32 16.0, %v1027_v7  ;;  %v3160_v14 = vld [vmem:[#allocation6_spill] sm:$0xff]  ;;  %v1030_v26 = vsub.f32 %v1027_v7, %v2198_v34 }
 0x162   : > { %1303 = vperm.xlu1 %1871, %v1896_v40   ;;  %v927_v19 = vmin.f32 %v885_v18, %v2755_v55  ;;  %v948_v2 = vadd.f32 %v947_v3, %v946_v0  ;;  %vm1005_vm6 = vcmp.ne.f32.partialorder %v2272_v24, %v3160_v14  ;;  %v1899_v14 = vld [vmem:[%s3124_s1 + $0xe8] sm:$0xff] }
 0x163   : > { %v1029_v63 = vsub.f32 %v1025_v4, %v1028_v29 }
 0x164   : > { %v888_v20 = vpop.permute.xlu1 %887  ;;  %v956_v5 = vmin.f32 %v914_v41, %v948_v2 }
 0x165   : > { %vm890_vm0 = vcmp.ne.f32.partialorder %v2517_v9, %v888_v20 }
 0x166   : > { %v892_v42 = vsel %vm890_vm0, %v891_v13, %v849_v60  ;;  %1872 = vset.pattern.permute.xlu1 %v3154_v51  ;;  %v1068_v60 = vcvt.s32.f32 %v1067_v58  ;;  %v1032_v13 = vmul.f32 %v1030_v26, %v1030_v26  ;;  %vm1062_vm0 = vcmp.ne.f32.partialorder %v2517_v9, %v2584_v12  ;;  %v3163_v12 = vld [vmem:[#allocation12_spill] sm:$0xff] }
 0x167   : > { %1310 = vperm.xlu1 %1872, %v1896_v40   ;;  %v934_v59 = vmin.f32 %v892_v42, %v2755_v55 }
 0x169   : > { %v917_v36 = vpop.permute.xlu1 %916  ;;  %v935_v62 = vsel %vm933_vm4, %v934_v59, %v892_v42 }
 0x16a   : > { %vm919_vm1 = vcmp.ne.f32.partialorder %v2272_v24, %v917_v36  ;;  %v977_v53 = vmin.f32 %v935_v62, %v948_v2  ;;  %v3162_v36 = vld [vmem:[#allocation9_spill] sm:$0xff] }
 0x16b   : > { %v921_v25 = vsel %vm919_vm1, %v920_v31, %v878_v28  ;;  %1873 = vset.pattern.permute.xlu1 %v3147_v1  ;;  %v987_v28 = vsub.f32 %v984_v61, %v2198_v34  ;;  %v1069_v61 = vmul.f32 0.0625, %v1068_v60  ;;  %vm1041_vm10 = vcmp.ne.f32.partialorder %v2452_v32, %v3162_v36 }
 0x16c   : > { %1339 = vperm.xlu1 %1873, %v1897_v37   ;;  %v963_v6 = vmin.f32 %v921_v25, %v948_v2 }
 0x16d   : > { %v989_v33 = vmul.f32 %v987_v28, %v987_v28  ;;  %v1070_v31 = vfloor.f32 %v1069_v61 }
 0x16e   : > { %v924_v49 = vpop.permute.xlu1 %923 }
 0x16f   : > { %vm926_vm2 = vcmp.ne.f32.partialorder %v2327_v11, %v924_v49  ;;  %v991_v22 = vadd.f32 %v990_v52, %v989_v33  ;;  %v1073_v29 = vsub.f32 %v1070_v31, %v2198_v34 }
 0x170   : > { %v928_v57 = vsel %vm926_vm2, %v927_v19, %v885_v18  ;;  %1874 = vset.pattern.permute.xlu1 %v3150_v15  ;;  %v1110_v19 = vadd.s32 168, %v2187_v27 }
 0x171   : > { %1346 = vperm.xlu1 %1874, %v1897_v37   ;;  %v970_v42 = vmin.f32 %v928_v57, %v948_v2  ;;  %v1898_v2 = vld [vmem:[%s3124_s1 + $0xe0] sm:$0xff] }
 0x173   : > { %v953_v50 = vpop.permute.xlu1 %952  ;;  %v971_v17 = vsel %vm969_vm8, %v970_v42, %v928_v57  ;;  %v1153_v57 = vadd.s32 176, %v2187_v27 }
 0x174   : > { %vm955_vm3 = vcmp.ne.f32.partialorder %v2452_v32, %v953_v50  ;;  %v1013_v3 = vmin.f32 %v971_v17, %v991_v22  ;;  %v1111_v50 = vcvt.s32.f32 %v1110_v19 }
 0x175   : > { %v957_v46 = vsel %vm955_vm3, %v956_v5, %v914_v41  ;;  %1875 = vset.pattern.permute.xlu1 %v3153_v56  ;;  %v1031_v41 = vsub.f32 %v1029_v63, %v2219_v45  ;;  %v1154_v52 = vcvt.s32.f32 %v1153_v57 }
 0x176   : > { %1360 = vperm.xlu1 %1875, %v1897_v37   ;;  %v999_v21 = vmin.f32 %v957_v46, %v991_v22  ;;  %v1071_v37 = vmul.f32 16.0, %v1070_v31 }
 0x177   : > { %v1033_v20 = vmul.f32 %v1031_v41, %v1031_v41  ;;  %v1096_v41 = vpop.permute.xlu0 %1095 }
 0x178   : > { %v960_v43 = vpop.permute.xlu1 %959  ;;  %v1072_v7 = vsub.f32 %v1068_v60, %v1071_v37  ;;  %vm1098_vm3 = vcmp.ne.f32.partialorder %v2327_v11, %v1096_v41  ;;  %v1282_v41 = vadd.s32 200, %v2187_v27 }
 0x179   : > { %vm962_vm5 = vcmp.ne.f32.partialorder %v2272_v24, %v960_v43  ;;  %v2804_v4 = vadd.f32 %v1033_v20, %v1032_v13 }
 0x17a   : > { %v964_v16 = vsel %vm962_vm5, %v963_v6, %v921_v25  ;;  %1876 = vset.pattern.permute.xlu1 %v3147_v1  ;;  %v1074_v33 = vsub.f32 %v1072_v7, %v2219_v45  ;;  %v1075_v6 = vmul.f32 %v1073_v29, %v1073_v29 }
 0x17b   : > { %v1006_v55 = vmin.f32 %v964_v16, %v991_v22  ;;  %1382 = vperm.xlu1 %1876, %v3161_v8   ;;  %v2834_v61 = vpop.permute.xlu0 %1224 }
 0x17c   : > { %v1076_v43 = vmul.f32 %v1074_v33, %v1074_v33 }
 0x17d   : > { %v974_v18 = vpop.permute.xlu1 %973  ;;  %v1007_v40 = vsel %vm1005_vm6, %v1006_v55, %v964_v16 }
 0x17e   : > { %vm976_vm7 = vcmp.ne.f32.partialorder %v2517_v9, %v974_v18  ;;  %v1049_v63 = vmin.f32 %v1007_v40, %v2804_v4 }
 0x17f   : > { %v978_v47 = vsel %vm976_vm7, %v977_v53, %v935_v62  ;;  %1877 = vset.pattern.permute.xlu1 %v3154_v51  ;;  %v2846_v37 = vpop.permute.xlu0 %1353 }
 0x180   : > { %1396 = vperm.xlu1 %1877, %v3161_v8   ;;  %v1020_v28 = vmin.f32 %v978_v47, %v991_v22  ;;  %v1155_v22 = vmul.f32 0.0625, %v1154_v52 }
 0x182   : > { %v996_v48 = vpop.permute.xlu1 %995  ;;  %v1156_v26 = vfloor.f32 %v1155_v22 }
 0x183   : > { %vm998_vm9 = vcmp.ne.f32.partialorder %v2452_v32, %v996_v48  ;;  %v2852_v29 = vpop.permute.xlu0 %1482 }
 0x184   : > { %v1000_v25 = vsel %vm998_vm9, %v999_v21, %v957_v46  ;;  %1878 = vset.pattern.permute.xlu1 %v3153_v56  ;;  %v1112_v46 = vmul.f32 0.0625, %v1111_v50  ;;  %v1157_v39 = vmul.f32 16.0, %v1156_v26  ;;  %v1196_v21 = vadd.s32 184, %v2187_v27 }
 0x185   : > { %v1042_v0 = vmin.f32 %v1000_v25, %v2804_v4  ;;  %1403 = vperm.xlu1 %1878, %v3161_v8   ;;  %v1077_v8 = vadd.f32 %v1076_v43, %v1075_v6 }
 0x186   : > { %v1113_v16 = vfloor.f32 %v1112_v46  ;;  %v1158_v42 = vsub.f32 %v1154_v52, %v1157_v39 }
 0x187   : > { %v1010_v10 = vpop.permute.xlu1 %1009  ;;  %v1043_v35 = vsel %vm1041_vm10, %v1042_v0, %v1000_v25  ;;  %v1159_v0 = vsub.f32 %v1156_v26, %v2198_v34 }
 0x188   : > { %vm1012_vm11 = vcmp.ne.f32.partialorder %v2327_v11, %v1010_v10  ;;  %v1114_v18 = vmul.f32 16.0, %v1113_v16  ;;  %v1116_v31 = vsub.f32 %v1113_v16, %v2198_v34  ;;  %v1197_v10 = vcvt.s32.f32 %v1196_v21 }
 0x189   : > { %v1014_v49 = vsel %vm1012_vm11, %v1013_v3, %v971_v17  ;;  %1879 = vset.pattern.permute.xlu1 %v3150_v15  ;;  %v1160_v3 = vsub.f32 %v1158_v42, %v2219_v45  ;;  %v1161_v7 = vmul.f32 %v1159_v0, %v1159_v0 }
 0x18a   : > { %1432 = vperm.xlu1 %1879, %v1898_v2   ;;  %v1056_v62 = vmin.f32 %v1014_v49, %v2804_v4 }
 0x18b   : > { %v1162_v57 = vmul.f32 %v1160_v3, %v1160_v3  ;;  %v1985_v3 = vmov 1e+30  }
 0x18c   : > { %v1017_v23 = vpop.permute.xlu1 %1016  ;;  %177 = vst [vmem:[%s2886_s6] sm:$0xf] %v1985_v3 }
 0x18d   : > { %vm1019_vm12 = vcmp.ne.f32.partialorder %v2517_v9, %v1017_v23  ;;  %v2854_v52 = vadd.f32 %v1162_v57, %v1161_v7 }
 0x18e   : > { %v1021_v5 = vsel %vm1019_vm12, %v1020_v28, %v978_v47  ;;  %1880 = vset.pattern.permute.xlu1 %v3154_v51  ;;  %v1115_v47 = vsub.f32 %v1111_v50, %v1114_v18 }
 0x18f   : > { %1439 = vperm.xlu1 %1880, %v1898_v2   ;;  %v1063_v20 = vmin.f32 %v1021_v5, %v2804_v4 }
 0x190   : > { %v1117_v36 = vsub.f32 %v1115_v47, %v2219_v45 }
 0x191   : > { %v1046_v59 = vpop.permute.xlu1 %1045  ;;  %v1064_v4 = vsel %vm1062_vm0, %v1063_v20, %v1021_v5 }
 0x192   : > { %vm1048_vm13 = vcmp.ne.f32.partialorder %v2272_v24, %v1046_v59  ;;  %v1119_v19 = vmul.f32 %v1117_v36, %v1117_v36  ;;  %v1106_v2 = vmin.f32 %v1064_v4, %v1077_v8  ;;  %v3164_v59 = vld [vmem:[#allocation11_spill] sm:$0xff] }
 0x193   : > { %v1050_v58 = vsel %vm1048_vm13, %v1049_v63, %v1007_v40  ;;  %1882 = vset.pattern.permute.xlu1 %v3147_v1  ;;  %v1085_v40 = vmin.f32 %v1043_v35, %v1077_v8  ;;  %vm1170_vm5 = vcmp.ne.f32.partialorder %v2452_v32, %v3164_v59 }
 0x194   : > { %1468 = vperm.xlu1 %1882, %v1899_v14   ;;  %v1092_v48 = vmin.f32 %v1050_v58, %v1077_v8 }
 0x196   : > { %v1053_v55 = vpop.permute.xlu1 %1052 }
 0x197   : > { %vm1055_vm14 = vcmp.ne.f32.partialorder %v2327_v11, %v1053_v55  ;;  %v1239_v55 = vadd.s32 192, %v2187_v27 }
 0x198   : > { %v1057_v60 = vsel %vm1055_vm14, %v1056_v62, %v1014_v49  ;;  %1883 = vset.pattern.permute.xlu1 %v3150_v15  ;;  %v1132_v62 = vpop.permute.xlu0 %1131  ;;  %vm1191_vm14 = vcmp.ne.f32.partialorder %v2517_v9, %v2613_v30 }
 0x199   : > { %1475 = vperm.xlu1 %1883, %v1899_v14   ;;  %v1099_v23 = vmin.f32 %v1057_v60, %v1077_v8  ;;  %vm1134_vm7 = vcmp.ne.f32.partialorder %v2272_v24, %v1132_v62 }
 0x19b   : > { %v1082_v53 = vpop.permute.xlu1 %1081 }
 0x19c   : > { %vm1084_vm15 = vcmp.ne.f32.partialorder %v2452_v32, %v1082_v53  ;;  %v1240_v53 = vcvt.s32.f32 %v1239_v55  ;;  %v3165_v55 = vld [vmem:[#allocation13_spill] sm:$0xff] }
 0x19d   : > { %v1086_v13 = vsel %vm1084_vm15, %v1085_v40, %v1043_v35  ;;  %1885 = vset.pattern.permute.xlu1 %v3153_v56  ;;  %v1118_v35 = vmul.f32 %v1116_v31, %v1116_v31  ;;  %vm1299_vm13 = vcmp.ne.f32.partialorder %v2452_v32, %v3165_v55 }
 0x19e   : > { %1489 = vperm.xlu1 %1885, %v1899_v14   ;;  %v1241_v20 = vmul.f32 0.0625, %v1240_v53 }
 0x19f   : > { %v1120_v50 = vadd.f32 %v1119_v19, %v1118_v35 }
 0x1a0   : > { %v1089_v17 = vpop.permute.xlu1 %1088 }
 0x1a1   : > { %vm1091_vm1 = vcmp.ne.f32.partialorder %v2272_v24, %v1089_v17  ;;  %v1128_v5 = vmin.f32 %v1086_v13, %v1120_v50 }
 0x1a2   : > { %v1093_v25 = vsel %vm1091_vm1, %v1092_v48, %v1050_v58  ;;  %1886 = vset.pattern.permute.xlu1 %v3147_v1  ;;  %v1198_v1 = vmul.f32 0.0625, %v1197_v10  ;;  %v1100_v58 = vsel %vm1098_vm3, %v1099_v23, %v1057_v60  ;;  %vm1227_vm1 = vcmp.ne.f32.partialorder %v2327_v11, %v2834_v61 }
 0x1a3   : > { %1511 = vperm.xlu1 %1886, %v3163_v12   ;;  %v1142_v22 = vmin.f32 %v1100_v58, %v1120_v50  ;;  %v1135_v26 = vmin.f32 %v1093_v25, %v1120_v50 }
 0x1a4   : > { %v1199_v46 = vfloor.f32 %v1198_v1 }
 0x1a5   : > { %v1103_v49 = vpop.permute.xlu1 %1102  ;;  %v1136_v40 = vsel %vm1134_vm7, %v1135_v26, %v1093_v25  ;;  %v1242_v25 = vfloor.f32 %v1241_v20 }
 0x1a6   : > { %vm1105_vm2 = vcmp.ne.f32.partialorder %v2517_v9, %v1103_v49  ;;  %v1200_v14 = vmul.f32 16.0, %v1199_v46  ;;  %v1178_v42 = vmin.f32 %v1136_v40, %v2854_v52 }
 0x1a7   : > { %v1107_v28 = vsel %vm1105_vm2, %v1106_v2, %v1064_v4  ;;  %1888 = vset.pattern.permute.xlu1 %v3154_v51 }
 0x1a8   : > { %1525 = vperm.xlu1 %1888, %v3163_v12   ;;  %v1149_v60 = vmin.f32 %v1107_v28, %v1120_v50 }
 0x1aa   : > { %v1125_v33 = vpop.permute.xlu1 %1124 }
 0x1ab   : > { %vm1127_vm4 = vcmp.ne.f32.partialorder %v2452_v32, %v1125_v33 }
 0x1ac   : > { %v1129_v63 = vsel %vm1127_vm4, %v1128_v5, %v1086_v13  ;;  %1889 = vset.pattern.permute.xlu1 %v3153_v56  ;;  %v1201_v56 = vsub.f32 %v1197_v10, %v1200_v14  ;;  %v1283_v13 = vcvt.s32.f32 %v1282_v41  ;;  %v1243_v10 = vmul.f32 16.0, %v1242_v25 }
 0x1ad   : > { %v1171_v6 = vmin.f32 %v1129_v63, %v2854_v52  ;;  %1532 = vperm.xlu1 %1889, %v3163_v12  }
 0x1ae   : > { %v1203_v47 = vsub.f32 %v1201_v56, %v2219_v45  ;;  %v1284_v17 = vmul.f32 0.0625, %v1283_v13  ;;  %v1244_v2 = vsub.f32 %v1240_v53, %v1243_v10 }
 0x1af   : > { %v1139_v43 = vpop.permute.xlu1 %1138  ;;  %v1172_v16 = vsel %vm1170_vm5, %v1171_v6, %v1129_v63 }
 0x1b0   : > { %vm1141_vm6 = vcmp.ne.f32.partialorder %v2327_v11, %v1139_v43  ;;  %v1205_v36 = vmul.f32 %v1203_v47, %v1203_v47  ;;  %v1285_v0 = vfloor.f32 %v1284_v17  ;;  %v1246_v1 = vsub.f32 %v1244_v2, %v2219_v45 }
 0x1b1   : > { %v1143_v8 = vsel %vm1141_vm6, %v1142_v22, %v1100_v58  ;;  %1890 = vset.pattern.permute.xlu1 %v3150_v15  ;;  %v1202_v15 = vsub.f32 %v1199_v46, %v2198_v34 }
 0x1b2   : > { %1561 = vperm.xlu1 %1890, %v2609_v44   ;;  %v1286_v49 = vmul.f32 16.0, %v1285_v0  ;;  %v1288_v50 = vsub.f32 %v1285_v0, %v2198_v34  ;;  %v1248_v46 = vmul.f32 %v1246_v1, %v1246_v1 }
 0x1b3   : > { %v1204_v31 = vmul.f32 %v1202_v15, %v1202_v15  ;;  %v1368_v15 = vadd.s32 216, %v2187_v27 }
 0x1b4   : > { %v1146_v18 = vpop.permute.xlu1 %1145  ;;  %v1287_v57 = vsub.f32 %v1283_v13, %v1286_v49  ;;  %v1290_v63 = vmul.f32 %v1288_v50, %v1288_v50 }
 0x1b5   : > { %vm1148_vm8 = vcmp.ne.f32.partialorder %v2517_v9, %v1146_v18  ;;  %v2883_v4 = vadd.f32 %v1205_v36, %v1204_v31  ;;  %v1325_v18 = vadd.s32 208, %v2187_v27  ;;  %v1369_v20 = vcvt.s32.f32 %v1368_v15 }
 0x1b6   : > { %v2869_v39 = vsel %vm1148_vm8, %v1149_v60, %v1107_v28  ;;  %1891 = vset.pattern.permute.xlu1 %v3154_v51  ;;  %v1185_v51 = vmin.f32 %v1143_v8, %v2854_v52  ;;  %v1245_v28 = vsub.f32 %v1242_v25, %v2198_v34  ;;  %v1289_v5 = vsub.f32 %v1287_v57, %v2219_v45 }
 0x1b7   : > { %1568 = vperm.xlu1 %1891, %v2609_v44   ;;  %v1214_v19 = vmin.f32 %v1172_v16, %v2883_v4  ;;  %v1370_v31 = vmul.f32 0.0625, %v1369_v20  ;;  %v1192_v49 = vmin.f32 %v2869_v39, %v2854_v52  ;;  %v2939_v57 = vadd.s32 240, %v2187_v27 }
 0x1b8   : > { %v1247_v33 = vmul.f32 %v1245_v28, %v1245_v28  ;;  %v1291_v58 = vmul.f32 %v1289_v5, %v1289_v5  ;;  %vm1320_vm8 = vcmp.ne.f32.partialorder %v2517_v9, %v2639_v38 }
 0x1b9   : > { %v1175_v21 = vpop.permute.xlu1 %1174  ;;  %v1193_v52 = vsel %vm1191_vm14, %v1192_v49, %v2869_v39 }
 0x1ba   : > { %vm1177_vm9 = vcmp.ne.f32.partialorder %v2272_v24, %v1175_v21  ;;  %v2901_v6 = vadd.f32 %v1248_v46, %v1247_v33  ;;  %v2904_v14 = vadd.f32 %v1291_v58, %v1290_v63  ;;  %v2947_v33 = vadd.s32 248, %v2187_v27 }
 0x1bb   : > { %v2877_v48 = vsel %vm1177_vm9, %v1178_v42, %v1136_v40  ;;  %v1326_v40 = vcvt.s32.f32 %v1325_v18  ;;  %v1411_v42 = vadd.s32 224, %v2187_v27  ;;  %v1498_v63 = vcvt.s32.f32 %v2939_v57 }
 0x1bc   : > { %v1221_v30 = vmin.f32 %v2877_v48, %v2883_v4  ;;  %v1541_v18 = vcvt.s32.f32 %v2947_v33 }
 0x1bd   : > { %v1327_v47 = vmul.f32 0.0625, %v1326_v40  ;;  %v1412_v17 = vcvt.s32.f32 %v1411_v42  ;;  %v2965_v15 = vmul.f32 0.0625, %v1498_v63 }
 0x1be   : > { %v1182_v44 = vpop.permute.xlu1 %1181 }
 0x1bf   : > { %vm1184_vm10 = vcmp.ne.f32.partialorder %v2327_v11, %v1182_v44  ;;  %v1328_v21 = vfloor.f32 %v1327_v47  ;;  %v1454_v44 = vadd.s32 232, %v2187_v27  ;;  %v1413_v3 = vmul.f32 0.0625, %v1412_v17 }
 0x1c0   : > { %v2889_v12 = vsel %vm1184_vm10, %v1185_v51, %v1143_v8  ;;  %v1371_v51 = vfloor.f32 %v1370_v31  ;;  %v1235_v27 = vmin.f32 %v1193_v52, %v2883_v4 }
 0x1c1   : > { %v1329_v25 = vmul.f32 16.0, %v1328_v21  ;;  %v1414_v2 = vfloor.f32 %v1413_v3  ;;  %v1331_v28 = vsub.f32 %v1328_v21, %v2198_v34 }
 0x1c3   : > { %v1211_v35 = vpop.permute.xlu1 %1210  ;;  %v1330_v10 = vsub.f32 %v1326_v40, %v1329_v25  ;;  %v1415_v46 = vmul.f32 16.0, %v1414_v2  ;;  %v1333_v58 = vmul.f32 %v1331_v28, %v1331_v28 }
 0x1c4   : > { %vm1213_vm11 = vcmp.ne.f32.partialorder %v2452_v32, %v1211_v35  ;;  %v1372_v35 = vmul.f32 16.0, %v1371_v51 }
 0x1c5   : > { %v1215_v7 = vsel %vm1213_vm11, %v1214_v19, %v1172_v16  ;;  %v1455_v19 = vcvt.s32.f32 %v1454_v44  ;;  %v1332_v1 = vsub.f32 %v1330_v10, %v2219_v45  ;;  %v1416_v40 = vsub.f32 %v1412_v17, %v1415_v46 }
 0x1c6   : > { %v1257_v43 = vmin.f32 %v1215_v7, %v2901_v6  ;;  %v1373_v50 = vsub.f32 %v1369_v20, %v1372_v35  ;;  %v1417_v44 = vsub.f32 %v1414_v2, %v2198_v34 }
 0x1c7   : > { %v1456_v5 = vmul.f32 0.0625, %v1455_v19  ;;  %v1418_v3 = vsub.f32 %v1416_v40, %v2219_v45 }
 0x1c8   : > { %v2895_v23 = vpop.permute.xlu1 %1217 }
 0x1c9   : > { %vm1220_vm15 = vcmp.ne.f32.partialorder %v2272_v24, %v2895_v23  ;;  %v1261_v23 = vpop.permute.xlu0 %1260  ;;  %v1457_v55 = vfloor.f32 %v1456_v5  ;;  %v1420_v46 = vmul.f32 %v1418_v3, %v1418_v3 }
 0x1ca   : > { %v1222_v39 = vsel %vm1220_vm15, %v1221_v30, %v2877_v48  ;;  %v1228_v48 = vmin.f32 %v2889_v12, %v2883_v4  ;;  %vm1263_vm2 = vcmp.ne.f32.partialorder %v2272_v24, %v1261_v23  ;;  %v1542_v4 = vmul.f32 0.0625, %v1541_v18 }
 0x1cb   : > { %v1264_v47 = vmin.f32 %v1222_v39, %v2901_v6  ;;  %v1458_v31 = vmul.f32 16.0, %v1457_v55 }
 0x1cc   : > { %v1229_v35 = vsel %vm1227_vm1, %v1228_v48, %v2889_v12  ;;  %v1543_v61 = vfloor.f32 %v1542_v4 }
 0x1cd   : > { %v2899_v59 = vpop.permute.xlu1 %1231  ;;  %v1265_v10 = vsel %vm1263_vm2, %v1264_v47, %v1222_v39 }
 0x1ce   : > { %vm1234_vm0 = vcmp.ne.f32.partialorder %v2517_v9, %v2899_v59  ;;  %v1307_v12 = vmin.f32 %v1265_v10, %v2904_v14  ;;  %v1546_v33 = vsub.f32 %v1543_v61, %v2198_v34 }
 0x1cf   : > { %v1236_v59 = vsel %vm1234_vm0, %v1235_v27, %v1193_v52  ;;  %v1271_v52 = vmin.f32 %v1229_v35, %v2901_v6 }
 0x1d0   : > { %v1278_v25 = vmin.f32 %v1236_v59, %v2901_v6  ;;  %v1544_v6 = vmul.f32 16.0, %v1543_v61 }
 0x1d2   : > { %v1254_v22 = vpop.permute.xlu1 %1253 }
 0x1d3   : > { %vm1256_vm12 = vcmp.ne.f32.partialorder %v2452_v32, %v1254_v22  ;;  %v1374_v22 = vsub.f32 %v1371_v51, %v2198_v34  ;;  %v2978_v51 = vpop.permute.xlu0 %1389 }
 0x1d4   : > { %v1258_v16 = vsel %vm1256_vm12, %v1257_v43, %v1215_v7  ;;  %v1334_v43 = vmul.f32 %v1332_v1, %v1332_v1  ;;  %vm1392_vm14 = vcmp.ne.f32.partialorder %v2272_v24, %v2978_v51  ;;  %v1548_v51 = vmul.f32 %v1546_v33, %v1546_v33 }
 0x1d5   : > { %v1300_v62 = vmin.f32 %v1258_v16, %v2904_v14  ;;  %v1376_v42 = vmul.f32 %v1374_v22, %v1374_v22 }
 0x1d6   : > { %v2971_v20 = vadd.f32 %v1334_v43, %v1333_v58 }
 0x1d7   : > { %v2910_v8 = vpop.permute.xlu1 %1267  ;;  %v2912_v26 = vsel %vm1299_vm13, %v1300_v62, %v1258_v16  ;;  %v1375_v62 = vsub.f32 %v1373_v50, %v2219_v45  ;;  %v1459_v50 = vsub.f32 %v1455_v19, %v1458_v31  ;;  %v3000_v2 = vpop.permute.xlu0 %1518  ;;  %v1419_v19 = vmul.f32 %v1417_v44, %v1417_v44 }
 0x1d8   : > { %v1343_v28 = vmin.f32 %v2912_v26, %v2971_v20  ;;  %vm1270_vm5 = vcmp.ne.f32.partialorder %v2327_v11, %v2910_v8  ;;  %v1460_v8 = vsub.f32 %v1457_v55, %v2198_v34  ;;  %vm1356_vm13 = vcmp.ne.f32.partialorder %v2327_v11, %v2846_v37 }
 0x1d9   : > { %v1377_v21 = vmul.f32 %v1375_v62, %v1375_v62  ;;  %v1461_v22 = vsub.f32 %v1459_v50, %v2219_v45  ;;  %v1421_v55 = vadd.f32 %v1420_v46, %v1419_v19 }
 0x1da   : > { %v1462_v38 = vmul.f32 %v1460_v8, %v1460_v8 }
 0x1db   : > { %v2993_v1 = vadd.f32 %v1377_v21, %v1376_v42 }
 0x1dc   : > { %v2914_v56 = vpop.permute.xlu1 %1274 }
 0x1dd   : > { %vm1277_vm3 = vcmp.ne.f32.partialorder %v2517_v9, %v2914_v56  ;;  %v1500_v56 = vfloor.f32 %v2965_v15 }
 0x1de   : > { %v1279_v49 = vsel %vm1277_vm3, %v1278_v25, %v1236_v59  ;;  %v1426_v59 = vpop.permute.xlu0 %1425  ;;  %vm1449_vm3 = vcmp.ne.f32.partialorder %v2517_v9, %v2661_v54 }
 0x1df   : > { %v1321_v30 = vmin.f32 %v1279_v49, %v2904_v14  ;;  %vm1428_vm12 = vcmp.ne.f32.partialorder %v2452_v32, %v1426_v59  ;;  %v1503_v21 = vsub.f32 %v1500_v56, %v2198_v34 }
 0x1e1   : > { %v2916_v41 = vpop.permute.xlu1 %1303  ;;  %v1505_v37 = vmul.f32 %v1503_v21, %v1503_v21 }
 0x1e2   : > { %vm1306_vm6 = vcmp.ne.f32.partialorder %v2272_v24, %v2916_v41  ;;  %v1501_v41 = vmul.f32 16.0, %v1500_v56  ;;  %v1555_v61 = vpop.permute.xlu0 %1554 }
 0x1e3   : > { %v1308_v58 = vsel %vm1306_vm6, %v1307_v12, %v1265_v10 }
 0x1e4   : > { %v1350_v62 = vmin.f32 %v1308_v58, %v2971_v20  ;;  %v1502_v40 = vsub.f32 %v1498_v63, %v1501_v41 }
 0x1e6   : > { %v2918_v60 = vpop.permute.xlu1 %1310  ;;  %v1504_v57 = vsub.f32 %v1502_v40, %v2219_v45 }
 0x1e7   : > { %vm1313_vm9 = vcmp.ne.f32.partialorder %v2327_v11, %v2918_v60  ;;  %v1463_v60 = vmul.f32 %v1461_v22, %v1461_v22 }
 0x1e9   : > { %v1464_v25 = vadd.f32 %v1463_v60, %v1462_v38 }
 0x1eb   : > { %v2921_v53 = vpop.permute.xlu1 %1339 }
 0x1ec   : > { %vm1342_vm4 = vcmp.ne.f32.partialorder %v2452_v32, %v2921_v53 }
 0x1ed   : > { %v1344_v53 = vsel %vm1342_vm4, %v1343_v28, %v2912_v26  ;;  %v1272_v26 = vsel %vm1270_vm5, %v1271_v52, %v1229_v35  ;;  %vm1557_vm5 = vcmp.ne.f32.partialorder %v2452_v32, %v1555_v61 }
 0x1ee   : > { %v1386_v43 = vmin.f32 %v1344_v53, %v2993_v1  ;;  %v1314_v27 = vmin.f32 %v1272_v26, %v2904_v14  ;;  %v1545_v14 = vsub.f32 %v1541_v18, %v1544_v6 }
 0x1f0   : > { %v2924_v13 = vpop.permute.xlu1 %1346  ;;  %v1315_v15 = vsel %vm1313_vm9, %v1314_v27, %v1272_v26  ;;  %v1547_v44 = vsub.f32 %v1545_v14, %v2219_v45  ;;  %vm1485_vm9 = vcmp.ne.f32.partialorder %v2327_v11, %v2852_v29 }
 0x1f1   : > { %vm1349_vm10 = vcmp.ne.f32.partialorder %v2272_v24, %v2924_v13 }
 0x1f2   : > { %v1351_v48 = vsel %vm1349_vm10, %v1350_v62, %v1308_v58  ;;  %vm1521_vm10 = vcmp.ne.f32.partialorder %v2272_v24, %v3000_v2 }
 0x1f3   : > { %v1393_v31 = vmin.f32 %v1351_v48, %v2993_v1 }
 0x1f5   : > { %v2927_v36 = vpop.permute.xlu1 %1360  ;;  %v1394_v3 = vsel %vm1392_vm14, %v1393_v31, %v1351_v48 }
 0x1f6   : > { %vm1363_vm11 = vcmp.ne.f32.partialorder %v2517_v9, %v2927_v36  ;;  %v1357_v36 = vmin.f32 %v1315_v15, %v2971_v20  ;;  %v1436_v28 = vmin.f32 %v1394_v3, %v1421_v55 }
 0x1f8   : > { %v1358_v10 = vsel %vm1356_vm13, %v1357_v36, %v1315_v15 }
 0x1f9   : > { %v1400_v45 = vmin.f32 %v1358_v10, %v2993_v1 }
 0x1fa   : > { %v2930_v0 = vpop.permute.xlu1 %1382 }
 0x1fb   : > { %vm1385_vm7 = vcmp.ne.f32.partialorder %v2452_v32, %v2930_v0  ;;  %v1322_v0 = vsel %vm1320_vm8, %v1321_v30, %v1279_v49 }
 0x1fc   : > { %v1387_v39 = vsel %vm1385_vm7, %v1386_v43, %v1344_v53  ;;  %v1364_v13 = vmin.f32 %v1322_v0, %v2971_v20  ;;  %v1506_v20 = vmul.f32 %v1504_v57, %v1504_v57 }
 0x1fd   : > { %v1429_v47 = vmin.f32 %v1387_v39, %v1421_v55 }
 0x1fe   : > { %v1365_v42 = vsel %vm1363_vm11, %v1364_v13, %v1322_v0  ;;  %v1507_v53 = vadd.f32 %v1506_v20, %v1505_v37 }
 0x1ff   : > { %v2936_v7 = vpop.permute.xlu1 %1396  ;;  %v1430_v4 = vsel %vm1428_vm12, %v1429_v47, %v1387_v39  ;;  %v1407_v18 = vmin.f32 %v1365_v42, %v2993_v1 }
 0x200   : > { %v1472_v56 = vmin.f32 %v1430_v4, %v1464_v25  ;;  %vm1399_vm1 = vcmp.ne.f32.partialorder %v2327_v11, %v2936_v7 }
 0x201   : > { %v1401_v12 = vsel %vm1399_vm1, %v1400_v45, %v1358_v10  ;;  %vm1607_vm1 = vcmask 1041408  }
 0x202   : > { %v1443_v46 = vmin.f32 %v1401_v12, %v1421_v55 }
 0x204   : > { %v2955_v16 = vpop.permute.xlu1 %1403 }
 0x205   : > { %vm1406_vm15 = vcmp.ne.f32.partialorder %v2517_v9, %v2955_v16  ;;  %v1549_v16 = vmul.f32 %v1547_v44, %v1547_v44 }
 0x206   : > { %v1408_v35 = vsel %vm1406_vm15, %v1407_v18, %v1365_v42 }
 0x207   : > { %v1450_v50 = vmin.f32 %v1408_v35, %v1421_v55  ;;  %v1550_v7 = vadd.f32 %v1549_v16, %v1548_v51 }
 0x209   : > { %v2975_v17 = vpop.permute.xlu1 %1432 }
 0x20a   : > { %vm1435_vm2 = vcmp.ne.f32.partialorder %v2272_v24, %v2975_v17  ;;  %v1451_v17 = vsel %vm1449_vm3, %v1450_v50, %v1408_v35 }
 0x20b   : > { %v1437_v52 = vsel %vm1435_vm2, %v1436_v28, %v1394_v3  ;;  %v1493_v54 = vmin.f32 %v1451_v17, %v1464_v25  ;;  %vm1609_vm2 = vcmask 1042432   ;;  %v1611_v28 = vld [vmem:[%s2886_s6] sm:$0xf] }
 0x20c   : > { %v1479_v8 = vmin.f32 %v1437_v52, %v1464_v25 }
 0x20e   : > { %v3002_v5 = vpop.permute.xlu1 %1439 }
 0x20f   : > { %vm1442_vm6 = vcmp.ne.f32.partialorder %v2327_v11, %v3002_v5 }
 0x210   : > { %v1444_v26 = vsel %vm1442_vm6, %v1443_v46, %v1401_v12  ;;  %v1900_v12 = vld [vmem:[%s2251_s16] sm:$0xf]  ;;  %s3073_s16 = scalar_lea.hbm %s3125_s2, %s1738_s7 }
 0x211   : > { %v1486_v0 = vmin.f32 %v1444_v26, %v1464_v25 }
 0x213   : > { %v1469_v23 = vpop.permute.xlu1 %1468  ;;  %v1487_v55 = vsel %vm1485_vm9, %v1486_v0, %v1444_v26 }
 0x214   : > { %vm1471_vm0 = vcmp.ne.f32.partialorder %v2452_v32, %v1469_v23  ;;  %v1576_v23 = vpop.permute.xlu0 %1575  ;;  %v1529_v60 = vmin.f32 %v1487_v55, %v1507_v53 }
 0x215   : > { %v1473_v34 = vsel %vm1471_vm0, %v1472_v56, %v1430_v4  ;;  %vm1578_vm12 = vcmp.ne.f32.partialorder %v2517_v9, %v1576_v23  ;;  %vm1605_vm0 = vcmask 1040384  }
 0x216   : > { %v1515_v30 = vmin.f32 %v1473_v34, %v1507_v53 }
 0x218   : > { %v1476_v63 = vpop.permute.xlu1 %1475 }
 0x219   : > { %vm1478_vm7 = vcmp.ne.f32.partialorder %v2272_v24, %v1476_v63 }
 0x21a   : > { %v1480_v58 = vsel %vm1478_vm7, %v1479_v8, %v1437_v52  ;;  %v1618_v52 = vmul.f32 2.0, %v1900_v12 }
 0x21d   : > { %v1490_v49 = vpop.permute.xlu1 %1489 }
 0x21e   : > { %vm1492_vm8 = vcmp.ne.f32.partialorder %v2517_v9, %v1490_v49 }
 0x21f   : > { %v1494_v6 = vsel %vm1492_vm8, %v1493_v54, %v1451_v17 }
 0x220   : > { %v1536_v5 = vmin.f32 %v1494_v6, %v1507_v53 }
 0x222   : > { %v1512_v19 = vpop.permute.xlu1 %1511 }
 0x223   : > { %vm1514_vm4 = vcmp.ne.f32.partialorder %v2452_v32, %v1512_v19  ;;  %v1522_v32 = vmin.f32 %v1480_v58, %v1507_v53  ;;  %v1736_v19 = vadd.f32 -1.0, %v1618_v52 }
 0x224   : > { %v1516_v1 = vsel %vm1514_vm4, %v1515_v30, %v1473_v34 }
 0x225   : > { %v1558_v41 = vmin.f32 %v1516_v1, %v1550_v7  ;;  %v1523_v40 = vsel %vm1521_vm10, %v1522_v32, %v1480_v58 }
 0x226   : > { %v1565_v13 = vmin.f32 %v1523_v40, %v1550_v7 }
 0x227   : > { %v1559_v43 = vsel %vm1557_vm5, %v1558_v41, %v1516_v1  ;;  %v1526_v22 = vpop.permute.xlu1 %1525 }
 0x228   : > { %v1581_v39 = vrot.slane %v1559_v43, 4  ;;  %vm1528_vm13 = vcmp.ne.f32.partialorder %v2327_v11, %v1526_v22 }
 0x229   : > { %v1530_v2 = vsel %vm1528_vm13, %v1529_v60, %v1487_v55 }
 0x22a   : > { %v1582_v62 = vmin.f32 %v1559_v43, %v1581_v39  ;;  %v1572_v57 = vmin.f32 %v1530_v2, %v1550_v7 }
 0x22c   : > { %v1533_v27 = vpop.permute.xlu1 %1532  ;;  %v1583_v47 = vrot.slane %v1582_v62, 2 }
 0x22d   : > { %vm1535_vm11 = vcmp.ne.f32.partialorder %v2517_v9, %v1533_v27 }
 0x22e   : > { %v1537_v59 = vsel %vm1535_vm11, %v1536_v5, %v1494_v6  ;;  %v1584_v9 = vmin.f32 %v1582_v62, %v1583_v47 }
 0x22f   : > { %v1579_v38 = vmin.f32 %v1537_v59, %v1550_v7 }
 0x230   : > { %v1585_v18 = vrot.slane %v1584_v9, 1 }
 0x231   : > { %v1580_v15 = vsel %vm1578_vm12, %v1579_v38, %v1537_v59  ;;  %v1562_v48 = vpop.permute.xlu1 %1561 }
 0x232   : > { %v1599_v29 = vrot.slane %v1580_v15, 4  ;;  %vm1564_vm14 = vcmp.ne.f32.partialorder %v2272_v24, %v1562_v48  ;;  %v1586_v56 = vmin.f32 %v1584_v9, %v1585_v18 }
 0x233   : > { %v1566_v14 = vsel %vm1564_vm14, %v1565_v13, %v1523_v40 }
 0x234   : > { %v1600_v42 = vmin.f32 %v1580_v15, %v1599_v29  ;;  %v1587_v21 = vrot.slane %v1566_v14, 4 }
 0x236   : > { %v1588_v63 = vmin.f32 %v1566_v14, %v1587_v21  ;;  %v1569_v36 = vpop.permute.xlu1 %1568  ;;  %v1601_v31 = vrot.slane %v1600_v42, 2 }
 0x237   : > { %vm1571_vm15 = vcmp.ne.f32.partialorder %v2327_v11, %v1569_v36 }
 0x238   : > { %v1589_v25 = vrot.slane %v1588_v63, 2  ;;  %v1573_v4 = vsel %vm1571_vm15, %v1572_v57, %v1530_v2  ;;  %v1602_v20 = vmin.f32 %v1600_v42, %v1601_v31 }
 0x239   : > { %v1593_v33 = vrot.slane %v1573_v4, 4 }
 0x23a   : > { %v1590_v44 = vmin.f32 %v1588_v63, %v1589_v25  ;;  %v1603_v49 = vrot.slane %v1602_v20, 1 }
 0x23b   : > { %v1594_v37 = vmin.f32 %v1573_v4, %v1593_v33 }
 0x23c   : > { %v1591_v24 = vrot.slane %v1590_v44, 1  ;;  %v1604_v16 = vmin.f32 %v1602_v20, %v1603_v49 }
 0x23d   : > { %v1595_v3 = vrot.slane %v1594_v37, 2 }
 0x23e   : > { %v1592_v10 = vmin.f32 %v1590_v44, %v1591_v24 }
 0x23f   : > { %v1596_v35 = vmin.f32 %v1594_v37, %v1595_v3 }
 0x240   : > { %v1606_v11 = vsel %vm1605_vm0, %v1586_v56, %v1592_v10 }
 0x241   : > { %v1597_v51 = vrot.slane %v1596_v35, 1 }
 0x243   : > { %v1598_v34 = vmin.f32 %v1596_v35, %v1597_v51 }
 0x245   : > { %v1608_v45 = vsel %vm1607_vm1, %v1606_v11, %v1598_v34 }
 0x246   : > { %v1610_v50 = vsel %vm1609_vm2, %v1608_v45, %v1604_v16 }
 0x247   : > { %v1612_v53 = vmin.f32 %v1611_v28, %v1610_v50 }
 0x249   : > { %1613 = vst [vmem:[%s2886_s6] sm:$0xf] %v1612_v53 }
 0x250   : > { %v1617_v61 = vld [vmem:[%s2886_s6] sm:$0xf] }
 0x251   : > { %1893 = vrsqrt.f32 %v1617_v61  ;;  %vm1622_vm3 = vcmp.eq.f32.partialorder %v1617_v61, inf  ;;  %v1625_v17 = vand.u32 2147483648, %v1617_v61  ;;  %vm1624_vm4 = vcmp.eq.f32.partialorder %v1617_v61, 0.0 }
 0x252   : > { %vm1628_vm5 = vcmp.ge.f32.partialorder %v1617_v61, 5e+29 }
 0x25b   : > { %v1894_v30 = vpop.eup %1893 }
 0x25c   : > { %v1621_v7 = vmul.f32 %v1894_v30, %v1617_v61 }
 0x25e   : > { %v1623_v1 = vsel %vm1622_vm3, %v1617_v61, %v1621_v7 }
 0x25f   : > { %v1626_v46 = vsel %vm1624_vm4, %v1625_v17, %v1623_v1 }
 0x260   : > { %v1627_v8 = vmul.f32 %v1736_v19, %v1626_v46 }
 0x262   : > { %v1629_v41 = vsel %vm1628_vm5, 0.0, %v1627_v8 }
 0x263   : > { %1630 = vst [vmem:[%s2886_s6] sm:$0xf] %v1629_v41 }
 0x264   : > { %1914 = shalt.err (!%p1911_p5)
}
 0x265   : > { %s1915_s26 = scalar_lea.hbm %s3073_s16, 64  ;;  %s1919_s29 = scalar_lea.hbm %s3125_s2, 128 }
 0x266   : > { %p1916_p6 = scmp.ne.s32.totalorder %s3073_s16, %s1915_s26  ;;  %p1920_p10 = scmp.lt.u32.totalorder %s3073_s16, %s3125_s2 }
 0x267   : > { %p1921_p11 = scmp.lt.u32.totalorder %s1919_s29, %s1915_s26  ;;  %p1923_p13 = scmp.lt.u32.totalorder %s1915_s26, %s3073_s16 }
 0x268   : > { %p1917_p7 = pnand %p1916_p6, %p2042_p4 }
 0x269   : > { %p1922_p12 = por %p1921_p11, %p1920_p10 }
 0x26a   : > { %p1918_p9 = pneg %p1917_p7 }
 0x26b   : > { %p1924_p0 = por %p1923_p13, %p1922_p12 }
 0x26d   : > { %p1925_p1 = pnand %p1924_p0, %p1918_p9 }
 0x26f   : > { %1928 = shalt.err (!%p1925_p1)
}
 0x270   : > { %1741 = dma.vmem_to_hbm [thread:$0]  (%p2042_p4), %s3075_s8, 64, %s3073_s16, %s1632_s20  }
 0x271 PF: > { %p1747_p2 = scmp.ge.s32.totalorder %s1979_s14, 2  ;;  %s1657_s4 = sand.u32 1, %s1959_s9  }
 0x272   : > { %s1658_s5 = scalar_lea.sflag [#allocation3], %s1657_s4 }
 0x273   : > { %p1744_p3 = pnand %p1747_p2, %p2049_p8 }
 0x275   : > { %1954 = dma.done.wait (!%p1744_p3), %s1658_s5, 64  }
 0x276   : > { %1956 = vsyncadd (!%p1744_p3), %s1658_s5, 4294967232  ;;  %s15_s14 = sadd.s32 1, %s1979_s14   ;;  %s3166_s9 = smov %s1963_s10 }
 0x277   : > { %p12_p5 = scmp.ge.s32.totalorder %s15_s14, 4   ;;  %s3167_s10 = smov %s1967_s11 }
 0x278   : > { %s3168_s11 = smov %s2055_s22  ;;  %s3169_s12 = smov %s1975_s13 }
 0x279   : > { %s3170_s13 = smov %s3172_s17  ;;  %14 = sbr.rel (!%p12_p5) target bundleno = 4 (0x4), region = 74 }
 0x280   :  { %1663 = vsyncpa [#allocation3], 1 }
 0x281   :  { %1665 = vsyncpa [#allocation3 + $0x1], 1 }

</bundles_post_ra>
